<compile_context>
chip_gen: v7x
topology: tpu7x:2x2x1
jax: 0.10.0
libtpu: 0.0.40
codegen_flags: <defaults>
</compile_context>

<pallas_src>
import functools
import math

import numpy as np
import jax
import jax.numpy as jnp
from jax.experimental import pallas as pl
from jax.experimental.pallas import tpu as pltpu

EPS_LN = 1e-6

# Row indices inside the packed row-vector parameter array (each row zero-padded to VW lanes).
(_V_G1, _V_B1, _V_PBK, _V_PBV, _V_PBF, _V_G2, _V_B2,
 _V_BQKV, _V_BO, _V_G3, _V_B3, _V_FB1, _V_FB2, _NUM_VROWS) = range(14)

# Slot indices inside the packed weight stack (each matrix zero-padded to [P, P]).
(_W_PK, _W_PV, _W_PF, _W_WO, _W_F1, _W_F2, _W_EXP, _NUM_WSLOTS) = range(8)


def _layer_norm(x, gamma, beta):
    mean = jnp.mean(x, axis=-1, keepdims=True)
    var = jnp.mean(jnp.square(x - mean), axis=-1, keepdims=True)
    return (x - mean) * jax.lax.rsqrt(var + EPS_LN) * gamma + beta


# ----------------------------- fused kernel: whole batch in one step -----------------------------
def _fused_kernel(x_ref, keep_ref, ibias_ref, vec_ref, w_ref, wqkv_ref, out_ref,
                  *, B, nb, L, heads, dh, D, d_ff):
    NB = B * nb                     # total number of blocks
    BR = NB * L                     # total number of tokens

    x = x_ref[...]                  # [BR, D]
    keep = keep_ref[...]            # [BR, 1]  1.0 = real token, 0.0 = padding

    def vrow(i, width):             # packed row-vector parameter, [1, width]
        return vec_ref[i:i + 1, 0:width]

    # ---------------- layer_norm1 + MultiHeadedPooling ----------------
    wvec = _layer_norm(x, vrow(_V_G1, D), vrow(_V_B1, D))                                    # [BR, D]

    pwk = w_ref[_W_PK, 0:D, 0:heads]
    pwv = w_ref[_W_PV, 0:D, 0:D]
    scores = jnp.dot(wvec, pwk, preferred_element_type=jnp.float32) + vrow(_V_PBK, heads)    # [BR, H]
    vals = jnp.dot(wvec, pwv, preferred_element_type=jnp.float32) + vrow(_V_PBV, D)          # [BR, D]
    scores = scores + (keep - 1.0) * 1e18        # additive -1e18 bias on padded tokens

    # per-block softmax over the L tokens of each block (L == 8 -> sublane-natural reshape)
    s3 = scores.reshape(NB, L, heads)
    smax = jnp.max(s3, axis=1, keepdims=True)                                                # [NB, 1, H]
    pexp = jnp.exp(s3 - smax)
    attn = pexp / jnp.sum(pexp, axis=1, keepdims=True)                                       # [NB, L, H]

    # broadcast each head's weight across its dh feature columns (one-hot matmul, M = BR rows),
    # then weighted-sum the value rows per block.
    expand = w_ref[_W_EXP, 0:heads, 0:D]                                                     # [H, D]
    attn_full = jnp.dot(attn.reshape(BR, heads), expand,
                        preferred_element_type=jnp.float32)                                  # [BR, D]
    ctx = jnp.sum((attn_full * vals).reshape(NB, L, D), axis=1)                              # [NB, D]

    # masked mean of word_vec over each block
    num = jnp.sum((wvec * keep).reshape(NB, L, D), axis=1)                                   # [NB, D]
    den = jnp.sum(keep.reshape(NB, L, 1), axis=1) + 1e-9                                     # [NB, 1]
    avg = num / den

    pwf = w_ref[_W_PF, 0:D, 0:D]
    pooled = jnp.dot(ctx, pwf, preferred_element_type=jnp.float32) + vrow(_V_PBF, D)         # [NB, D]
    bvec = _layer_norm(pooled + avg, vrow(_V_G2, D), vrow(_V_B2, D))                         # [NB, D]

    # ---------------- inter-block multi-head attention ----------------
    # Single full-width fused QKV projection; heads are dh-wide column slices of the result.
    qkv = jnp.dot(bvec, wqkv_ref[...], preferred_element_type=jnp.float32) + vrow(_V_BQKV, 3 * D)
    qkv3 = qkv.reshape(B, nb, 3 * D)
    ibias = ibias_ref[...]                                                                   # [B, 1, nb]
    scale = 1.0 / math.sqrt(dh)

    ctx_heads = []
    for h in range(heads):                       # static unroll over heads
        qh = qkv3[:, :, h * dh:(h + 1) * dh] * scale                                         # [B, nb, dh]
        kh = qkv3[:, :, D + h * dh:D + (h + 1) * dh]                                         # [B, nb, dh]
        vh = qkv3[:, :, 2 * D + h * dh:2 * D + (h + 1) * dh]                                 # [B, nb, dh]
        s = jnp.einsum('bqd,bkd->bqk', qh, kh, preferred_element_type=jnp.float32)           # [B, nb, nb]
        s = s + ibias
        smx = jnp.max(s, axis=-1, keepdims=True)
        pe = jnp.exp(s - smx)
        a = pe / jnp.sum(pe, axis=-1, keepdims=True)
        ctx_heads.append(jnp.einsum('bqk,bkd->bqd', a, vh,
                                    preferred_element_type=jnp.float32))                     # [B, nb, dh]
    # head-major concat matches torch's unshape() ordering -> single full-width output matmul
    cat = jnp.concatenate(ctx_heads, axis=-1).reshape(NB, D)                                 # [NB, D]
    wo = w_ref[_W_WO, 0:D, 0:D]
    att = jnp.dot(cat, wo, preferred_element_type=jnp.float32) + vrow(_V_BO, D)              # [NB, D]

    # ---------------- residual add + PositionwiseFeedForward ----------------
    # Broadcast each block's attention vector over its L token rows (pure sublane broadcast).
    y = (x.reshape(NB, L, D) + att.reshape(NB, 1, D)).reshape(BR, D)                         # [BR, D]
    h1 = _layer_norm(y, vrow(_V_G3, D), vrow(_V_B3, D))
    w1 = w_ref[_W_F1, 0:D, 0:d_ff]
    w2 = w_ref[_W_F2, 0:d_ff, 0:D]
    h1 = jnp.maximum(jnp.dot(h1, w1, preferred_element_type=jnp.float32) + vrow(_V_FB1, d_ff), 0.0)
    out = jnp.dot(h1, w2, preferred_element_type=jnp.float32) + vrow(_V_FB2, D) + y
    out_ref[...] = out
    # TODO(synk): at D=32 every vector op / store is lane-sparse (32/128 lanes); if d_model stays
    # this small in production, a host-side layout folding blocks into the feature axis would make
    # the elementwise/FFN portions lane-dense, at the cost of extra layer-norm plumbing.


def transformer_new_inter_layer(p, inputs, mask_local, mask_inter, batch_size, n_blocks, heads):
    # TODO(synk): dropout layers are identities (eval mode); no stochastic dropout implemented.
    N, L, D = inputs.shape
    B, nb = batch_size, n_blocks
    NB = B * nb
    assert NB == N
    BR = NB * L
    dh = D // heads
    d_ff = p['ffn_W1'].shape[1]

    # ---- host-side one-time packing: ~29 tiny operands -> 6 DMA streams ----
    x = inputs.reshape(BR, D).astype(jnp.float32)
    keep = (1.0 - mask_local.astype(jnp.float32)).reshape(BR, 1)
    ibias = (mask_inter.astype(jnp.float32) * np.float32(-1e18)).reshape(B, 1, nb)

    # torch MultiHeadedPooling flattens the pooled context dh-major before final_linear; permute
    # final-linear rows once so the kernel's head-major context can be used directly.
    idx = np.arange(D)
    perm_inv = (idx % dh) * heads + (idx // dh)
    wf_perm = p['pool_Wf'][perm_inv]
    # one-hot head -> feature-column expansion (broadcasts per-head pooling weights over dh cols)
    expand = jnp.asarray((np.arange(D)[None, :] // dh) == np.arange(heads)[:, None], jnp.float32)

    # packed row-vector parameters, each zero-padded to VW lanes (VW >= max(3D, d_ff), lane-dense)
    VW = ((max(128, 3 * D, d_ff) + 127) // 128) * 128

    def pad_row(v):
        v = jnp.asarray(v, jnp.float32).reshape(1, -1)
        return jnp.pad(v, ((0, 0), (0, VW - v.shape[1])))

    rows = [None] * _NUM_VROWS
    rows[_V_G1], rows[_V_B1] = p['g1'], p['b1']
    rows[_V_PBK], rows[_V_PBV], rows[_V_PBF] = p['pool_bk'], p['pool_bv'], p['pool_bf']
    rows[_V_G2], rows[_V_B2] = p['g2'], p['b2']
    rows[_V_BQKV] = jnp.concatenate([p['att_bq'], p['att_bk'], p['att_bv']], axis=-1)
    rows[_V_BO] = p['att_bo']
    rows[_V_G3], rows[_V_B3] = p['g3'], p['b3']
    rows[_V_FB1], rows[_V_FB2] = p['ffn_b1'], p['ffn_b2']
    vecs = jnp.concatenate([pad_row(r) for r in rows], axis=0)
    vecs = jnp.pad(vecs, ((0, (-_NUM_VROWS) % 8), (0, 0)))     # pad row count to a multiple of 8

    # packed weight stack, each matrix zero-padded to [P, P]
    P = max(D, d_ff)

    def pad_w(w):
        w = jnp.asarray(w, jnp.float32)
        return jnp.pad(w, ((0, P - w.shape[0]), (0, P - w.shape[1])))

    slots = [None] * _NUM_WSLOTS
    slots[_W_PK], slots[_W_PV], slots[_W_PF] = p['pool_Wk'], p['pool_Wv'], wf_perm
    slots[_W_WO] = p['att_Wo']
    slots[_W_F1], slots[_W_F2] = p['ffn_W1'], p['ffn_W2']
    slots[_W_EXP] = expand
    wstack = jnp.stack([pad_w(s) for s in slots])

    # fused QKV weight for the inter-block attention
    wqkv = jnp.concatenate([p['att_Wq'], p['att_Wk'], p['att_Wv']], axis=-1)   # [D, 3D]

    kernel = functools.partial(_fused_kernel, B=B, nb=nb, L=L, heads=heads, dh=dh, D=D, d_ff=d_ff)
    out = pl.pallas_call(
        kernel,
        out_shape=jax.ShapeDtypeStruct((BR, D), jnp.float32),
        in_specs=[pl.BlockSpec(memory_space=pltpu.MemorySpace.VMEM)] * 6,
        out_specs=pl.BlockSpec(memory_space=pltpu.MemorySpace.VMEM),
    )(x, keep, ibias, vecs, wstack, wqkv)
    return out.reshape(N, L, D)


# --------------------------- pure-JAX reference (faithful to the torch forward) ---------------------------
def reference_forward(p, inputs, mask_local, mask_inter, batch_size, n_blocks, heads):
    N, L, D = inputs.shape
    dh = D // heads
    wv = _layer_norm(inputs, p['g1'], p['b1'])
    scores = jnp.einsum('nld,dh->nlh', wv, p['pool_Wk']) + p['pool_bk']
    vals = jnp.einsum('nld,de->nle', wv, p['pool_Wv']) + p['pool_bv']
    scores = jnp.transpose(scores, (0, 2, 1))                                  # [N, H, L]
    scores = jnp.where(mask_local[:, None, :] > 0.5, -1e18, scores)
    attn = jax.nn.softmax(scores, axis=-1)
    vals4 = jnp.transpose(vals.reshape(N, L, heads, dh), (0, 2, 1, 3))         # [N, H, L, dh]
    context = jnp.sum(attn[..., None] * vals4, axis=-2)                        # [N, H, dh]
    ctx_dm = jnp.transpose(context, (0, 2, 1)).reshape(N, D)                   # torch unshape order
    pooled = ctx_dm @ p['pool_Wf'] + p['pool_bf']
    keep = (1.0 - mask_local)[..., None]
    avg = jnp.sum(wv * keep, axis=1) / (jnp.sum(keep, axis=1) + 1e-9)
    bvec = _layer_norm(pooled + avg, p['g2'], p['b2']).reshape(batch_size, n_blocks, D)

    def split_heads(x):
        return jnp.transpose(x.reshape(batch_size, n_blocks, heads, dh), (0, 2, 1, 3))

    q = split_heads(bvec @ p['att_Wq'] + p['att_bq']) / np.sqrt(dh)
    k = split_heads(bvec @ p['att_Wk'] + p['att_bk'])
    v = split_heads(bvec @ p['att_Wv'] + p['att_bv'])
    s = jnp.einsum('bhqd,bhkd->bhqk', q, k)
    s = jnp.where(mask_inter[:, None, None, :] > 0.5, -1e18, s)
    a = jax.nn.softmax(s, axis=-1)
    c = jnp.einsum('bhqk,bhkd->bhqd', a, v)
    c = jnp.transpose(c, (0, 2, 1, 3)).reshape(batch_size, n_blocks, D)
    att = (c @ p['att_Wo'] + p['att_bo']).reshape(N, 1, D)

    x = inputs + att
    h = _layer_norm(x, p['g3'], p['b3'])
    h = jnp.maximum(h @ p['ffn_W1'] + p['ffn_b1'], 0.0)
    return (h @ p['ffn_W2'] + p['ffn_b2']) + x


if __name__ == "__main__":
    jax.config.update("jax_default_matmul_precision", "highest")

    batch_size, n_blocks, L = 2, 4, 8
    d_model, heads, d_ff = 32, 4, 64
    N = batch_size * n_blocks

    key = jax.random.PRNGKey(0)
    ks = jax.random.split(key, 16)

    def w(k, shape, scale=0.05):
        return jax.random.normal(k, shape, jnp.float32) * scale

    p = {
        'g1': jnp.ones((1, d_model), jnp.float32), 'b1': jnp.zeros((1, d_model), jnp.float32),
        'pool_Wk': w(ks[0], (d_model, heads)), 'pool_bk': jnp.zeros((1, heads), jnp.float32),
        'pool_Wv': w(ks[1], (d_model, d_model)), 'pool_bv': jnp.zeros((1, d_model), jnp.float32),
        'pool_Wf': w(ks[2], (d_model, d_model)), 'pool_bf': jnp.zeros((1, d_model), jnp.float32),
        'g2': jnp.ones((1, d_model), jnp.float32), 'b2': jnp.zeros((1, d_model), jnp.float32),
        'att_Wq': w(ks[3], (d_model, d_model)), 'att_bq': w(ks[4], (1, d_model), 0.01),
        'att_Wk': w(ks[5], (d_model, d_model)), 'att_bk': w(ks[6], (1, d_model), 0.01),
        'att_Wv': w(ks[7], (d_model, d_model)), 'att_bv': w(ks[8], (1, d_model), 0.01),
        'att_Wo': w(ks[9], (d_model, d_model)), 'att_bo': w(ks[10], (1, d_model), 0.01),
        'g3': jnp.ones((1, d_model), jnp.float32), 'b3': jnp.zeros((1, d_model), jnp.float32),
        'ffn_W1': w(ks[11], (d_model, d_ff)), 'ffn_b1': w(ks[12], (1, d_ff), 0.01),
        'ffn_W2': w(ks[13], (d_ff, d_model)), 'ffn_b2': w(ks[14], (1, d_model), 0.01),
    }

    inputs = jax.random.normal(ks[15], (N, L, d_model), jnp.float32)
    lens_local = np.array([8, 6, 5, 7, 8, 4, 6, 3])
    mask_local = jnp.asarray(
        (np.arange(L)[None, :] >= lens_local[:, None]).astype(np.float32))         # [N, L], 1 = pad
    lens_inter = np.array([4, 3])
    mask_inter = jnp.asarray(
        (np.arange(n_blocks)[None, :] >= lens_inter[:, None]).astype(np.float32))  # [B, nb]

    out = transformer_new_inter_layer(p, inputs, mask_local, mask_inter,
                                      batch_size, n_blocks, heads)
    out = jax.block_until_ready(out)

    ref = reference_forward(p, inputs, mask_local, mask_inter, batch_size, n_blocks, heads)
    assert out.shape == (N, L, d_model)
    assert bool(jnp.all(jnp.isfinite(out)))
    err = float(jnp.max(jnp.abs(out - ref)))
    assert bool(jnp.allclose(out, ref, rtol=2e-3, atol=2e-3)), err
    print("KERNEL_OK")
</pallas_src>

<mosaic_0001>
module attributes {stable_mosaic.version = 11 : i64} {
  func.func @_fused_kernel(%arg0: memref<64x32xf32, #tpu.memory_space<vmem>>, %arg1: memref<64x1xf32, #tpu.memory_space<vmem>>, %arg2: memref<2x1x4xf32, #tpu.memory_space<vmem>>, %arg3: memref<16x128xf32, #tpu.memory_space<vmem>>, %arg4: memref<7x64x64xf32, #tpu.memory_space<vmem>>, %arg5: memref<32x96xf32, #tpu.memory_space<vmem>>, %arg6: memref<64x32xf32, #tpu.memory_space<vmem>>) attributes {dimension_semantics = [], scalar_prefetch = 0 : i64, scratch_operands = 0 : i64, tpu.core_type = #tpu.core_type<tc>} {
    %c0 = arith.constant 0 : index
    %c0_0 = arith.constant 0 : index
    %0 = vector.load %arg0[%c0, %c0_0] : memref<64x32xf32, #tpu.memory_space<vmem>>, vector<64x32xf32>
    %c0_1 = arith.constant 0 : index
    %c0_2 = arith.constant 0 : index
    %1 = vector.load %arg1[%c0_1, %c0_2] : memref<64x1xf32, #tpu.memory_space<vmem>>, vector<64x1xf32>
    %c0_3 = arith.constant 0 : index
    %c0_4 = arith.constant 0 : index
    %2 = vector.load %arg3[%c0_3, %c0_4] : memref<16x128xf32, #tpu.memory_space<vmem>>, vector<1x32xf32>
    %c1 = arith.constant 1 : index
    %c0_5 = arith.constant 0 : index
    %3 = vector.load %arg3[%c1, %c0_5] : memref<16x128xf32, #tpu.memory_space<vmem>>, vector<1x32xf32>
    %cst = arith.constant dense<0.000000e+00> : vector<64xf32>
    %4 = vector.multi_reduction <add>, %0, %cst [1] : vector<64x32xf32> to vector<64xf32>
    %5 = vector.shape_cast %4 : vector<64xf32> to vector<64x1xf32>
    %cst_6 = arith.constant 3.200000e+01 : f32
    %6 = vector.broadcast %cst_6 : f32 to vector<64x1xf32>
    %7 = arith.divf %5, %6 : vector<64x1xf32>
    %8 = vector.broadcast %7 : vector<64x1xf32> to vector<64x32xf32>
    %9 = arith.subf %0, %8 : vector<64x32xf32>
    %10 = arith.mulf %9, %9 : vector<64x32xf32>
    %cst_7 = arith.constant dense<0.000000e+00> : vector<64xf32>
    %11 = vector.multi_reduction <add>, %10, %cst_7 [1] : vector<64x32xf32> to vector<64xf32>
    %12 = vector.shape_cast %11 : vector<64xf32> to vector<64x1xf32>
    %cst_8 = arith.constant 3.200000e+01 : f32
    %13 = vector.broadcast %cst_8 : f32 to vector<64x1xf32>
    %14 = arith.divf %12, %13 : vector<64x1xf32>
    %15 = vector.broadcast %7 : vector<64x1xf32> to vector<64x32xf32>
    %16 = arith.subf %0, %15 : vector<64x32xf32>
    %cst_9 = arith.constant 9.99999997E-7 : f32
    %17 = vector.broadcast %cst_9 : f32 to vector<64x1xf32>
    %18 = arith.addf %14, %17 : vector<64x1xf32>
    %19 = math.rsqrt %18 : vector<64x1xf32>
    %20 = vector.broadcast %19 : vector<64x1xf32> to vector<64x32xf32>
    %21 = arith.mulf %16, %20 : vector<64x32xf32>
    %22 = vector.broadcast %2 : vector<1x32xf32> to vector<64x32xf32>
    %23 = arith.mulf %21, %22 : vector<64x32xf32>
    %24 = vector.broadcast %3 : vector<1x32xf32> to vector<64x32xf32>
    %25 = arith.addf %23, %24 : vector<64x32xf32>
    %c0_10 = arith.constant 0 : index
    %c0_11 = arith.constant 0 : index
    %c0_12 = arith.constant 0 : index
    %26 = vector.load %arg4[%c0_10, %c0_11, %c0_12] : memref<7x64x64xf32, #tpu.memory_space<vmem>>, vector<1x32x4xf32>
    %27 = vector.shape_cast %26 : vector<1x32x4xf32> to vector<32x4xf32>
    %c1_13 = arith.constant 1 : index
    %c0_14 = arith.constant 0 : index
    %c0_15 = arith.constant 0 : index
    %28 = vector.load %arg4[%c1_13, %c0_14, %c0_15] : memref<7x64x64xf32, #tpu.memory_space<vmem>>, vector<1x32x32xf32>
    %29 = vector.shape_cast %28 : vector<1x32x32xf32> to vector<32x32xf32>
    %cst_16 = arith.constant dense<0.000000e+00> : vector<64x4xf32>
    %30 = tpu.matmul %25, %27, %cst_16 {dimension_numbers = #tpu.dot_dimension_numbers<[1], [0], [0], [1], [0, 0, 1, 1], [], []>, precision = #tpu.contract_precision<fp32>} : vector<64x32xf32>, vector<32x4xf32>, vector<64x4xf32> -> vector<64x4xf32>
    %c2 = arith.constant 2 : index
    %c0_17 = arith.constant 0 : index
    %31 = vector.load %arg3[%c2, %c0_17] : memref<16x128xf32, #tpu.memory_space<vmem>>, vector<1x4xf32>
    %32 = vector.broadcast %31 : vector<1x4xf32> to vector<64x4xf32>
    %33 = arith.addf %30, %32 : vector<64x4xf32>
    %cst_18 = arith.constant dense<0.000000e+00> : vector<64x32xf32>
    %34 = tpu.matmul %25, %29, %cst_18 {dimension_numbers = #tpu.dot_dimension_numbers<[1], [0], [0], [1], [0, 0, 1, 1], [], []>, precision = #tpu.contract_precision<fp32>} : vector<64x32xf32>, vector<32x32xf32>, vector<64x32xf32> -> vector<64x32xf32>
    %c3 = arith.constant 3 : index
    %c0_19 = arith.constant 0 : index
    %35 = vector.load %arg3[%c3, %c0_19] : memref<16x128xf32, #tpu.memory_space<vmem>>, vector<1x32xf32>
    %36 = vector.broadcast %35 : vector<1x32xf32> to vector<64x32xf32>
    %37 = arith.addf %34, %36 : vector<64x32xf32>
    %cst_20 = arith.constant 1.000000e+00 : f32
    %38 = vector.broadcast %cst_20 : f32 to vector<64x1xf32>
    %39 = arith.subf %1, %38 : vector<64x1xf32>
    %cst_21 = arith.constant 9.99999984E+17 : f32
    %40 = vector.broadcast %cst_21 : f32 to vector<64x1xf32>
    %41 = arith.mulf %39, %40 : vector<64x1xf32>
    %42 = vector.broadcast %41 : vector<64x1xf32> to vector<64x4xf32>
    %43 = arith.addf %33, %42 : vector<64x4xf32>
    %44 = vector.shape_cast %43 : vector<64x4xf32> to vector<8x8x4xf32>
    %cst_22 = arith.constant dense<0xFF800000> : vector<8x4xf32>
    %45 = vector.multi_reduction <maximumf>, %44, %cst_22 [1] : vector<8x8x4xf32> to vector<8x4xf32>
    %46 = vector.shape_cast %45 : vector<8x4xf32> to vector<8x1x4xf32>
    %47 = vector.broadcast %46 : vector<8x1x4xf32> to vector<8x8x4xf32>
    %48 = arith.subf %44, %47 : vector<8x8x4xf32>
    %49 = math.exp %48 : vector<8x8x4xf32>
    %cst_23 = arith.constant dense<0.000000e+00> : vector<8x4xf32>
    %50 = vector.multi_reduction <add>, %49, %cst_23 [1] : vector<8x8x4xf32> to vector<8x4xf32>
    %51 = vector.shape_cast %50 : vector<8x4xf32> to vector<8x1x4xf32>
    %52 = vector.broadcast %51 : vector<8x1x4xf32> to vector<8x8x4xf32>
    %53 = arith.divf %49, %52 : vector<8x8x4xf32>
    %c6 = arith.constant 6 : index
    %c0_24 = arith.constant 0 : index
    %c0_25 = arith.constant 0 : index
    %54 = vector.load %arg4[%c6, %c0_24, %c0_25] : memref<7x64x64xf32, #tpu.memory_space<vmem>>, vector<1x4x32xf32>
    %55 = vector.shape_cast %54 : vector<1x4x32xf32> to vector<4x32xf32>
    %56 = vector.shape_cast %53 : vector<8x8x4xf32> to vector<64x4xf32>
    %cst_26 = arith.constant dense<0.000000e+00> : vector<64x32xf32>
    %57 = tpu.matmul %56, %55, %cst_26 {dimension_numbers = #tpu.dot_dimension_numbers<[1], [0], [0], [1], [0, 0, 1, 1], [], []>, precision = #tpu.contract_precision<fp32>} : vector<64x4xf32>, vector<4x32xf32>, vector<64x32xf32> -> vector<64x32xf32>
    %58 = arith.mulf %57, %37 : vector<64x32xf32>
    %59 = vector.shape_cast %58 : vector<64x32xf32> to vector<8x8x32xf32>
    %cst_27 = arith.constant dense<0.000000e+00> : vector<8x32xf32>
    %60 = vector.multi_reduction <add>, %59, %cst_27 [1] : vector<8x8x32xf32> to vector<8x32xf32>
    %61 = vector.broadcast %1 : vector<64x1xf32> to vector<64x32xf32>
    %62 = arith.mulf %25, %61 : vector<64x32xf32>
    %63 = vector.shape_cast %62 : vector<64x32xf32> to vector<8x8x32xf32>
    %cst_28 = arith.constant dense<0.000000e+00> : vector<8x32xf32>
    %64 = vector.multi_reduction <add>, %63, %cst_28 [1] : vector<8x8x32xf32> to vector<8x32xf32>
    %65 = vector.shape_cast %1 : vector<64x1xf32> to vector<8x8x1xf32>
    %cst_29 = arith.constant dense<0.000000e+00> : vector<8x1xf32>
    %66 = vector.multi_reduction <add>, %65, %cst_29 [1] : vector<8x8x1xf32> to vector<8x1xf32>
    %cst_30 = arith.constant 9.99999971E-10 : f32
    %67 = vector.broadcast %cst_30 : f32 to vector<8x1xf32>
    %68 = arith.addf %66, %67 : vector<8x1xf32>
    %69 = vector.broadcast %68 : vector<8x1xf32> to vector<8x32xf32>
    %70 = arith.divf %64, %69 : vector<8x32xf32>
    %c2_31 = arith.constant 2 : index
    %c0_32 = arith.constant 0 : index
    %c0_33 = arith.constant 0 : index
    %71 = vector.load %arg4[%c2_31, %c0_32, %c0_33] : memref<7x64x64xf32, #tpu.memory_space<vmem>>, vector<1x32x32xf32>
    %72 = vector.shape_cast %71 : vector<1x32x32xf32> to vector<32x32xf32>
    %cst_34 = arith.constant dense<0.000000e+00> : vector<8x32xf32>
    %73 = tpu.matmul %60, %72, %cst_34 {dimension_numbers = #tpu.dot_dimension_numbers<[1], [0], [0], [1], [0, 0, 1, 1], [], []>, precision = #tpu.contract_precision<fp32>} : vector<8x32xf32>, vector<32x32xf32>, vector<8x32xf32> -> vector<8x32xf32>
    %c4 = arith.constant 4 : index
    %c0_35 = arith.constant 0 : index
    %74 = vector.load %arg3[%c4, %c0_35] : memref<16x128xf32, #tpu.memory_space<vmem>>, vector<1x32xf32>
    %75 = vector.broadcast %74 : vector<1x32xf32> to vector<8x32xf32>
    %76 = arith.addf %73, %75 : vector<8x32xf32>
    %77 = arith.addf %76, %70 : vector<8x32xf32>
    %c5 = arith.constant 5 : index
    %c0_36 = arith.constant 0 : index
    %78 = vector.load %arg3[%c5, %c0_36] : memref<16x128xf32, #tpu.memory_space<vmem>>, vector<1x32xf32>
    %c6_37 = arith.constant 6 : index
    %c0_38 = arith.constant 0 : index
    %79 = vector.load %arg3[%c6_37, %c0_38] : memref<16x128xf32, #tpu.memory_space<vmem>>, vector<1x32xf32>
    %cst_39 = arith.constant dense<0.000000e+00> : vector<8xf32>
    %80 = vector.multi_reduction <add>, %77, %cst_39 [1] : vector<8x32xf32> to vector<8xf32>
    %81 = vector.shape_cast %80 : vector<8xf32> to vector<8x1xf32>
    %cst_40 = arith.constant 3.200000e+01 : f32
    %82 = vector.broadcast %cst_40 : f32 to vector<8x1xf32>
    %83 = arith.divf %81, %82 : vector<8x1xf32>
    %84 = vector.broadcast %83 : vector<8x1xf32> to vector<8x32xf32>
    %85 = arith.subf %77, %84 : vector<8x32xf32>
    %86 = arith.mulf %85, %85 : vector<8x32xf32>
    %cst_41 = arith.constant dense<0.000000e+00> : vector<8xf32>
    %87 = vector.multi_reduction <add>, %86, %cst_41 [1] : vector<8x32xf32> to vector<8xf32>
    %88 = vector.shape_cast %87 : vector<8xf32> to vector<8x1xf32>
    %cst_42 = arith.constant 3.200000e+01 : f32
    %89 = vector.broadcast %cst_42 : f32 to vector<8x1xf32>
    %90 = arith.divf %88, %89 : vector<8x1xf32>
    %91 = vector.broadcast %83 : vector<8x1xf32> to vector<8x32xf32>
    %92 = arith.subf %77, %91 : vector<8x32xf32>
    %cst_43 = arith.constant 9.99999997E-7 : f32
    %93 = vector.broadcast %cst_43 : f32 to vector<8x1xf32>
    %94 = arith.addf %90, %93 : vector<8x1xf32>
    %95 = math.rsqrt %94 : vector<8x1xf32>
    %96 = vector.broadcast %95 : vector<8x1xf32> to vector<8x32xf32>
    %97 = arith.mulf %92, %96 : vector<8x32xf32>
    %98 = vector.broadcast %78 : vector<1x32xf32> to vector<8x32xf32>
    %99 = arith.mulf %97, %98 : vector<8x32xf32>
    %100 = vector.broadcast %79 : vector<1x32xf32> to vector<8x32xf32>
    %101 = arith.addf %99, %100 : vector<8x32xf32>
    %c0_44 = arith.constant 0 : index
    %c0_45 = arith.constant 0 : index
    %102 = vector.load %arg5[%c0_44, %c0_45] : memref<32x96xf32, #tpu.memory_space<vmem>>, vector<32x96xf32>
    %cst_46 = arith.constant dense<0.000000e+00> : vector<8x96xf32>
    %103 = tpu.matmul %101, %102, %cst_46 {dimension_numbers = #tpu.dot_dimension_numbers<[1], [0], [0], [1], [0, 0, 1, 1], [], []>, precision = #tpu.contract_precision<fp32>} : vector<8x32xf32>, vector<32x96xf32>, vector<8x96xf32> -> vector<8x96xf32>
    %c7 = arith.constant 7 : index
    %c0_47 = arith.constant 0 : index
    %104 = vector.load %arg3[%c7, %c0_47] : memref<16x128xf32, #tpu.memory_space<vmem>>, vector<1x96xf32>
    %105 = vector.broadcast %104 : vector<1x96xf32> to vector<8x96xf32>
    %106 = arith.addf %103, %105 : vector<8x96xf32>
    %107 = vector.shape_cast %106 : vector<8x96xf32> to vector<2x4x96xf32>
    %c0_48 = arith.constant 0 : index
    %c0_49 = arith.constant 0 : index
    %c0_50 = arith.constant 0 : index
    %108 = vector.load %arg2[%c0_48, %c0_49, %c0_50] : memref<2x1x4xf32, #tpu.memory_space<vmem>>, vector<2x1x4xf32>
    %109 = vector.extract_strided_slice %107 {offsets = [0, 0, 0], sizes = [2, 4, 8], strides = [1, 1, 1]} : vector<2x4x96xf32> to vector<2x4x8xf32>
    %cst_51 = arith.constant 0.353553385 : f32
    %110 = vector.broadcast %cst_51 : f32 to vector<2x4x8xf32>
    %111 = arith.mulf %109, %110 : vector<2x4x8xf32>
    %112 = vector.extract_strided_slice %107 {offsets = [0, 0, 32], sizes = [2, 4, 8], strides = [1, 1, 1]} : vector<2x4x96xf32> to vector<2x4x8xf32>
    %113 = vector.extract_strided_slice %107 {offsets = [0, 0, 64], sizes = [2, 4, 8], strides = [1, 1, 1]} : vector<2x4x96xf32> to vector<2x4x8xf32>
    "tpu.trace_start"() <{level = 10 : i32, message = "bqd,bkd->bqk"}> : () -> ()
    %cst_52 = arith.constant dense<0.000000e+00> : vector<2x4x4xf32>
    %114 = tpu.matmul %111, %112, %cst_52 {dimension_numbers = #tpu.dot_dimension_numbers<[2], [2], [1], [1], [0, 0, 0, 1, 1, 1], [0], [0]>, precision = #tpu.contract_precision<fp32>} : vector<2x4x8xf32>, vector<2x4x8xf32>, vector<2x4x4xf32> -> vector<2x4x4xf32>
    "tpu.trace_stop"() : () -> ()
    %115 = vector.broadcast %108 : vector<2x1x4xf32> to vector<2x4x4xf32>
    %116 = arith.addf %114, %115 : vector<2x4x4xf32>
    %cst_53 = arith.constant dense<0xFF800000> : vector<2x4xf32>
    %117 = vector.multi_reduction <maximumf>, %116, %cst_53 [2] : vector<2x4x4xf32> to vector<2x4xf32>
    %118 = vector.shape_cast %117 : vector<2x4xf32> to vector<2x4x1xf32>
    %119 = vector.broadcast %118 : vector<2x4x1xf32> to vector<2x4x4xf32>
    %120 = arith.subf %116, %119 : vector<2x4x4xf32>
    %121 = math.exp %120 : vector<2x4x4xf32>
    %cst_54 = arith.constant dense<0.000000e+00> : vector<2x4xf32>
    %122 = vector.multi_reduction <add>, %121, %cst_54 [2] : vector<2x4x4xf32> to vector<2x4xf32>
    %123 = vector.shape_cast %122 : vector<2x4xf32> to vector<2x4x1xf32>
    %124 = vector.broadcast %123 : vector<2x4x1xf32> to vector<2x4x4xf32>
    %125 = arith.divf %121, %124 : vector<2x4x4xf32>
    "tpu.trace_start"() <{level = 10 : i32, message = "bqk,bkd->bqd"}> : () -> ()
    %cst_55 = arith.constant dense<0.000000e+00> : vector<2x4x8xf32>
    %126 = tpu.matmul %125, %113, %cst_55 {dimension_numbers = #tpu.dot_dimension_numbers<[2], [1], [1], [2], [0, 0, 0, 1, 1, 2], [0], [0]>, precision = #tpu.contract_precision<fp32>} : vector<2x4x4xf32>, vector<2x4x8xf32>, vector<2x4x8xf32> -> vector<2x4x8xf32>
    "tpu.trace_stop"() : () -> ()
    %127 = vector.extract_strided_slice %107 {offsets = [0, 0, 8], sizes = [2, 4, 8], strides = [1, 1, 1]} : vector<2x4x96xf32> to vector<2x4x8xf32>
    %cst_56 = arith.constant 0.353553385 : f32
    %128 = vector.broadcast %cst_56 : f32 to vector<2x4x8xf32>
    %129 = arith.mulf %127, %128 : vector<2x4x8xf32>
    %130 = vector.extract_strided_slice %107 {offsets = [0, 0, 40], sizes = [2, 4, 8], strides = [1, 1, 1]} : vector<2x4x96xf32> to vector<2x4x8xf32>
    %131 = vector.extract_strided_slice %107 {offsets = [0, 0, 72], sizes = [2, 4, 8], strides = [1, 1, 1]} : vector<2x4x96xf32> to vector<2x4x8xf32>
    "tpu.trace_start"() <{level = 10 : i32, message = "bqd,bkd->bqk"}> : () -> ()
    %cst_57 = arith.constant dense<0.000000e+00> : vector<2x4x4xf32>
    %132 = tpu.matmul %129, %130, %cst_57 {dimension_numbers = #tpu.dot_dimension_numbers<[2], [2], [1], [1], [0, 0, 0, 1, 1, 1], [0], [0]>, precision = #tpu.contract_precision<fp32>} : vector<2x4x8xf32>, vector<2x4x8xf32>, vector<2x4x4xf32> -> vector<2x4x4xf32>
    "tpu.trace_stop"() : () -> ()
    %133 = vector.broadcast %108 : vector<2x1x4xf32> to vector<2x4x4xf32>
    %134 = arith.addf %132, %133 : vector<2x4x4xf32>
    %cst_58 = arith.constant dense<0xFF800000> : vector<2x4xf32>
    %135 = vector.multi_reduction <maximumf>, %134, %cst_58 [2] : vector<2x4x4xf32> to vector<2x4xf32>
    %136 = vector.shape_cast %135 : vector<2x4xf32> to vector<2x4x1xf32>
    %137 = vector.broadcast %136 : vector<2x4x1xf32> to vector<2x4x4xf32>
    %138 = arith.subf %134, %137 : vector<2x4x4xf32>
    %139 = math.exp %138 : vector<2x4x4xf32>
    %cst_59 = arith.constant dense<0.000000e+00> : vector<2x4xf32>
    %140 = vector.multi_reduction <add>, %139, %cst_59 [2] : vector<2x4x4xf32> to vector<2x4xf32>
    %141 = vector.shape_cast %140 : vector<2x4xf32> to vector<2x4x1xf32>
    %142 = vector.broadcast %141 : vector<2x4x1xf32> to vector<2x4x4xf32>
    %143 = arith.divf %139, %142 : vector<2x4x4xf32>
    "tpu.trace_start"() <{level = 10 : i32, message = "bqk,bkd->bqd"}> : () -> ()
    %cst_60 = arith.constant dense<0.000000e+00> : vector<2x4x8xf32>
    %144 = tpu.matmul %143, %131, %cst_60 {dimension_numbers = #tpu.dot_dimension_numbers<[2], [1], [1], [2], [0, 0, 0, 1, 1, 2], [0], [0]>, precision = #tpu.contract_precision<fp32>} : vector<2x4x4xf32>, vector<2x4x8xf32>, vector<2x4x8xf32> -> vector<2x4x8xf32>
    "tpu.trace_stop"() : () -> ()
    %145 = vector.extract_strided_slice %107 {offsets = [0, 0, 16], sizes = [2, 4, 8], strides = [1, 1, 1]} : vector<2x4x96xf32> to vector<2x4x8xf32>
    %cst_61 = arith.constant 0.353553385 : f32
    %146 = vector.broadcast %cst_61 : f32 to vector<2x4x8xf32>
    %147 = arith.mulf %145, %146 : vector<2x4x8xf32>
    %148 = vector.extract_strided_slice %107 {offsets = [0, 0, 48], sizes = [2, 4, 8], strides = [1, 1, 1]} : vector<2x4x96xf32> to vector<2x4x8xf32>
    %149 = vector.extract_strided_slice %107 {offsets = [0, 0, 80], sizes = [2, 4, 8], strides = [1, 1, 1]} : vector<2x4x96xf32> to vector<2x4x8xf32>
    "tpu.trace_start"() <{level = 10 : i32, message = "bqd,bkd->bqk"}> : () -> ()
    %cst_62 = arith.constant dense<0.000000e+00> : vector<2x4x4xf32>
    %150 = tpu.matmul %147, %148, %cst_62 {dimension_numbers = #tpu.dot_dimension_numbers<[2], [2], [1], [1], [0, 0, 0, 1, 1, 1], [0], [0]>, precision = #tpu.contract_precision<fp32>} : vector<2x4x8xf32>, vector<2x4x8xf32>, vector<2x4x4xf32> -> vector<2x4x4xf32>
    "tpu.trace_stop"() : () -> ()
    %151 = vector.broadcast %108 : vector<2x1x4xf32> to vector<2x4x4xf32>
    %152 = arith.addf %150, %151 : vector<2x4x4xf32>
    %cst_63 = arith.constant dense<0xFF800000> : vector<2x4xf32>
    %153 = vector.multi_reduction <maximumf>, %152, %cst_63 [2] : vector<2x4x4xf32> to vector<2x4xf32>
    %154 = vector.shape_cast %153 : vector<2x4xf32> to vector<2x4x1xf32>
    %155 = vector.broadcast %154 : vector<2x4x1xf32> to vector<2x4x4xf32>
    %156 = arith.subf %152, %155 : vector<2x4x4xf32>
    %157 = math.exp %156 : vector<2x4x4xf32>
    %cst_64 = arith.constant dense<0.000000e+00> : vector<2x4xf32>
    %158 = vector.multi_reduction <add>, %157, %cst_64 [2] : vector<2x4x4xf32> to vector<2x4xf32>
    %159 = vector.shape_cast %158 : vector<2x4xf32> to vector<2x4x1xf32>
    %160 = vector.broadcast %159 : vector<2x4x1xf32> to vector<2x4x4xf32>
    %161 = arith.divf %157, %160 : vector<2x4x4xf32>
    "tpu.trace_start"() <{level = 10 : i32, message = "bqk,bkd->bqd"}> : () -> ()
    %cst_65 = arith.constant dense<0.000000e+00> : vector<2x4x8xf32>
    %162 = tpu.matmul %161, %149, %cst_65 {dimension_numbers = #tpu.dot_dimension_numbers<[2], [1], [1], [2], [0, 0, 0, 1, 1, 2], [0], [0]>, precision = #tpu.contract_precision<fp32>} : vector<2x4x4xf32>, vector<2x4x8xf32>, vector<2x4x8xf32> -> vector<2x4x8xf32>
    "tpu.trace_stop"() : () -> ()
    %163 = vector.extract_strided_slice %107 {offsets = [0, 0, 24], sizes = [2, 4, 8], strides = [1, 1, 1]} : vector<2x4x96xf32> to vector<2x4x8xf32>
    %cst_66 = arith.constant 0.353553385 : f32
    %164 = vector.broadcast %cst_66 : f32 to vector<2x4x8xf32>
    %165 = arith.mulf %163, %164 : vector<2x4x8xf32>
    %166 = vector.extract_strided_slice %107 {offsets = [0, 0, 56], sizes = [2, 4, 8], strides = [1, 1, 1]} : vector<2x4x96xf32> to vector<2x4x8xf32>
    %167 = vector.extract_strided_slice %107 {offsets = [0, 0, 88], sizes = [2, 4, 8], strides = [1, 1, 1]} : vector<2x4x96xf32> to vector<2x4x8xf32>
    "tpu.trace_start"() <{level = 10 : i32, message = "bqd,bkd->bqk"}> : () -> ()
    %cst_67 = arith.constant dense<0.000000e+00> : vector<2x4x4xf32>
    %168 = tpu.matmul %165, %166, %cst_67 {dimension_numbers = #tpu.dot_dimension_numbers<[2], [2], [1], [1], [0, 0, 0, 1, 1, 1], [0], [0]>, precision = #tpu.contract_precision<fp32>} : vector<2x4x8xf32>, vector<2x4x8xf32>, vector<2x4x4xf32> -> vector<2x4x4xf32>
    "tpu.trace_stop"() : () -> ()
    %169 = vector.broadcast %108 : vector<2x1x4xf32> to vector<2x4x4xf32>
    %170 = arith.addf %168, %169 : vector<2x4x4xf32>
    %cst_68 = arith.constant dense<0xFF800000> : vector<2x4xf32>
    %171 = vector.multi_reduction <maximumf>, %170, %cst_68 [2] : vector<2x4x4xf32> to vector<2x4xf32>
    %172 = vector.shape_cast %171 : vector<2x4xf32> to vector<2x4x1xf32>
    %173 = vector.broadcast %172 : vector<2x4x1xf32> to vector<2x4x4xf32>
    %174 = arith.subf %170, %173 : vector<2x4x4xf32>
    %175 = math.exp %174 : vector<2x4x4xf32>
    %cst_69 = arith.constant dense<0.000000e+00> : vector<2x4xf32>
    %176 = vector.multi_reduction <add>, %175, %cst_69 [2] : vector<2x4x4xf32> to vector<2x4xf32>
    %177 = vector.shape_cast %176 : vector<2x4xf32> to vector<2x4x1xf32>
    %178 = vector.broadcast %177 : vector<2x4x1xf32> to vector<2x4x4xf32>
    %179 = arith.divf %175, %178 : vector<2x4x4xf32>
    "tpu.trace_start"() <{level = 10 : i32, message = "bqk,bkd->bqd"}> : () -> ()
    %cst_70 = arith.constant dense<0.000000e+00> : vector<2x4x8xf32>
    %180 = tpu.matmul %179, %167, %cst_70 {dimension_numbers = #tpu.dot_dimension_numbers<[2], [1], [1], [2], [0, 0, 0, 1, 1, 2], [0], [0]>, precision = #tpu.contract_precision<fp32>} : vector<2x4x4xf32>, vector<2x4x8xf32>, vector<2x4x8xf32> -> vector<2x4x8xf32>
    "tpu.trace_stop"() : () -> ()
    %181 = tpu.concatenate %126, %144, %162, %180 in 2 : vector<2x4x8xf32>, vector<2x4x8xf32>, vector<2x4x8xf32>, vector<2x4x8xf32> -> vector<2x4x32xf32>
    %182 = vector.shape_cast %181 : vector<2x4x32xf32> to vector<8x32xf32>
    %c3_71 = arith.constant 3 : index
    %c0_72 = arith.constant 0 : index
    %c0_73 = arith.constant 0 : index
    %183 = vector.load %arg4[%c3_71, %c0_72, %c0_73] : memref<7x64x64xf32, #tpu.memory_space<vmem>>, vector<1x32x32xf32>
    %184 = vector.shape_cast %183 : vector<1x32x32xf32> to vector<32x32xf32>
    %cst_74 = arith.constant dense<0.000000e+00> : vector<8x32xf32>
    %185 = tpu.matmul %182, %184, %cst_74 {dimension_numbers = #tpu.dot_dimension_numbers<[1], [0], [0], [1], [0, 0, 1, 1], [], []>, precision = #tpu.contract_precision<fp32>} : vector<8x32xf32>, vector<32x32xf32>, vector<8x32xf32> -> vector<8x32xf32>
    %c8 = arith.constant 8 : index
    %c0_75 = arith.constant 0 : index
    %186 = vector.load %arg3[%c8, %c0_75] : memref<16x128xf32, #tpu.memory_space<vmem>>, vector<1x32xf32>
    %187 = vector.broadcast %186 : vector<1x32xf32> to vector<8x32xf32>
    %188 = arith.addf %185, %187 : vector<8x32xf32>
    %189 = vector.shape_cast %0 : vector<64x32xf32> to vector<8x8x32xf32>
    %190 = vector.shape_cast %188 : vector<8x32xf32> to vector<8x1x32xf32>
    %191 = vector.broadcast %190 : vector<8x1x32xf32> to vector<8x8x32xf32>
    %192 = arith.addf %189, %191 : vector<8x8x32xf32>
    %193 = vector.shape_cast %192 : vector<8x8x32xf32> to vector<64x32xf32>
    %c9 = arith.constant 9 : index
    %c0_76 = arith.constant 0 : index
    %194 = vector.load %arg3[%c9, %c0_76] : memref<16x128xf32, #tpu.memory_space<vmem>>, vector<1x32xf32>
    %c10 = arith.constant 10 : index
    %c0_77 = arith.constant 0 : index
    %195 = vector.load %arg3[%c10, %c0_77] : memref<16x128xf32, #tpu.memory_space<vmem>>, vector<1x32xf32>
    %cst_78 = arith.constant dense<0.000000e+00> : vector<64xf32>
    %196 = vector.multi_reduction <add>, %193, %cst_78 [1] : vector<64x32xf32> to vector<64xf32>
    %197 = vector.shape_cast %196 : vector<64xf32> to vector<64x1xf32>
    %cst_79 = arith.constant 3.200000e+01 : f32
    %198 = vector.broadcast %cst_79 : f32 to vector<64x1xf32>
    %199 = arith.divf %197, %198 : vector<64x1xf32>
    %200 = vector.broadcast %199 : vector<64x1xf32> to vector<64x32xf32>
    %201 = arith.subf %193, %200 : vector<64x32xf32>
    %202 = arith.mulf %201, %201 : vector<64x32xf32>
    %cst_80 = arith.constant dense<0.000000e+00> : vector<64xf32>
    %203 = vector.multi_reduction <add>, %202, %cst_80 [1] : vector<64x32xf32> to vector<64xf32>
    %204 = vector.shape_cast %203 : vector<64xf32> to vector<64x1xf32>
    %cst_81 = arith.constant 3.200000e+01 : f32
    %205 = vector.broadcast %cst_81 : f32 to vector<64x1xf32>
    %206 = arith.divf %204, %205 : vector<64x1xf32>
    %207 = vector.broadcast %199 : vector<64x1xf32> to vector<64x32xf32>
    %208 = arith.subf %193, %207 : vector<64x32xf32>
    %cst_82 = arith.constant 9.99999997E-7 : f32
    %209 = vector.broadcast %cst_82 : f32 to vector<64x1xf32>
    %210 = arith.addf %206, %209 : vector<64x1xf32>
    %211 = math.rsqrt %210 : vector<64x1xf32>
    %212 = vector.broadcast %211 : vector<64x1xf32> to vector<64x32xf32>
    %213 = arith.mulf %208, %212 : vector<64x32xf32>
    %214 = vector.broadcast %194 : vector<1x32xf32> to vector<64x32xf32>
    %215 = arith.mulf %213, %214 : vector<64x32xf32>
    %216 = vector.broadcast %195 : vector<1x32xf32> to vector<64x32xf32>
    %217 = arith.addf %215, %216 : vector<64x32xf32>
    %c4_83 = arith.constant 4 : index
    %c0_84 = arith.constant 0 : index
    %c0_85 = arith.constant 0 : index
    %218 = vector.load %arg4[%c4_83, %c0_84, %c0_85] : memref<7x64x64xf32, #tpu.memory_space<vmem>>, vector<1x32x64xf32>
    %219 = vector.shape_cast %218 : vector<1x32x64xf32> to vector<32x64xf32>
    %c5_86 = arith.constant 5 : index
    %c0_87 = arith.constant 0 : index
    %c0_88 = arith.constant 0 : index
    %220 = vector.load %arg4[%c5_86, %c0_87, %c0_88] : memref<7x64x64xf32, #tpu.memory_space<vmem>>, vector<1x64x32xf32>
    %221 = vector.shape_cast %220 : vector<1x64x32xf32> to vector<64x32xf32>
    %cst_89 = arith.constant dense<0.000000e+00> : vector<64x64xf32>
    %222 = tpu.matmul %217, %219, %cst_89 {dimension_numbers = #tpu.dot_dimension_numbers<[1], [0], [0], [1], [0, 0, 1, 1], [], []>, precision = #tpu.contract_precision<fp32>} : vector<64x32xf32>, vector<32x64xf32>, vector<64x64xf32> -> vector<64x64xf32>
    %c11 = arith.constant 11 : index
    %c0_90 = arith.constant 0 : index
    %223 = vector.load %arg3[%c11, %c0_90] : memref<16x128xf32, #tpu.memory_space<vmem>>, vector<1x64xf32>
    %224 = vector.broadcast %223 : vector<1x64xf32> to vector<64x64xf32>
    %225 = arith.addf %222, %224 : vector<64x64xf32>
    %cst_91 = arith.constant 0.000000e+00 : f32
    %226 = vector.broadcast %cst_91 : f32 to vector<64x64xf32>
    %227 = arith.maximumf %225, %226 : vector<64x64xf32>
    %cst_92 = arith.constant dense<0.000000e+00> : vector<64x32xf32>
    %228 = tpu.matmul %227, %221, %cst_92 {dimension_numbers = #tpu.dot_dimension_numbers<[1], [0], [0], [1], [0, 0, 1, 1], [], []>, precision = #tpu.contract_precision<fp32>} : vector<64x64xf32>, vector<64x32xf32>, vector<64x32xf32> -> vector<64x32xf32>
    %c12 = arith.constant 12 : index
    %c0_93 = arith.constant 0 : index
    %229 = vector.load %arg3[%c12, %c0_93] : memref<16x128xf32, #tpu.memory_space<vmem>>, vector<1x32xf32>
    %230 = vector.broadcast %229 : vector<1x32xf32> to vector<64x32xf32>
    %231 = arith.addf %228, %230 : vector<64x32xf32>
    %232 = arith.addf %231, %193 : vector<64x32xf32>
    %c0_94 = arith.constant 0 : index
    %c0_95 = arith.constant 0 : index
    %233 = vector.load %arg6[%c0_94, %c0_95] : memref<64x32xf32, #tpu.memory_space<vmem>>, vector<64x32xf32>
    tpu.vector_store %arg6[%c0_94, %c0_95], %232 {strides = array<i32>} : memref<64x32xf32, #tpu.memory_space<vmem>>, vector<64x32xf32>,
    return
  }
}

</mosaic_0001>

<bundles_post_ra>
// kernel: tpu_custom_call.1
= control target key start
LH: loop header
LB: loop body
LE: loop exit
PB: predicated region body
PF: predicated region fallthrough
CT: control target
= control target key end

     0   :  { %11 = vsyncpa [#allocation3], 0  ;;  %s16896_s21 = smov [#allocation2]   ;;  %s19086_s0 = inlined_call_operand.vmem [shape: f32[64,32], index: 0, kind: input, shape index: {}]   ;;  %s19087_s1 = inlined_call_operand.vmem [shape: f32[64,1], index: 1, kind: input, shape index: {}]   ;;  %s19088_s2 = inlined_call_operand.vmem [shape: f32[2,1,4], index: 2, kind: input, shape index: {}]   ;;  %s19089_s3 = inlined_call_operand.vmem [shape: f32[16,128], index: 3, kind: input, shape index: {}]   ;;  %s19090_s4 = inlined_call_operand.hbm [shape: f32[7,64,64], index: 4, kind: input, shape index: {}]   ;;  %s19091_s5 = inlined_call_operand.vmem [shape: f32[32,96], index: 5, kind: input, shape index: {}]   ;;  %s19092_s6 = inlined_call_operand.vmem [shape: f32[64,32], index: 6, kind: output, shape index: {}]  }
   0x1   :  { %s25_s22 = sshll.u32 %s16896_s21, 4  ;;  %s16872_s25 = scalar_lea.hbm %s19090_s4, 7168  ;;  %s26_s22 = int_to_ptr.vmem [resolvable:$true] %s25_s22 }
   0x2   :  { %p16873_p0 = scmp.ne.s32.totalorder %s19090_s4, %s16872_s25  ;;  %p16876_p1 = scmp.lt.u32.totalorder %s16872_s25, %s19090_s4 }
   0x4   :  { %p16878_p2 = pnand %p16876_p1, %p16873_p0 }
   0x6   :  { %16881 = shalt.err (!%p16878_p2)
}
   0x7   :  { %s16882_s30 = scalar_lea.vmem %s26_s22, 7168  ;;  %p16887_p4 = scmp.lt.s32.totalorder %s26_s22, %s26_s22 }
   0x8   :  { %p16883_p3 = scmp.ne.s32.totalorder %s26_s22, %s16882_s30  ;;  %p16888_p5 = scmp.lt.s32.totalorder %s16882_s30, %s16882_s30 }
   0xa   :  { %p16889_p6 = por %p16888_p5, %p16887_p4 }
   0xc   :  { %p16890_p7 = pnand %p16889_p6, %p16883_p3 }
   0xe   :  { %16893 = shalt.err (!%p16890_p7)
}
   0xf   :  { %s16897_s7 = smov 128   ;;  %s16898_s8 = smov 8  }
  0x10   :  { %31 = dma.hbm_to_vmem [thread:$0]  %s19090_s4, 7168, %s26_s22, [#allocation3], %s16897_s7, %s16897_s7, %s16898_s8  }
  0x11   :  { %16894 = dma.done.wait [#allocation3], 7168  }
  0x12   :  { %16895 = vsyncadd [#allocation3], 4294960128  ;;  %vm55_vm0 = vcmask 261120   ;;  %v37_v0 = vld [vmem:[%s19086_s0] sm:$0xff]  ;;  %v39_v1 = vld [vmem:[%s19086_s0 + $0x10] sm:$0xff]  ;;  %v16899_v16 = vmov 0  }
  0x13   :  { %v38_v2 = vld [vmem:[%s19086_s0 + $0x8] sm:$0xff]  ;;  %v56_v3 = vsel %vm55_vm0, %v37_v0, 0.0  ;;  %v62_v4 = vsel %vm55_vm0, %v39_v1, 0.0  ;;  %v40_v5 = vld [vmem:[%s19086_s0 + $0x18] sm:$0xff]  ;;  %v41_v8 = vld [vmem:[%s19086_s0 + $0x20] sm:$0xff]  ;;  %16747 = vset.pattern.permute.xlu1 %v16899_v16  ;;  %16746 = vset.pattern.permute.xlu0 %v16899_v16  ;;  %vm2962_vm1 = vcmask 7168  }
  0x14   :  { %57 = vadd.xlane.f32.xlu0 %v56_v3  ;;  %63 = vadd.xlane.f32.xlu1 %v62_v4  ;;  %v59_v6 = vsel %vm55_vm0, %v38_v2, 0.0  ;;  %v65_v7 = vsel %vm55_vm0, %v40_v5, 0.0  ;;  %v42_v9 = vld [vmem:[%s19086_s0 + $0x28] sm:$0xff]  ;;  %v68_v10 = vsel %vm55_vm0, %v41_v8, 0.0  ;;  %v43_v12 = vld [vmem:[%s19086_s0 + $0x30] sm:$0xff]  ;;  %v44_v13 = vld [vmem:[%s19086_s0 + $0x38] sm:$0xff] }
  0x15   :  { %v71_v11 = vsel %vm55_vm0, %v42_v9, 0.0  ;;  %v74_v14 = vsel %vm55_vm0, %v43_v12, 0.0  ;;  %v77_v15 = vsel %vm55_vm0, %v44_v13, 0.0  ;;  %v46_v57 = vld [vmem:[%s19087_s1 + $0x8] sm:$0xff]  ;;  %v17044_v60 = vld [vmem:[%s19087_s1 + $0x10] sm:$0xff]  ;;  %v17051_v62 = vld [vmem:[%s19087_s1] sm:$0xff] }
  0x16   :  { %v2970_v58 = vsel %vm2962_vm1, %v46_v57, 0.0  ;;  %v2977_v61 = vsel %vm2962_vm1, %v17044_v60, 0.0  ;;  %v13994_v4 = vadd.f32 -1.0, %v17051_v62  ;;  %vm3101_vm2 = vcmask 1041409   ;;  %s16903_s4 = smov 96   ;;  %s16904_s20 = smov 64  }
  0x17   :  { %v2971_v59 = vrot.slane %v2970_v58, 4  ;;  %v2978_v63 = vrot.slane %v2977_v61, 4  ;;  %vm3103_vm3 = vcmask 1042434   ;;  %vm3105_vm4 = vcmask 1043459   ;;  %s16905_s21 = smov 120   ;;  %s16906_s22 = smov 88  }
  0x18   :  { %60 = vadd.xlane.f32.xlu0 %v59_v6  ;;  %66 = vadd.xlane.f32.xlu1 %v65_v7  ;;  %v17064_v6 = vld [vmem:[%s19087_s1 + $0x28] sm:$0xff]  ;;  %vm3107_vm5 = vcmask 1044484   ;;  %vm3109_vm6 = vcmask 1045509   ;;  %vm3111_vm7 = vcmask 1046534   ;;  %vm3113_vm8 = vcmask 1047559   ;;  %s16907_s23 = smov 56  }
  0x19   :  { %vm2043_vm9 = vcmask 1043456   ;;  %vm1864_vm10 = vcmask 31744   ;;  %vm16901_vm11 = vmmov 0   ;;  %vm4162_vm12 = vcmask 64512   ;;  %s16908_s24 = smov 112   ;;  %s16909_s25 = smov 80  }
  0x1a   :  { %vm5067_vm13 = vcmask 27648   ;;  %s16910_s26 = smov 48   ;;  %s16911_s27 = smov 104   ;;  %vm11530_vm14 = vcmask 130048   ;;  %vm11533_vm15 = vcmask 195584  }
  0x1b   :  { %s16912_s28 = smov 72   ;;  %s16914_s10 = smov 16  }
  0x1c   :  { %69 = vadd.xlane.f32.xlu0 %v68_v10  ;;  %72 = vadd.xlane.f32.xlu1 %v71_v11  ;;  %v13996_v10 = vadd.f32 -1.0, %v17044_v60  ;;  %v1808_v11 = vmul.f32 1e+18, %v13994_v4 }
  0x20   :  { %75 = vadd.xlane.f32.xlu0 %v74_v14  ;;  %78 = vadd.xlane.f32.xlu1 %v77_v15  ;;  %v17074_v14 = vld [vmem:[%s19087_s1 + $0x20] sm:$0xff]  ;;  %v2998_v15 = vsel %vm2962_vm1, %v17064_v6, 0.0 }
  0xa1   :  { %v58_v17 = vpop.xlane.xlu0 %57  ;;  %v64_v18 = vpop.xlane.xlu1 %63 }
  0xa2   :  { %v81_v19 = vmul.f32 0.03125, %v58_v17  ;;  %v83_v20 = vmul.f32 0.03125, %v64_v18 }
  0xa4   :  { %v16997_v21 = vsub.f32 %v37_v0, %v81_v19  ;;  %v16999_v22 = vsub.f32 %v39_v1, %v83_v20  ;;  %v17056_v0 = vld [vmem:[%s19087_s1 + $0x18] sm:$0xff]  ;;  %v2972_v1 = vadd.f32 %v2971_v59, %v2970_v58 }
  0xa5   :  { %v61_v23 = vpop.xlane.xlu0 %60  ;;  %v67_v24 = vpop.xlane.xlu1 %66  ;;  %v2984_v3 = vsel %vm2962_vm1, %v17056_v0, 0.0  ;;  %v13997_v18 = vadd.f32 -1.0, %v17056_v0 }
  0xa6   :  { %v82_v25 = vmul.f32 0.03125, %v61_v23  ;;  %v84_v26 = vmul.f32 0.03125, %v67_v24  ;;  %v97_v27 = vmul.f32 %v16997_v21, %v16997_v21  ;;  %v99_v28 = vmul.f32 %v16999_v22, %v16999_v22 }
  0xa7   :  { %v2973_v7 = vrot.slane %v2972_v1, 2  ;;  %v1810_v24 = vmul.f32 1e+18, %v13996_v10  ;;  %v17146_v10 = vld [vmem:[#allocation2 + $0x10] sm:$0xff] }
  0xa8   :  { %v17005_v29 = vsub.f32 %v38_v2, %v82_v25  ;;  %v17007_v30 = vsub.f32 %v40_v5, %v84_v26  ;;  %v105_v31 = vsel %vm55_vm0, %v97_v27, 0.0  ;;  %v111_v34 = vsel %vm55_vm0, %v99_v28, 0.0 }
  0xa9   :  { %106 = vadd.xlane.f32.xlu0 %v105_v31  ;;  %v70_v32 = vpop.xlane.xlu0 %69  ;;  %v73_v33 = vpop.xlane.xlu1 %72  ;;  %v13995_v2 = vadd.f32 -1.0, %v46_v57  ;;  %v2985_v5 = vrot.slane %v2984_v3, 4  ;;  %v2974_v19 = vadd.f32 %v2973_v7, %v2972_v1  ;;  %v13998_v27 = vadd.f32 -1.0, %v17074_v14  ;;  %v17095_v31 = vld [vmem:[%s19087_s1 + $0x38] sm:$0xff] }
  0xaa   :  { %v85_v35 = vmul.f32 0.03125, %v70_v32  ;;  %v86_v36 = vmul.f32 0.03125, %v73_v33  ;;  %v98_v37 = vmul.f32 %v17005_v29, %v17005_v29  ;;  %v100_v38 = vmul.f32 %v17007_v30, %v17007_v30 }
  0xab   :  { %v2986_v23 = vadd.f32 %v2985_v5, %v2984_v3  ;;  %v2999_v28 = vrot.slane %v2998_v15, 4  ;;  %v3012_v32 = vsel %vm2962_vm1, %v17095_v31, 0.0 }
  0xac   :  { %v17015_v39 = vsub.f32 %v41_v8, %v85_v35  ;;  %v17017_v40 = vsub.f32 %v42_v9, %v86_v36  ;;  %v108_v41 = vsel %vm55_vm0, %v98_v37, 0.0  ;;  %v114_v44 = vsel %vm55_vm0, %v100_v38, 0.0 }
  0xad   :  { %112 = vadd.xlane.f32.xlu0 %v111_v34  ;;  %109 = vadd.xlane.f32.xlu1 %v108_v41  ;;  %v76_v42 = vpop.xlane.xlu0 %75  ;;  %v79_v43 = vpop.xlane.xlu1 %78  ;;  %v2979_v8 = vadd.f32 %v2978_v63, %v2977_v61  ;;  %v1809_v9 = vmul.f32 1e+18, %v13995_v2  ;;  %v1811_v35 = vmul.f32 1e+18, %v13997_v18  ;;  %v2975_v36 = vrot.slane %v2974_v19, 1  ;;  %v17101_v41 = vld [vmem:[#allocation2 + $0x50] sm:$0xff] }
  0xae   :  { %v87_v45 = vmul.f32 0.03125, %v76_v42  ;;  %v88_v46 = vmul.f32 0.03125, %v79_v43  ;;  %v101_v47 = vmul.f32 %v17015_v39, %v17015_v39  ;;  %v102_v48 = vmul.f32 %v17017_v40, %v17017_v40  ;;  %v17103_v42 = vld [vmem:[#allocation2 + $0x58] sm:$0xff] }
  0xaf   :  { %v2980_v20 = vrot.slane %v2979_v8, 2  ;;  %v2987_v38 = vrot.slane %v2986_v23, 2  ;;  %v13999_v61 = vadd.f32 -1.0, %v17064_v6  ;;  %v2976_v63 = vadd.f32 %v2975_v36, %v2974_v19 }
  0xb0   :  { %v17025_v49 = vsub.f32 %v43_v12, %v87_v45  ;;  %v17027_v50 = vsub.f32 %v44_v13, %v88_v46  ;;  %v117_v51 = vsel %vm55_vm0, %v101_v47, 0.0  ;;  %v120_v52 = vsel %vm55_vm0, %v102_v48, 0.0  ;;  %v17067_v12 = vld [vmem:[#allocation2 + $0x40] sm:$0xff]  ;;  %v17069_v13 = vld [vmem:[#allocation2 + $0x48] sm:$0xff] }
  0xb1   :  { %115 = vadd.xlane.f32.xlu1 %v114_v44  ;;  %118 = vadd.xlane.f32.xlu0 %v117_v51  ;;  %v1015_v16 = vand.u32 4294901760, %v17067_v12  ;;  %v1018_v17 = vand.u32 4294901760, %v17069_v13  ;;  %v2981_v37 = vadd.f32 %v2980_v20, %v2979_v8  ;;  %v1021_v45 = vand.u32 4294901760, %v17101_v41  ;;  %v17144_v8 = vld [vmem:[%s19087_s1 + $0x30] sm:$0xff] }
  0xb2   :  { %v103_v53 = vmul.f32 %v17025_v49, %v17025_v49  ;;  %v104_v54 = vmul.f32 %v17027_v50, %v17027_v50  ;;  %v1024_v46 = vand.u32 4294901760, %v17103_v42  ;;  %v2963_v47 = vsel %vm2962_vm1, %v17051_v62, 0.0 }
  0xb3   :  { %v17084_v25 = vsub.f32 %v17067_v12, %v1015_v16  ;;  %v17089_v26 = vsub.f32 %v17069_v13, %v1018_v17  ;;  %v1812_v48 = vmul.f32 1e+18, %v13998_v27  ;;  %v3000_v51 = vadd.f32 %v2999_v28, %v2998_v15 }
  0xb4   :  { %v123_v55 = vsel %vm55_vm0, %v103_v53, 0.0  ;;  %v126_v56 = vsel %vm55_vm0, %v104_v54, 0.0  ;;  %v17115_v53 = vld [vmem:[#allocation2] sm:$0xff]  ;;  %v17117_v54 = vld [vmem:[#allocation2 + $0x8] sm:$0xff]  ;;  %v17130_v1 = vsub.f32 %v17103_v42, %v1024_v46  ;;  %v2982_v2 = vrot.slane %v2981_v37, 1 }
  0xb5   :  { %121 = vadd.xlane.f32.xlu1 %v120_v52  ;;  %124 = vadd.xlane.f32.xlu0 %v123_v55  ;;  %v1166_v33 = vand.u32 4294901760, %v17084_v25  ;;  %v1173_v34 = vand.u32 4294901760, %v17089_v26  ;;  %v3013_v52 = vrot.slane %v3012_v32, 4  ;;  %v224_v55 = vand.u32 4294901760, %v17115_v53 }
  0xb6   :  { %v2988_v3 = vadd.f32 %v2987_v38, %v2986_v23  ;;  %v3001_v7 = vrot.slane %v3000_v51, 2  ;;  %v19093_v18 = vand.u32 4294901760, %v17130_v1  ;;  %v2964_v19 = vrot.slane %v2963_v47, 4 }
  0xb7   :  { %v1167_v43 = vsub.f32 %v17084_v25, %v1166_v33  ;;  %v1174_v44 = vsub.f32 %v17089_v26, %v1173_v34  ;;  %v1813_v23 = vmul.f32 1e+18, %v13999_v61 }
  0xb8   :  { %v1188_v28 = vsub.f32 %v17130_v1, %v19093_v18  ;;  %v2989_v36 = vrot.slane %v2988_v3, 1 }
  0xb9   :  { %127 = vadd.xlane.f32.xlu1 %v126_v56  ;;  %v227_v56 = vand.u32 4294901760, %v17117_v54  ;;  %v1168_v58 = vand.u32 4294901760, %v1167_v43  ;;  %v1175_v59 = vand.u32 4294901760, %v1174_v44  ;;  %v3002_v43 = vadd.f32 %v3001_v7, %v3000_v51 }
  0xbb   :  { %v17136_v4 = vpack.c.bf16 %v227_v56, %v224_v55  ;;  %v17138_v5 = vpack.c.bf16 %v1175_v59, %v1168_v58  ;;  %v1189_v58 = vand.u32 4294901760, %v1188_v28  ;;  %v2965_v59 = vadd.f32 %v2964_v19, %v2963_v47 }
  0xbc   :  { %v3003_v18 = vrot.slane %v3002_v43, 1  ;;  %v2991_v47 = vsel %vm2962_vm1, %v17074_v14, 0.0  ;;  %v17179_v19 = vpack.c.bf16 %v17089_v26, %v17084_v25  ;;  %v3005_v28 = vsel %vm2962_vm1, %v17144_v8, 0.0 }
  0xbd   :  { %15952 = vmatprep.subr.bf16.mxu0 %v17136_v4  ;;  %16299 = vmatprep.subr.bf16.mxu1 %v17138_v5  ;;  %v2966_v51 = vrot.slane %v2965_v59, 2  ;;  %vm13106_vm1 = vcmask 523264  }
  0xbe   :  { %15954 = vmatpush3.bf16.msra.mxu0 %v17136_v4  ;;  %16301 = vmatpush3.bf16.msra.mxu1 %v17138_v5 }
  0xca   :  { %1823 = vperm.xlu1 %16747, %v1809_v9   ;;  %v3014_v9 = vadd.f32 %v3013_v52, %v3012_v32  ;;  %v14000_v32 = vadd.f32 -1.0, %v17144_v8 }
  0xcb   :  { %1818 = vperm.xlu0 %16746, %v1808_v11   ;;  %v17148_v11 = vld [vmem:[#allocation2 + $0x18] sm:$0xff] }
  0xcc   :  { %v233_v20 = vand.u32 4294901760, %v17148_v11  ;;  %v3015_v44 = vrot.slane %v3014_v9, 2 }
  0xce   :  { %1828 = vperm.xlu1 %16747, %v1810_v24   ;;  %v3020_v24 = vadd.f32 1e-09, %v2976_v63 }
  0xcf   :  { %2865 = vperm.xlu0 %16746, %v46_v57   ;;  %v17125_v57 = vsub.f32 %v17101_v41, %v1021_v45 }
  0xd1   :  { %v1180_v15 = vand.u32 4294901760, %v17125_v57 }
  0xd2   :  { %1833 = vperm.xlu1 %16747, %v1811_v35   ;;  %v2983_v35 = vadd.f32 %v2982_v2, %v2981_v37  ;;  %v14001_v37 = vadd.f32 -1.0, %v17095_v31  ;;  %v2990_v2 = vadd.f32 %v2989_v36, %v2988_v3 }
  0xd3   :  { %2875 = vperm.xlu0 %16746, %v17056_v0   ;;  %v230_v0 = vand.u32 4294901760, %v17146_v10  ;;  %v1181_v27 = vsub.f32 %v17125_v57, %v1180_v15 }
  0xd4   :  { %v3021_v63 = vadd.f32 1e-09, %v2983_v35  ;;  %v1815_v7 = vmul.f32 1e+18, %v14001_v37  ;;  %v381_v35 = vsub.f32 %v17117_v54, %v227_v56  ;;  %v395_v56 = vsub.f32 %v17148_v11, %v233_v20 }
  0xd5   :  { %v17165_v38 = vpack.c.bf16 %v233_v20, %v230_v0  ;;  %v1182_v52 = vand.u32 4294901760, %v1181_v27  ;;  %v2967_v27 = vadd.f32 %v2966_v51, %v2965_v59 }
  0xd6   :  { %1838 = vperm.xlu1 %16747, %v1812_v48   ;;  %v1814_v48 = vmul.f32 1e+18, %v14000_v32  ;;  %v374_v32 = vsub.f32 %v17115_v53, %v224_v55  ;;  %v388_v55 = vsub.f32 %v17146_v10, %v230_v0 }
  0xd7   :  { %2885 = vperm.xlu0 %16746, %v17064_v6   ;;  %15956 = vmatprep.subr.bf16.mxu0 %v17165_v38  ;;  %v17169_v61 = vpack.c.bf16 %v1189_v58, %v1182_v52  ;;  %v3016_v6 = vadd.f32 %v3015_v44, %v3014_v9  ;;  %v2992_v9 = vrot.slane %v2991_v47, 4  ;;  %v382_v44 = vand.u32 4294901760, %v381_v35 }
  0xd8   :  { %15958 = vmatpush3.bf16.msra.mxu0 %v17165_v38  ;;  %v3006_v52 = vrot.slane %v3005_v28, 4  ;;  %v2968_v58 = vrot.slane %v2967_v27, 1  ;;  %v17220_v13 = vpack.c.bf16 %v395_v56, %v388_v55 }
  0xd9   :  { %16300 = vmatprep.subr.bf16.mxu1 %v17169_v61  ;;  %v3017_v3 = vrot.slane %v3016_v6, 1  ;;  %v2993_v59 = vadd.f32 %v2992_v9, %v2991_v47  ;;  %v383_v53 = vsub.f32 %v381_v35, %v382_v44 }
  0xda   :  { %1843 = vperm.xlu1 %16747, %v1813_v23   ;;  %16302 = vmatpush3.bf16.msra.mxu1 %v17169_v61  ;;  %v3022_v23 = vadd.f32 1e-09, %v2990_v2  ;;  %v2969_v51 = vadd.f32 %v2968_v58, %v2967_v27  ;;  %v3007_v47 = vadd.f32 %v3006_v52, %v3005_v28  ;;  %v17208_v28 = vpack.c.bf16 %v1018_v17, %v1015_v16 }
  0xdb   :  { %3034 = vperm.xlu0 %16746, %v3020_v24   ;;  %v3004_v24 = vadd.f32 %v3003_v18, %v3002_v43  ;;  %16016 = vmatprep.subr.bf16.mxu1 %v17179_v19  ;;  %v3018_v18 = vadd.f32 %v3017_v3, %v3016_v6  ;;  %v375_v43 = vand.u32 4294901760, %v374_v32  ;;  %v384_v2 = vand.u32 4294901760, %v383_v53 }
  0xdc   :  { %v389_v6 = vand.u32 4294901760, %v388_v55  ;;  %v3019_v11 = vadd.f32 1e-09, %v2969_v51  ;;  %v3008_v9 = vrot.slane %v3007_v47, 2  ;;  %v17226_v16 = vpack.c.bf16 %v1173_v34, %v1166_v33 }
  0xdd   :  { %v3024_v36 = vadd.f32 1e-09, %v3004_v24  ;;  %v376_v37 = vsub.f32 %v374_v32, %v375_v43  ;;  %v3026_v54 = vadd.f32 1e-09, %v3018_v18  ;;  %v19098_v17 = vand.u32 4294901760, %v17130_v1 }
  0xde   :  { %1848 = vperm.xlu1 %16747, %v1814_v48   ;;  %v17193_v48 = vpack.c.bf16 %v17130_v1, %v17125_v57  ;;  %v390_v24 = vsub.f32 %v388_v55, %v389_v6  ;;  %v17234_v41 = vpack.c.bf16 %v382_v44, %v375_v43 }
  0xdf   :  { %3039 = vperm.xlu0 %16746, %v3021_v63   ;;  %v377_v63 = vand.u32 4294901760, %v376_v37  ;;  %v17218_v37 = vpack.c.bf16 %v381_v35, %v374_v32 }
  0xe0   :  { %v391_v10 = vand.u32 4294901760, %v390_v24  ;;  %v13991_v24 = vld [vmem:[%s19089_s3 + $0x1] ss:$0 sm:$0xff] }
  0xe2   :  { %1853 = vperm.xlu1 %16747, %v1815_v7   ;;  %v396_v7 = vand.u32 4294901760, %v395_v56 }
  0xe3   :  { %3044 = vperm.xlu0 %16746, %v3022_v23   ;;  %v17198_v23 = vpack.c.bf16 %v384_v2, %v377_v63 }
  0xe4   :  { %v397_v3 = vsub.f32 %v395_v56, %v396_v7  ;;  %v17236_v42 = vpack.c.bf16 %v396_v7, %v389_v6  ;;  %v13990_v6 = vld [vmem:[%s19089_s3] ss:$0 sm:$0xff] }
  0xe5   :  { %15960 = vmatprep.subr.bf16.mxu0 %v17198_v23 }
  0xe6   :  { %2860 = vperm.xlu1 %16747, %v17051_v62   ;;  %v2994_v62 = vrot.slane %v2993_v59, 2  ;;  %v398_v0 = vand.u32 4294901760, %v397_v3 }
  0xe7   :  { %3054 = vperm.xlu0 %16746, %v3024_v36   ;;  %v3009_v36 = vadd.f32 %v3008_v9, %v3007_v47 }
  0xe8   :  { %v2995_v20 = vadd.f32 %v2994_v62, %v2993_v59  ;;  %v17202_v27 = vpack.c.bf16 %v398_v0, %v391_v10 }
  0xe9   :  { %v3010_v52 = vrot.slane %v3009_v36, 1 }
  0xea   :  { %2870 = vperm.xlu1 %16747, %v17044_v60   ;;  %v2996_v60 = vrot.slane %v2995_v20, 1 }
  0xeb   :  { %3064 = vperm.xlu0 %16746, %v3026_v54   ;;  %v3011_v59 = vadd.f32 %v3010_v52, %v3009_v36 }
  0xec   :  { %v2997_v18 = vadd.f32 %v2996_v60, %v2995_v20 }
  0xed   :  { %v3025_v12 = vadd.f32 1e-09, %v3011_v59 }
  0xee   :  { %2880 = vperm.xlu1 %16747, %v17074_v14   ;;  %v17215_v14 = vpack.c.bf16 %v1024_v46, %v1021_v45  ;;  %v3023_v58 = vadd.f32 1e-09, %v2997_v18 }
  0xf2   :  { %3029 = vperm.xlu1 %16747, %v3019_v11  }
  0xf6   :  { %2890 = vperm.xlu1 %16747, %v17144_v8  }
  0xfa   :  { %2895 = vperm.xlu1 %16747, %v17095_v31   ;;  %v17232_v31 = vpack.c.bf16 %v19098_v17, %v1180_v15 }
  0xfe   :  { %3049 = vperm.xlu1 %16747, %v3023_v58  }
 0x102   :  { %3059 = vperm.xlu1 %16747, %v3025_v12  }
 0x136   :  { %v107_v45 = vpop.xlane.xlu0 %106 }
 0x137   :  { %v129_v46 = vmul.f32 0.03125, %v107_v45 }
 0x139   :  { %v137_v8 = vadd.f32 1e-06, %v129_v46 }
 0x13a   :  { %v110_v32 = vpop.xlane.xlu1 %109  ;;  %v113_v35 = vpop.xlane.xlu0 %112 }
 0x13b   :  { %16748 = vrsqrt.f32 %v137_v8  ;;  %v130_v25 = vmul.f32 0.03125, %v110_v32  ;;  %v131_v26 = vmul.f32 0.03125, %v113_v35 }
 0x13d   :  { %v138_v33 = vadd.f32 1e-06, %v130_v25  ;;  %v139_v34 = vadd.f32 1e-06, %v131_v26 }
 0x13e   :  { %v116_v53 = vpop.xlane.xlu1 %115  ;;  %v119_v57 = vpop.xlane.xlu0 %118 }
 0x13f   :  { %16750 = vrsqrt.f32 %v138_v33  ;;  %v132_v1 = vmul.f32 0.03125, %v116_v53  ;;  %v133_v15 = vmul.f32 0.03125, %v119_v57 }
 0x140   :  { %16752 = vrsqrt.f32 %v139_v34 }
 0x141   :  { %v140_v43 = vadd.f32 1e-06, %v132_v1  ;;  %v141_v44 = vadd.f32 1e-06, %v133_v15 }
 0x142   :  { %v122_v55 = vpop.xlane.xlu1 %121  ;;  %v125_v54 = vpop.xlane.xlu0 %124 }
 0x143   :  { %16754 = vrsqrt.f32 %v140_v43  ;;  %v134_v56 = vmul.f32 0.03125, %v122_v55  ;;  %v135_v63 = vmul.f32 0.03125, %v125_v54 }
 0x144   :  { %16756 = vrsqrt.f32 %v141_v44 }
 0x145   :  { %v16749_v2 = vpop.eup %16748  ;;  %v142_v51 = vadd.f32 1e-06, %v134_v56  ;;  %v143_v7 = vadd.f32 1e-06, %v135_v63 }
 0x146   :  { %v153_v62 = vmul.f32 %v16749_v2, %v16997_v21  ;;  %v128_v47 = vpop.xlane.xlu1 %127 }
 0x147   :  { %16758 = vrsqrt.f32 %v142_v51  ;;  %v136_v3 = vmul.f32 0.03125, %v128_v47 }
 0x148   :  { %v165_v10 = vmul.f32 %v13990_v6, %v153_v62  ;;  %16760 = vrsqrt.f32 %v143_v7 }
 0x149   :  { %v16751_v0 = vpop.eup %16750  ;;  %v144_v11 = vadd.f32 1e-06, %v136_v3 }
 0x14a   :  { %v16753_v20 = vpop.eup %16752  ;;  %v17245_v9 = vpop.permute.xlu1 %1823  ;;  %v154_v60 = vmul.f32 %v16751_v0, %v17005_v29  ;;  %v17248_v36 = vadd.f32 %v13991_v24, %v165_v10 }
 0x14b   :  { %19099 = vst [vmem:[#allocation5_spill] sm:$0xff] %v17245_v9  ;;  %v155_v21 = vmul.f32 %v16753_v20, %v16999_v22  ;;  %16762 = vrsqrt.f32 %v144_v11  ;;  %v17251_v18 = vpop.permute.xlu0 %1818 }
 0x14c   :  { %19100 = vst [vmem:[#allocation6_spill] sm:$0xff] %v17251_v18  ;;  %v166_v52 = vmul.f32 %v13990_v6, %v154_v60  ;;  %v200_v58 = vsel %vm55_vm0, %v17248_v36, 0 }
 0x14d   :  { %v16755_v59 = vpop.eup %16754  ;;  %v167_v12 = vmul.f32 %v13990_v6, %v155_v21  ;;  %v17255_v17 = vand.u32 4294901760, %v200_v58 }
 0x14e   :  { %v16757_v45 = vpop.eup %16756  ;;  %v17257_v46 = vpop.permute.xlu1 %1828  ;;  %v17259_v8 = vadd.f32 %v13991_v24, %v166_v52  ;;  %v156_v29 = vmul.f32 %v16755_v59, %v17007_v30 }
 0x14f   :  { %19101 = vst [vmem:[#allocation7_spill] sm:$0xff] %v17257_v46  ;;  %v157_v22 = vmul.f32 %v16757_v45, %v17015_v39  ;;  %v17264_v32 = vsub.f32 %v200_v58, %v17255_v17  ;;  %v2866_v53 = vpop.permute.xlu0 %2865  ;;  %v17273_v1 = vadd.f32 %v13991_v24, %v167_v12 }
 0x150   :  { %v203_v35 = vsel %vm55_vm0, %v17259_v8, 0  ;;  %v168_v25 = vmul.f32 %v13990_v6, %v156_v29 }
 0x151   :  { %v16759_v26 = vpop.eup %16758  ;;  %v169_v33 = vmul.f32 %v13990_v6, %v157_v22  ;;  %v17268_v34 = vand.u32 4294901760, %v203_v35  ;;  %v17271_v57 = vand.u32 4294901760, %v17264_v32 }
 0x152   :  { %v16761_v30 = vpop.eup %16760  ;;  %v17275_v15 = vpop.permute.xlu1 %1833  ;;  %v180_v39 = vadd.f32 %v13991_v24, %v168_v25  ;;  %v158_v43 = vmul.f32 %v16759_v26, %v17017_v40  ;;  %v206_v40 = vsel %vm55_vm0, %v17273_v1, 0 }
 0x153   :  { %19102 = vst [vmem:[#allocation8_spill] sm:$0xff] %v17275_v15  ;;  %v17278_v44 = vadd.f32 %v13991_v24, %v169_v33  ;;  %v159_v55 = vmul.f32 %v16761_v30, %v17025_v49  ;;  %v295_v63 = vsub.f32 %v17264_v32, %v17271_v57  ;;  %v17287_v62 = vsub.f32 %v203_v35, %v17268_v34  ;;  %v2876_v20 = vpop.permute.xlu0 %2875 }
 0x154   :  { %v209_v54 = vsel %vm55_vm0, %v180_v39, 0  ;;  %v170_v56 = vmul.f32 %v13990_v6, %v158_v43  ;;  %v17307_v58 = vand.u32 4294901760, %v206_v40 }
 0x155   :  { %v16763_v2 = vpop.eup %16762  ;;  %v212_v51 = vsel %vm55_vm0, %v17278_v44, 0  ;;  %v171_v7 = vmul.f32 %v13990_v6, %v159_v55  ;;  %v17294_v3 = vand.u32 4294901760, %v209_v54  ;;  %v17304_v52 = vand.u32 4294901760, %v295_v63 }
 0x156   :  { %v17291_v47 = vand.u32 4294901760, %v212_v51  ;;  %v160_v49 = vmul.f32 %v16763_v2, %v17027_v50  ;;  %v17296_v10 = vpop.permute.xlu1 %1838  ;;  %v17298_v0 = vadd.f32 %v13991_v24, %v170_v56  ;;  %v17324_v22 = vand.u32 4294901760, %v17287_v62 }
 0x157   :  { %19103 = vst [vmem:[#allocation9_spill] sm:$0xff] %v17296_v10  ;;  %v17300_v11 = vadd.f32 %v13991_v24, %v171_v7  ;;  %14669 = vmatprep.mubr.f32.mxu0 %v17304_v52  ;;  %v17335_v26 = vsub.f32 %v206_v40, %v17307_v58  ;;  %v17341_v30 = vpop.permute.xlu0 %2885 }
 0x158   :  { %v172_v60 = vmul.f32 %v13990_v6, %v160_v49  ;;  %v215_v21 = vsel %vm55_vm0, %v17298_v0, 0  ;;  %14815 = vmatprep.mubr.f32.mxu1 %v17291_v47  ;;  %v17318_v6 = vsub.f32 %v209_v54, %v17294_v3  ;;  %v17355_v63 = vsub.f32 %v212_v51, %v17291_v47 }
 0x159   :  { %v218_v50 = vsel %vm55_vm0, %v17300_v11, 0  ;;  %v17311_v59 = vand.u32 4294901760, %v215_v21  ;;  %v17347_v55 = vand.u32 4294901760, %v17335_v26  ;;  %v2899_v49 = vmul.f32 %v2866_v53, %v17259_v8 }
 0x15a   :  { %v17313_v12 = vand.u32 4294901760, %v218_v50  ;;  %v17315_v45 = vadd.f32 %v13991_v24, %v172_v60  ;;  %v17321_v29 = vpop.permute.xlu1 %1843  ;;  %v305_v24 = vsub.f32 %v17287_v62, %v17324_v22  ;;  %v17352_v56 = vand.u32 4294901760, %v17318_v6 }
 0x15b   :  { %19104 = vst [vmem:[#allocation10_spill] sm:$0xff] %v17321_v29  ;;  %v17327_v35 = vsub.f32 %v215_v21, %v17311_v59  ;;  %14816 = vmatmul.mubr.f32.vlgmr.msra.gmra.mrb[0].mxu1 %v17311_v59  ;;  %v315_v2 = vsub.f32 %v17335_v26, %v17347_v55  ;;  %v17367_v40 = vand.u32 4294901760, %v17355_v63  ;;  %v2901_v60 = vmul.f32 %v2876_v20, %v180_v39  ;;  %v3035_v8 = vpop.permute.xlu0 %3034 }
 0x15c   :  { %v221_v25 = vsel %vm55_vm0, %v17315_v45, 0  ;;  %14818 = vmatprep.mubr.f32.mxu1 %v17313_v12  ;;  %16018 = vmatpush3.bf16.msra.mxu1 %v17179_v19  ;;  %v17344_v43 = vand.u32 4294901760, %v305_v24  ;;  %v325_v7 = vsub.f32 %v17318_v6, %v17352_v56  ;;  %v17371_v51 = vsub.f32 %v218_v50, %v17313_v12 }
 0x15d   :  { %v17339_v33 = vand.u32 4294901760, %v221_v25  ;;  %16020 = vmatprep.subr.bf16.mxu1 %v17193_v48  ;;  %v17359_v19 = vand.u32 4294901760, %v17327_v35  ;;  %v17378_v24 = vand.u32 4294901760, %v315_v2  ;;  %v2913_v20 = vsel %vm55_vm0, %v2899_v49, 0.0 }
 0x15e   :  { %v17349_v54 = vpop.permute.xlu1 %1848  ;;  %14670 = vmatmul.mubr.f32.vlgmr.msra.gmra.mrb[0].mxu0 %v17344_v43  ;;  %v17387_v50 = vand.u32 4294901760, %v17371_v51  ;;  %v2914_v29 = vrot.slane %v2913_v20, 4  ;;  %16764 = vrcp.f32 %v3035_v8 }
 0x15f   :  { %19105 = vst [vmem:[#allocation11_spill] sm:$0xff] %v17349_v54  ;;  %14819 = vmatmul.mubr.f32.gmra.mrb[2].mxu1 %v17339_v33  ;;  %v345_v21 = vsub.f32 %v17327_v35, %v17359_v19  ;;  %15962 = vmatpush3.bf16.msra.mxu0 %v17198_v23  ;;  %v17380_v54 = vand.u32 4294901760, %v325_v7  ;;  %v17393_v23 = vsub.f32 %v221_v25, %v17339_v33  ;;  %v2927_v25 = vsel %vm55_vm0, %v2901_v60, 0.0 }
 0x160   :  { %16022 = vmatpush3.bf16.msra.mxu1 %v17193_v48  ;;  %14829 = vmatprep.mubr.f32.mxu1 %v17264_v32  ;;  %v335_v48 = vsub.f32 %v17355_v63, %v17367_v40  ;;  %v355_v39 = vsub.f32 %v17371_v51, %v17387_v50  ;;  %v2928_v60 = vrot.slane %v2927_v25, 4  ;;  %v2915_v18 = vadd.f32 %v2914_v29, %v2913_v20 }
 0x161   :  { %19106 = vst [vmem:[#allocation12_spill] sm:$0xff] %v17380_v54  ;;  %15964 = vmatprep.subr.bf16.mxu0 %v17202_v27  ;;  %16024 = vmatprep.subr.bf16.mxu1 %v17208_v28  ;;  %v17403_v2 = vand.u32 4294901760, %v345_v21  ;;  %v17406_v7 = vand.u32 4294901760, %v17393_v23 }
 0x162   :  { %v17384_v10 = vpop.permute.xlu1 %1853  ;;  %14672 = vmatprep.mubr.f32.mxu0 %v17378_v24  ;;  %v17396_v53 = vand.u32 4294901760, %v335_v48  ;;  %v17411_v48 = vand.u32 4294901760, %v355_v39  ;;  %v3040_v39 = vpop.permute.xlu0 %3039  ;;  %v2916_v29 = vrot.slane %v2915_v18, 2 }
 0x163   :  { %19107 = vst [vmem:[#allocation13_spill] sm:$0xff] %v17384_v10  ;;  %14830 = vmatmul.mubr.f32.vlgmr.msra.gmra.mrb[4].mxu1 %v17287_v62  ;;  %14673 = vmatmul.mubr.f32.gmra.mrb[2].mxu0 %v17380_v54  ;;  %19109 = vst [vmem:[#allocation15_spill] sm:$0xff] %v17403_v2  ;;  %v365_v21 = vsub.f32 %v17393_v23, %v17406_v7  ;;  %16766 = vrcp.f32 %v3040_v39 }
 0x164   :  { %19108 = vst [vmem:[#allocation14_spill] sm:$0xff] %v17396_v53  ;;  %14832 = vmatprep.mubr.f32.mxu1 %v17335_v26  ;;  %16026 = vmatpush3.bf16.msra.mxu1 %v17208_v28  ;;  %19110 = vst [vmem:[#allocation16_spill] sm:$0xff] %v17411_v48  ;;  %v2917_v8 = vadd.f32 %v2916_v29, %v2915_v18 }
 0x165   :  { %14675 = vmatprep.mubr.f32.mxu0 %v17396_v53  ;;  %15966 = vmatpush3.bf16.msra.mxu0 %v17202_v27  ;;  %v17423_v46 = vand.u32 4294901760, %v365_v21  ;;  %v2903_v21 = vmul.f32 %v17341_v30, %v17298_v0 }
 0x166   :  { %v2861_v10 = vpop.permute.xlu1 %2860  ;;  %16028 = vmatprep.subr.bf16.mxu1 %v17215_v14  ;;  %15968 = vmatprep.subr.bf16.mxu0 %v17218_v37  ;;  %v3045_v54 = vpop.permute.xlu0 %3044  ;;  %v2918_v18 = vrot.slane %v2917_v8, 1 }
 0x167   :  { %v2898_v49 = vmul.f32 %v2861_v10, %v17248_v36  ;;  %14833 = vmatmul.mubr.f32.gmra.mrb[6].mxu1 %v17318_v6  ;;  %14676 = vmatmul.mubr.f32.gmra.mrb[4].mxu0 %v17403_v2  ;;  %v2929_v2 = vadd.f32 %v2928_v60, %v2927_v25  ;;  %v2941_v0 = vsel %vm55_vm0, %v2903_v21, 0.0  ;;  %16768 = vrcp.f32 %v3045_v54 }
 0x168   :  { %14835 = vmatprep.mubr.f32.mxu1 %v17355_v63  ;;  %16030 = vmatpush3.bf16.msra.mxu1 %v17215_v14 }
 0x169   :  { %v2906_v27 = vsel %vm55_vm0, %v2898_v49, 0.0  ;;  %14678 = vmatprep.mubr.f32.mxu0 %v17411_v48  ;;  %16032 = vmatprep.subr.bf16.mxu1 %v17226_v16  ;;  %v2930_v60 = vrot.slane %v2929_v2, 2 }
 0x16a   :  { %v2907_v36 = vrot.slane %v2906_v27, 4  ;;  %v2871_v10 = vpop.permute.xlu1 %2870 }
 0x16b   :  { %v2900_v15 = vmul.f32 %v2871_v10, %v17273_v1  ;;  %14836 = vmatmul.mubr.f32.gmra.mrb[0].mxu1 %v17327_v35  ;;  %14679 = vmatmul.mubr.f32.gmra.mrb[6].mxu0 %v17423_v46  ;;  %v2931_v54 = vadd.f32 %v2930_v60, %v2929_v2 }
 0x16c   :  { %v2908_v9 = vadd.f32 %v2907_v36, %v2906_v27  ;;  %14838 = vmatprep.mubr.f32.mxu1 %v17371_v51  ;;  %14689 = vmatprep.mubr.f32.mxu0 %v17255_v17  ;;  %v2942_v27 = vrot.slane %v2941_v0, 4 }
 0x16d   :  { %v2920_v49 = vsel %vm55_vm0, %v2900_v15, 0.0  ;;  %v2932_v10 = vrot.slane %v2931_v54, 1 }
 0x16e   :  { %v2921_v48 = vrot.slane %v2920_v49, 4  ;;  %v2881_v53 = vpop.permute.xlu1 %2880  ;;  %v2909_v20 = vrot.slane %v2908_v9, 2 }
 0x16f   :  { %v2902_v1 = vmul.f32 %v2881_v53, %v17278_v44  ;;  %14839 = vmatmul.mubr.f32.gmra.mrb[2].mxu1 %v17393_v23  ;;  %14690 = vmatmul.mubr.f32.vlgmr.msra.gmra.mrb[0].mxu0 %v17268_v34 }
 0x170   :  { %v2922_v25 = vadd.f32 %v2921_v48, %v2920_v49  ;;  %14849 = vmatprep.mubr.f32.mxu1 %v17271_v57  ;;  %14692 = vmatprep.mubr.f32.mxu0 %v17307_v58  ;;  %v2910_v53 = vadd.f32 %v2909_v20, %v2908_v9  ;;  %v2943_v49 = vadd.f32 %v2942_v27, %v2941_v0  ;;  %v3055_v20 = vpop.permute.xlu0 %3054 }
 0x171   :  { %v2934_v15 = vsel %vm55_vm0, %v2902_v1, 0.0  ;;  %15970 = vmatpush3.bf16.msra.mxu0 %v17218_v37  ;;  %v2933_v27 = vadd.f32 %v2932_v10, %v2931_v54 }
 0x172   :  { %v2923_v30 = vrot.slane %v2922_v25, 2  ;;  %v3030_v44 = vpop.permute.xlu1 %3029  ;;  %15972 = vmatprep.subr.bf16.mxu0 %v17220_v13  ;;  %v2935_v39 = vrot.slane %v2934_v15, 4 }
 0x173   :  { %16770 = vrcp.f32 %v3030_v44  ;;  %14850 = vmatmul.mubr.f32.vlgmr.msra.gmra.mrb[4].mxu1 %v17324_v22  ;;  %14693 = vmatmul.mubr.f32.gmra.mrb[2].mxu0 %v17294_v3 }
 0x174   :  { %v2924_v48 = vadd.f32 %v2923_v30, %v2922_v25  ;;  %14852 = vmatprep.mubr.f32.mxu1 %v17347_v55  ;;  %16034 = vmatpush3.bf16.msra.mxu1 %v17226_v16  ;;  %v2911_v16 = vrot.slane %v2910_v53, 1  ;;  %v2936_v2 = vadd.f32 %v2935_v39, %v2934_v15  ;;  %v2919_v15 = vadd.f32 %v2918_v18, %v2917_v8 }
 0x175   :  { %16036 = vmatprep.subr.bf16.mxu1 %v17232_v31  ;;  %14695 = vmatprep.mubr.f32.mxu0 %v17291_v47  ;;  %16772 = vrcp.f32 %v3055_v20 }
 0x176   :  { %v2891_v37 = vpop.permute.xlu1 %2890  ;;  %15974 = vmatpush3.bf16.msra.mxu0 %v17220_v13  ;;  %v2925_v36 = vrot.slane %v2924_v48, 1  ;;  %v2912_v0 = vadd.f32 %v2911_v16, %v2910_v53  ;;  %v2937_v30 = vrot.slane %v2936_v2, 2  ;;  %v3065_v16 = vpop.permute.xlu0 %3064 }
 0x177   :  { %v2904_v9 = vmul.f32 %v2891_v37, %v17300_v11  ;;  %14853 = vmatmul.mubr.f32.gmra.mrb[6].mxu1 %v17352_v56  ;;  %15976 = vmatprep.subr.bf16.mxu0 %v17136_v4  ;;  %v16765_v11 = vpop.eup %16764  ;;  %v2944_v37 = vrot.slane %v2943_v49, 2 }
 0x178   :  { %14855 = vmatprep.mubr.f32.mxu1 %v17367_v40  ;;  %16038 = vmatpush3.bf16.msra.mxu1 %v17232_v31  ;;  %v16767_v29 = vpop.eup %16766  ;;  %v2926_v25 = vadd.f32 %v2925_v36, %v2924_v48  ;;  %v3070_v48 = vmul.f32 %v16765_v11, %v2919_v15  ;;  %v2938_v54 = vadd.f32 %v2937_v30, %v2936_v2 }
 0x179   :  { %14696 = vmatmul.mubr.f32.gmra.mrb[4].mxu0 %v17311_v59  ;;  %v2948_v13 = vsel %vm55_vm0, %v2904_v9, 0.0  ;;  %16040 = vmatprep.subr.bf16.mxu1 %v17208_v28  ;;  %v16769_v31 = vpop.eup %16768 }
 0x17a   :  { %14698 = vmatprep.mubr.f32.mxu0 %v17313_v12  ;;  %v2949_v21 = vrot.slane %v2948_v13, 4  ;;  %v2896_v1 = vpop.permute.xlu1 %2895  ;;  %v3074_v53 = vmul.f32 %v16769_v31, %v2933_v27  ;;  %v3072_v18 = vmul.f32 %v16767_v29, %v2926_v25  ;;  %v2939_v20 = vrot.slane %v2938_v54, 1 }
 0x17b   :  { %v2905_v60 = vmul.f32 %v2896_v1, %v17315_v45  ;;  %14856 = vmatmul.mubr.f32.gmra.mrb[0].mxu1 %v17359_v19 }
 0x17c   :  { %v2950_v44 = vadd.f32 %v2949_v21, %v2948_v13  ;;  %14858 = vmatprep.mubr.f32.mxu1 %v17387_v50  ;;  %v2945_v21 = vadd.f32 %v2944_v37, %v2943_v49  ;;  %v2940_v31 = vadd.f32 %v2939_v20, %v2938_v54 }
 0x17d   :  { %v16771_v39 = vpop.eup %16770  ;;  %14699 = vmatmul.mubr.f32.gmra.mrb[6].mxu0 %v17339_v33  ;;  %v2955_v9 = vsel %vm55_vm0, %v2905_v60, 0.0 }
 0x17e   :  { %v3068_v45 = vmul.f32 %v16771_v39, %v2912_v0  ;;  %14709 = vmatprep.mubr.f32.mxu0 %v17264_v32  ;;  %v2956_v36 = vrot.slane %v2955_v9, 4  ;;  %v3050_v8 = vpop.permute.xlu1 %3049  ;;  %v2951_v10 = vrot.slane %v2950_v44, 2 }
 0x17f   :  { %16774 = vrcp.f32 %v3050_v8  ;;  %14859 = vmatmul.mubr.f32.gmra.mrb[2].mxu1 %v17406_v7  ;;  %v16773_v60 = vpop.eup %16772 }
 0x180   :  { %v2957_v13 = vadd.f32 %v2956_v36, %v2955_v9  ;;  %14869 = vmatprep.mubr.f32.mxu1 %v17255_v17  ;;  %v3610_v11 = vsel %vm3101_vm2, %v3070_v48, %v3068_v45  ;;  %16776 = vrcp.f32 %v3065_v16  ;;  %v2952_v49 = vadd.f32 %v2951_v10, %v2950_v44 }
 0x181   :  { %14710 = vmatmul.mubr.f32.vlgmr.msra.gmra.mrb[0].mxu0 %v17287_v62  ;;  %v3611_v32 = vsel %vm3103_vm3, %v3072_v18, %v3610_v11  ;;  %v2946_v62 = vrot.slane %v2945_v21, 1  ;;  %v19117_v11 = vld [vmem:[#allocation8_spill] sm:$0xff] }
 0x182   :  { %v2958_v1 = vrot.slane %v2957_v13, 2  ;;  %14712 = vmatprep.mubr.f32.mxu0 %v17335_v26  ;;  %v3060_v29 = vpop.permute.xlu1 %3059  ;;  %15978 = vmatpush3.bf16.msra.mxu0 %v17136_v4  ;;  %v3612_v2 = vsel %vm3105_vm4, %v3074_v53, %v3611_v32  ;;  %v2953_v15 = vrot.slane %v2952_v49, 1 }
 0x183   :  { %16778 = vrcp.f32 %v3060_v29  ;;  %14870 = vmatmul.mubr.f32.vlgmr.msra.gmra.mrb[4].mxu1 %v17268_v34  ;;  %15980 = vmatprep.subr.bf16.mxu0 %v17165_v38 }
 0x184   :  { %v2959_v25 = vadd.f32 %v2958_v1, %v2957_v13  ;;  %14872 = vmatprep.mubr.f32.mxu1 %v17307_v58  ;;  %16042 = vmatpush3.bf16.msra.mxu1 %v17208_v28  ;;  %v2954_v27 = vadd.f32 %v2953_v15, %v2952_v49  ;;  %v19118_v1 = vld [vmem:[#allocation7_spill] sm:$0xff] }
 0x185   :  { %14713 = vmatmul.mubr.f32.gmra.mrb[2].mxu0 %v17318_v6  ;;  %16044 = vmatprep.subr.bf16.mxu1 %v17215_v14  ;;  %v2947_v6 = vadd.f32 %v2946_v62, %v2945_v21 }
 0x186   :  { %14715 = vmatprep.mubr.f32.mxu0 %v17355_v63  ;;  %15982 = vmatpush3.bf16.msra.mxu0 %v17165_v38  ;;  %v2960_v26 = vrot.slane %v2959_v25, 1 }
 0x187   :  { %14873 = vmatmul.mubr.f32.gmra.mrb[6].mxu1 %v17294_v3  ;;  %15984 = vmatprep.subr.bf16.mxu0 %v17234_v41  ;;  %v3078_v30 = vmul.f32 %v16773_v60, %v2947_v6 }
 0x188   :  { %14875 = vmatprep.mubr.f32.mxu1 %v17291_v47  ;;  %16046 = vmatpush3.bf16.msra.mxu1 %v17215_v14  ;;  %v2961_v44 = vadd.f32 %v2960_v26, %v2959_v25 }
 0x189   :  { %v16775_v0 = vpop.eup %16774  ;;  %14716 = vmatmul.mubr.f32.gmra.mrb[4].mxu0 %v17327_v35 }
 0x18a   :  { %v3076_v63 = vmul.f32 %v16775_v0, %v2940_v31  ;;  %14718 = vmatprep.mubr.f32.mxu0 %v17371_v51  ;;  %v16777_v39 = vpop.eup %16776 }
 0x18b   :  { %14876 = vmatmul.mubr.f32.gmra.mrb[0].mxu1 %v17311_v59  ;;  %v3082_v48 = vmul.f32 %v16777_v39, %v2961_v44 }
 0x18c   :  { %14878 = vmatprep.mubr.f32.mxu1 %v17313_v12  ;;  %v3613_v37 = vsel %vm3107_vm5, %v3076_v63, %v3612_v2  ;;  %v19119_v63 = vld [vmem:[#allocation10_spill] sm:$0xff] }
 0x18d   :  { %v16779_v9 = vpop.eup %16778  ;;  %14719 = vmatmul.mubr.f32.gmra.mrb[6].mxu0 %v17393_v23  ;;  %v3614_v35 = vsel %vm3109_vm6, %v3078_v30, %v3613_v37 }
 0x18e   :  { %14729 = vmatprep.mubr.f32.mxu0 %v17271_v57  ;;  %v3080_v51 = vmul.f32 %v16779_v9, %v2954_v27  ;;  %v19120_v27 = vld [vmem:[#allocation9_spill] sm:$0xff] }
 0x18f   :  { %14879 = vmatmul.mubr.f32.gmra.mrb[2].mxu1 %v17339_v33 }
 0x190   :  { %14889 = vmatprep.mubr.f32.mxu1 %v17255_v17  ;;  %v3615_v45 = vsel %vm3111_vm7, %v3080_v51, %v3614_v35 }
 0x191   :  { %14730 = vmatmul.mubr.f32.vlgmr.msra.gmra.mrb[0].mxu0 %v17324_v22  ;;  %v17500_v36 = vsel %vm3113_vm8, %v3082_v48, %v3615_v45 }
 0x192   :  { %14732 = vmatprep.mubr.f32.mxu0 %v17347_v55  ;;  %15986 = vmatpush3.bf16.msra.mxu0 %v17234_v41 }
 0x193   :  { %14890 = vmatmul.mubr.f32.vlgmr.msra.gmra.mrb[4].mxu1 %v17268_v34  ;;  %15988 = vmatprep.subr.bf16.mxu0 %v17236_v42 }
 0x194   :  { %14892 = vmatprep.mubr.f32.mxu1 %v17307_v58 }
 0x195   :  { %14733 = vmatmul.mubr.f32.gmra.mrb[2].mxu0 %v17352_v56 }
 0x196   :  { %14735 = vmatprep.mubr.f32.mxu0 %v17367_v40  ;;  %15990 = vmatpush3.bf16.msra.mxu0 %v17236_v42  ;;  %v19115_v40 = vld [vmem:[#allocation5_spill] sm:$0xff] }
 0x197   :  { %14893 = vmatmul.mubr.f32.gmra.mrb[6].mxu1 %v17294_v3  ;;  %15992 = vmatprep.subr.bf16.mxu0 %v17136_v4 }
 0x198   :  { %14895 = vmatprep.mubr.f32.mxu1 %v17291_v47 }
 0x199   :  { %14736 = vmatmul.mubr.f32.gmra.mrb[4].mxu0 %v17359_v19 }
 0x19a   :  { %14738 = vmatprep.mubr.f32.mxu0 %v17387_v50  ;;  %v19116_v50 = vld [vmem:[#allocation6_spill] sm:$0xff] }
 0x19b   :  { %14896 = vmatmul.mubr.f32.gmra.mrb[0].mxu1 %v17311_v59 }
 0x19c   :  { %14898 = vmatprep.mubr.f32.mxu1 %v17313_v12 }
 0x19d   :  { %14739 = vmatmul.mubr.f32.gmra.mrb[6].mxu0 %v17406_v7 }
 0x19e   :  { %14749 = vmatprep.mubr.f32.mxu0 %v17255_v17 }
 0x19f   :  { %14899 = vmatmul.mubr.f32.gmra.mrb[2].mxu1 %v17339_v33 }
 0x1a1   :  { %14750 = vmatmul.mubr.f32.vlgmr.msra.gmra.mrb[0].mxu0 %v17268_v34 }
 0x1a2   :  { %14752 = vmatprep.mubr.f32.mxu0 %v17307_v58  ;;  %15994 = vmatpush3.bf16.msra.mxu0 %v17136_v4  ;;  %v19111_v4 = vld [vmem:[#allocation12_spill] sm:$0xff] }
 0x1a3   :  { %15996 = vmatprep.subr.bf16.mxu0 %v17165_v38 }
 0x1a5   :  { %14753 = vmatmul.mubr.f32.gmra.mrb[2].mxu0 %v17294_v3 }
 0x1a6   :  { %14755 = vmatprep.mubr.f32.mxu0 %v17291_v47  ;;  %15998 = vmatpush3.bf16.msra.mxu0 %v17165_v38  ;;  %v19112_v38 = vld [vmem:[#allocation14_spill] sm:$0xff] }
 0x1a7   :  { %16000 = vmatprep.subr.bf16.mxu0 %v17208_v28 }
 0x1a9   :  { %14756 = vmatmul.mubr.f32.gmra.mrb[4].mxu0 %v17311_v59 }
 0x1aa   :  { %14758 = vmatprep.mubr.f32.mxu0 %v17313_v12 }
 0x1ad   :  { %14759 = vmatmul.mubr.f32.gmra.mrb[6].mxu0 %v17339_v33 }
 0x1ae   :  { %14769 = vmatprep.mubr.f32.mxu0 %v17255_v17 }
 0x1b1   :  { %14770 = vmatmul.mubr.f32.vlgmr.msra.gmra.mrb[0].mxu0 %v17268_v34 }
 0x1b2   :  { %14772 = vmatprep.mubr.f32.mxu0 %v17307_v58  ;;  %16002 = vmatpush3.bf16.msra.mxu0 %v17208_v28  ;;  %v19113_v28 = vld [vmem:[#allocation15_spill] sm:$0xff] }
 0x1b3   :  { %16004 = vmatprep.subr.bf16.mxu0 %v17215_v14 }
 0x1b5   :  { %14773 = vmatmul.mubr.f32.gmra.mrb[2].mxu0 %v17294_v3 }
 0x1b6   :  { %14775 = vmatprep.mubr.f32.mxu0 %v17291_v47  ;;  %16006 = vmatpush3.bf16.msra.mxu0 %v17215_v14  ;;  %v19114_v14 = vld [vmem:[#allocation16_spill] sm:$0xff] }
 0x1b7   :  { %16008 = vmatprep.subr.bf16.mxu0 %v17138_v5 }
 0x1b9   :  { %14776 = vmatmul.mubr.f32.gmra.mrb[4].mxu0 %v17311_v59 }
 0x1ba   :  { %14778 = vmatprep.mubr.f32.mxu0 %v17313_v12 }
 0x1bd   :  { %14779 = vmatmul.mubr.f32.gmra.mrb[6].mxu0 %v17339_v33  ;;  %v13992_v33 = vld [vmem:[%s19089_s3 + $0x2] ss:$0 sm:$0xff] }
 0x1be   :  { %14789 = vmatprep.mubr.f32.mxu0 %v17304_v52 }
 0x1c1   :  { %14790 = vmatmul.mubr.f32.vlgmr.msra.gmra.mrb[8].mxu0 %v17344_v43 }
 0x1c2   :  { %14792 = vmatprep.mubr.f32.mxu0 %v17378_v24  ;;  %16010 = vmatpush3.bf16.msra.mxu0 %v17138_v5  ;;  %v2018_v5 = vld [vmem:[#allocation2 + $0x180] sm:$0xf] }
 0x1c3   :  { %16012 = vmatprep.subr.bf16.mxu0 %v17169_v61  ;;  %v2045_v41 = vsel %vm2043_vm9, %v2018_v5, 0 }
 0x1c4   :  { %v17559_v42 = vand.u32 4294901760, %v2045_v41 }
 0x1c5   :  { %14793 = vmatmul.mubr.f32.gmra.mrb[10].mxu0 %v19111_v4 }
 0x1c6   :  { %14795 = vmatprep.mubr.f32.mxu0 %v19112_v38  ;;  %16014 = vmatpush3.bf16.msra.mxu0 %v17169_v61  ;;  %v17564_v61 = vsub.f32 %v2045_v41, %v17559_v42 }
 0x1c7   :  { %14901 = vmatprep.subr.mxu0 %v17559_v42 }
 0x1c9   :  { %14796 = vmatmul.mubr.f32.gmra.mrb[12].mxu0 %v19113_v28 }
 0x1ca   :  { %14798 = vmatprep.mubr.f32.mxu0 %v19114_v14 }
 0x1cd   :  { %14799 = vmatmul.mubr.f32.gmra.mrb[14].mxu0 %v17423_v46 }
 0x1ce   :  { %14809 = vmatprep.mubr.f32.mxu0 %v17255_v17  ;;  %v17567_v17 = vand.u32 4294901760, %v17564_v61 }
 0x1d0   :  { %v2197_v46 = vsub.f32 %v17564_v61, %v17567_v17 }
 0x1d1   :  { %14810 = vmatmul.mubr.f32.vlgmr.msra.gmra.mrb[8].mxu0 %v17268_v34 }
 0x1d2   :  { %14812 = vmatprep.mubr.f32.mxu0 %v17307_v58  ;;  %14902 = vmatpush3.msra.mxu0 %v17559_v42  ;;  %v17571_v34 = vand.u32 4294901760, %v2197_v46 }
 0x1d4   :  { %14915 = vmatprep.subr.mxu0 %v17571_v34 }
 0x1d5   :  { %14813 = vmatmul.mubr.f32.gmra.mrb[10].mxu0 %v17294_v3 }
 0x266   :  { %v17574_v57 = vpop.f32.mrb[4].mxu1 }
 0x267   :  { %v17576_v47 = vpop.f32.mrb[5].mxu1 }
 0x26a   :  { %v17578_v3 = vpop.f32.mrb[6].mxu1 }
 0x26b   :  { %v17580_v52 = vpop.f32.mrb[7].mxu1 }
 0x26e   :  { %v17582_v58 = vpop.f32.mrb[0].mxu1 }
 0x26f   :  { %v17584_v59 = vpop.f32.mrb[1].mxu1 }
 0x272   :  { %v17586_v12 = vpop.f32.mrb[2].mxu1 }
 0x273   :  { %v17588_v22 = vpop.f32.mrb[3].mxu1 }
 0x284   :  { %v14771_v43 = vpop.f32.mrb[0].mxu0 }
 0x285   :  { %v16303_v55 = vadd.f32 %v14771_v43, %v13992_v33  ;;  %v963_v56 = vpop.f32.mrb[1].mxu0 }
 0x286   :  { %v16304_v19 = vadd.f32 %v13992_v33, %v963_v56 }
 0x287   :  { %v1857_v24 = vadd.f32 %v16303_v55, %v19115_v40  ;;  %v19121_v55 = vld [vmem:[#allocation13_spill] sm:$0xff] }
 0x288   :  { %v1856_v23 = vadd.f32 %v16304_v19, %v19116_v50  ;;  %v14774_v7 = vpop.f32.mrb[2].mxu0 }
 0x289   :  { %v1872_v8 = vsel %vm1864_vm10, %v1857_v24, -inf  ;;  %v16305_v53 = vadd.f32 %v14774_v7, %v13992_v33  ;;  %v975_v18 = vpop.f32.mrb[3].mxu0 }
 0x28a   :  { %v1873_v16 = vrot.slane %v1872_v8, 4  ;;  %v1865_v54 = vsel %vm1864_vm10, %v1856_v23, -inf  ;;  %v16306_v10 = vadd.f32 %v13992_v33, %v975_v18 }
 0x28b   :  { %v1866_v13 = vrot.slane %v1865_v54, 4  ;;  %v17598_v21 = vadd.f32 %v16305_v53, %v19117_v11 }
 0x28c   :  { %v1874_v32 = vmax.f32 %v1872_v8, %v1873_v16  ;;  %v17601_v29 = vadd.f32 %v16306_v10, %v19118_v1  ;;  %v14777_v2 = vpop.f32.mrb[4].mxu0 }
 0x28d   :  { %v1867_v20 = vmax.f32 %v1865_v54, %v1866_v13  ;;  %v1886_v49 = vsel %vm1864_vm10, %v17598_v21, -inf  ;;  %v16307_v25 = vadd.f32 %v14777_v2, %v13992_v33  ;;  %v987_v62 = vpop.f32.mrb[5].mxu0 }
 0x28e   :  { %v1875_v26 = vrot.slane %v1874_v32, 2  ;;  %v1887_v60 = vrot.slane %v1886_v49, 4  ;;  %v1879_v31 = vsel %vm1864_vm10, %v17601_v29, -inf  ;;  %v16308_v15 = vadd.f32 %v13992_v33, %v987_v62 }
 0x28f   :  { %v1868_v0 = vrot.slane %v1867_v20, 2  ;;  %v1880_v6 = vrot.slane %v1879_v31, 4  ;;  %v17608_v30 = vadd.f32 %v16307_v25, %v19119_v63  ;;  %v17631_v63 = vld [vmem:[%s19089_s3 + $0x3] ss:$0 sm:$0xff] }
 0x290   :  { %v1876_v44 = vmax.f32 %v1874_v32, %v1875_v26  ;;  %v1888_v39 = vmax.f32 %v1886_v49, %v1887_v60  ;;  %v17611_v37 = vadd.f32 %v16308_v15, %v19120_v27  ;;  %v14780_v9 = vpop.f32.mrb[6].mxu0 }
 0x291   :  { %v1869_v35 = vmax.f32 %v1867_v20, %v1868_v0  ;;  %v1881_v51 = vmax.f32 %v1879_v31, %v1880_v6  ;;  %v1900_v48 = vsel %vm1864_vm10, %v17608_v30, -inf  ;;  %v16309_v45 = vadd.f32 %v14780_v9, %v13992_v33  ;;  %v999_v4 = vpop.f32.mrb[7].mxu0  ;;  %v19122_v20 = vld [vmem:[#allocation11_spill] sm:$0xff] }
 0x292   :  { %v1877_v38 = vrot.slane %v1876_v44, 1  ;;  %v1889_v28 = vrot.slane %v1888_v39, 2  ;;  %v1901_v14 = vrot.slane %v1900_v48, 4  ;;  %v1893_v5 = vsel %vm1864_vm10, %v17611_v37, -inf }
 0x293   :  { %v1870_v41 = vrot.slane %v1869_v35, 1  ;;  %v1882_v46 = vrot.slane %v1881_v51, 2  ;;  %v1894_v43 = vrot.slane %v1893_v5, 4  ;;  %v17618_v56 = vadd.f32 %v16309_v45, %v19121_v55 }
 0x294   :  { %v1878_v19 = vmax.f32 %v1876_v44, %v1877_v38  ;;  %v1890_v40 = vmax.f32 %v1888_v39, %v1889_v28  ;;  %v1902_v50 = vmax.f32 %v1900_v48, %v1901_v14  ;;  %v16310_v7 = vadd.f32 %v13992_v33, %v999_v4 }
 0x295   :  { %v1871_v8 = vmax.f32 %v1869_v35, %v1870_v41  ;;  %v1883_v53 = vmax.f32 %v1881_v51, %v1882_v46  ;;  %v1895_v18 = vmax.f32 %v1893_v5, %v1894_v43  ;;  %v1914_v16 = vsel %vm1864_vm10, %v17618_v56, -inf }
 0x296   :  { %v1922_v54 = vsub.f32 %v1857_v24, %v1878_v19  ;;  %v1891_v10 = vrot.slane %v1890_v40, 1  ;;  %v1903_v13 = vrot.slane %v1902_v50, 2  ;;  %v1915_v11 = vrot.slane %v1914_v16, 4 }
 0x297   :  { %v1921_v32 = vsub.f32 %v1856_v23, %v1871_v8  ;;  %v1884_v1 = vrot.slane %v1883_v53, 1  ;;  %v1896_v2 = vrot.slane %v1895_v18, 2  ;;  %v17623_v49 = vadd.f32 %v16310_v7, %v19122_v20 }
 0x298   :  { %v1931_v25 = vmul.f32 1.442695, %v1922_v54  ;;  %v1892_v62 = vmax.f32 %v1890_v40, %v1891_v10  ;;  %v1904_v26 = vmax.f32 %v1902_v50, %v1903_v13  ;;  %v1916_v33 = vmax.f32 %v1914_v16, %v1915_v11 }
 0x299   :  { %v1929_v60 = vmul.f32 1.442695, %v1921_v32  ;;  %v1885_v31 = vmax.f32 %v1883_v53, %v1884_v1  ;;  %v1897_v15 = vmax.f32 %v1895_v18, %v1896_v2  ;;  %v1907_v0 = vsel %vm1864_vm10, %v17623_v49, -inf }
 0x29a   :  { %16780 = vpow2.f32 %v1931_v25  ;;  %v1924_v24 = vsub.f32 %v17598_v21, %v1892_v62  ;;  %v1905_v6 = vrot.slane %v1904_v26, 1  ;;  %v1917_v23 = vrot.slane %v1916_v33, 2 }
 0x29b   :  { %16782 = vpow2.f32 %v1929_v60  ;;  %v1923_v44 = vsub.f32 %v17601_v29, %v1885_v31  ;;  %v1898_v39 = vrot.slane %v1897_v15, 1  ;;  %v1908_v27 = vrot.slane %v1907_v0, 4 }
 0x29c   :  { %v1935_v9 = vmul.f32 1.442695, %v1924_v24  ;;  %v1906_v35 = vmax.f32 %v1904_v26, %v1905_v6  ;;  %v1918_v51 = vmax.f32 %v1916_v33, %v1917_v23  ;;  %v14797_v48 = vpop.f32.mrb[12].mxu0 }
 0x29d   :  { %v1933_v45 = vmul.f32 1.442695, %v1923_v44  ;;  %v1899_v4 = vmax.f32 %v1897_v15, %v1898_v39  ;;  %v1909_v38 = vmax.f32 %v1907_v0, %v1908_v27  ;;  %v1140_v21 = vadd.f32 %v14797_v48, %v17631_v63  ;;  %v1129_v28 = vpop.f32.mrb[13].mxu0 }
 0x29e   :  { %16784 = vpow2.f32 %v1935_v9  ;;  %v1926_v14 = vsub.f32 %v17608_v30, %v1906_v35  ;;  %v1919_v5 = vrot.slane %v1918_v51, 1  ;;  %v1130_v41 = vadd.f32 %v17631_v63, %v1129_v28 }
 0x29f   :  { %16786 = vpow2.f32 %v1933_v45  ;;  %v1925_v29 = vsub.f32 %v17611_v37, %v1899_v4  ;;  %v1910_v46 = vrot.slane %v1909_v38, 2  ;;  %v17639_v43 = vadd.f32 %v17582_v58, %v1140_v21 }
 0x2a0   :  { %v1939_v55 = vmul.f32 1.442695, %v1926_v14  ;;  %v1920_v19 = vmax.f32 %v1918_v51, %v1919_v5  ;;  %v14800_v40 = vpop.f32.mrb[14].mxu0  ;;  %v17642_v50 = vadd.f32 %v17584_v59, %v1130_v41 }
 0x2a1   :  { %v1937_v7 = vmul.f32 1.442695, %v1925_v29  ;;  %v1911_v8 = vmax.f32 %v1909_v38, %v1910_v46  ;;  %v1160_v30 = vadd.f32 %v14800_v40, %v17631_v63  ;;  %v1149_v53 = vpop.f32.mrb[15].mxu0 }
 0x2a2   :  { %16788 = vpow2.f32 %v1939_v55  ;;  %v1928_v18 = vsub.f32 %v17618_v56, %v1920_v19  ;;  %v1150_v37 = vadd.f32 %v17631_v63, %v1149_v53 }
 0x2a3   :  { %16790 = vpow2.f32 %v1937_v7  ;;  %v1912_v16 = vrot.slane %v1911_v8, 1  ;;  %v17648_v58 = vadd.f32 %v17586_v12, %v1160_v30 }
 0x2a4   :  { %v17650_v54 = vpop.eup %16780  ;;  %v1943_v10 = vmul.f32 1.442695, %v1928_v18  ;;  %v14811_v59 = vpop.f32.mrb[8].mxu0  ;;  %v17653_v13 = vadd.f32 %v17588_v22, %v1150_v37 }
 0x2a5   :  { %v17655_v11 = vpop.eup %16782  ;;  %v1952_v32 = vsel %vm1864_vm10, %v17650_v54, 0.0  ;;  %v1913_v56 = vmax.f32 %v1911_v8, %v1912_v16  ;;  %v16311_v1 = vadd.f32 %v14811_v59, %v17631_v63  ;;  %v1250_v2 = vpop.f32.mrb[9].mxu0 }
 0x2a6   :  { %v1953_v20 = vrot.slane %v1952_v32, 4  ;;  %v1945_v12 = vsel %vm1864_vm10, %v17655_v11, 0.0  ;;  %16792 = vpow2.f32 %v1943_v10  ;;  %v16313_v25 = vadd.f32 %v17631_v63, %v1250_v2 }
 0x2a7   :  { %v1946_v62 = vrot.slane %v1945_v12, 4  ;;  %v1927_v22 = vsub.f32 %v17623_v49, %v1913_v56  ;;  %v17665_v26 = vadd.f32 %v16311_v1, %v17574_v57 }
 0x2a8   :  { %v17667_v33 = vpop.eup %16784  ;;  %v1954_v60 = vadd.f32 %v1953_v20, %v1952_v32  ;;  %v14814_v31 = vpop.f32.mrb[10].mxu0  ;;  %v17670_v15 = vadd.f32 %v16313_v25, %v17576_v47 }
 0x2a9   :  { %v17672_v0 = vpop.eup %16786  ;;  %v1947_v24 = vadd.f32 %v1946_v62, %v1945_v12  ;;  %v1966_v6 = vsel %vm1864_vm10, %v17667_v33, 0.0  ;;  %v1941_v23 = vmul.f32 1.442695, %v1927_v22  ;;  %v16315_v44 = vadd.f32 %v14814_v31, %v17631_v63  ;;  %v1262_v49 = vpop.f32.mrb[11].mxu0 }
 0x2aa   :  { %v1955_v39 = vrot.slane %v1954_v60, 2  ;;  %v1967_v57 = vrot.slane %v1966_v6, 4  ;;  %v1959_v27 = vsel %vm1864_vm10, %v17672_v0, 0.0  ;;  %v16317_v9 = vadd.f32 %v17631_v63, %v1262_v49 }
 0x2ab   :  { %v1948_v35 = vrot.slane %v1947_v24, 2  ;;  %v1960_v47 = vrot.slane %v1959_v27, 4  ;;  %16794 = vpow2.f32 %v1941_v23  ;;  %v17681_v51 = vadd.f32 %v16315_v44, %v17578_v3 }
 0x2ac   :  { %v17683_v48 = vpop.eup %16788  ;;  %v1956_v45 = vadd.f32 %v1955_v39, %v1954_v60  ;;  %v1968_v4 = vadd.f32 %v1967_v57, %v1966_v6  ;;  %v17686_v38 = vadd.f32 %v16317_v9, %v17580_v52 }
 0x2ad   :  { %v17688_v21 = vpop.eup %16790  ;;  %v1949_v28 = vadd.f32 %v1948_v35, %v1947_v24  ;;  %v1961_v14 = vadd.f32 %v1960_v47, %v1959_v27  ;;  %v1980_v63 = vsel %vm1864_vm10, %v17683_v48, 0.0 }
 0x2ae   :  { %v1957_v5 = vrot.slane %v1956_v45, 1  ;;  %v1969_v41 = vrot.slane %v1968_v4, 2  ;;  %v1981_v29 = vrot.slane %v1980_v63, 4  ;;  %v1973_v3 = vsel %vm1864_vm10, %v17688_v21, 0.0 }
 0x2af   :  { %v1950_v46 = vrot.slane %v1949_v28, 1  ;;  %v1962_v55 = vrot.slane %v1961_v14, 2  ;;  %v1974_v19 = vrot.slane %v1973_v3, 4 }
 0x2b0   :  { %v17694_v40 = vpop.eup %16792  ;;  %v1958_v52 = vadd.f32 %v1957_v5, %v1956_v45  ;;  %v1970_v7 = vadd.f32 %v1969_v41, %v1968_v4  ;;  %v1982_v8 = vadd.f32 %v1981_v29, %v1980_v63 }
 0x2b1   :  { %v1951_v30 = vadd.f32 %v1950_v46, %v1949_v28  ;;  %v1963_v53 = vadd.f32 %v1962_v55, %v1961_v14  ;;  %v1975_v18 = vadd.f32 %v1974_v19, %v1973_v3  ;;  %v1994_v37 = vsel %vm1864_vm10, %v17694_v40, 0.0 }
 0x2b2   :  { %16796 = vrcp.f32 %v1958_v52  ;;  %v1971_v16 = vrot.slane %v1970_v7, 1  ;;  %v1983_v10 = vrot.slane %v1982_v8, 2  ;;  %v1995_v59 = vrot.slane %v1994_v37, 4 }
 0x2b3   :  { %16798 = vrcp.f32 %v1951_v30  ;;  %v1964_v32 = vrot.slane %v1963_v53, 1  ;;  %v1976_v56 = vrot.slane %v1975_v18, 2 }
 0x2b4   :  { %v1972_v1 = vadd.f32 %v1971_v16, %v1970_v7  ;;  %v1984_v2 = vadd.f32 %v1983_v10, %v1982_v8  ;;  %v1996_v20 = vadd.f32 %v1995_v59, %v1994_v37 }
 0x2b5   :  { %v17698_v12 = vpop.eup %16794  ;;  %v1965_v25 = vadd.f32 %v1964_v32, %v1963_v53  ;;  %v1977_v62 = vadd.f32 %v1976_v56, %v1975_v18 }
 0x2b6   :  { %16800 = vrcp.f32 %v1972_v1  ;;  %v1985_v22 = vrot.slane %v1984_v2, 1  ;;  %v1997_v60 = vrot.slane %v1996_v20, 2  ;;  %v1987_v31 = vsel %vm1864_vm10, %v17698_v12, 0.0 }
 0x2b7   :  { %16802 = vrcp.f32 %v1965_v25  ;;  %v1978_v24 = vrot.slane %v1977_v62, 1  ;;  %v1988_v6 = vrot.slane %v1987_v31, 4 }
 0x2b8   :  { %v1986_v23 = vadd.f32 %v1985_v22, %v1984_v2  ;;  %v1998_v44 = vadd.f32 %v1997_v60, %v1996_v20 }
 0x2b9   :  { %v1979_v49 = vadd.f32 %v1978_v24, %v1977_v62  ;;  %v1989_v39 = vadd.f32 %v1988_v6, %v1987_v31 }
 0x2ba   :  { %16804 = vrcp.f32 %v1986_v23  ;;  %v1999_v57 = vrot.slane %v1998_v44, 1 }
 0x2bb   :  { %16806 = vrcp.f32 %v1979_v49  ;;  %v1990_v27 = vrot.slane %v1989_v39, 2 }
 0x2bc   :  { %v16797_v9 = vpop.eup %16796  ;;  %v2000_v35 = vadd.f32 %v1999_v57, %v1998_v44 }
 0x2bd   :  { %v16799_v47 = vpop.eup %16798  ;;  %v2004_v45 = vmul.f32 %v16797_v9, %v17650_v54  ;;  %v1991_v4 = vadd.f32 %v1990_v27, %v1989_v39 }
 0x2be   :  { %16808 = vrcp.f32 %v2000_v35  ;;  %v2002_v28 = vmul.f32 %v16799_v47, %v17655_v11 }
 0x2bf   :  { %v1992_v14 = vrot.slane %v1991_v4, 1  ;;  %v2023_v63 = vsel %vm1864_vm10, %v2004_v45, 0 }
 0x2c0   :  { %v16801_v5 = vpop.eup %16800  ;;  %v2020_v41 = vsel %vm1864_vm10, %v2002_v28, 0  ;;  %v17706_v29 = vand.u32 4294901760, %v2023_v63 }
 0x2c1   :  { %v16803_v3 = vpop.eup %16802  ;;  %v1993_v46 = vadd.f32 %v1992_v14, %v1991_v4  ;;  %v17708_v55 = vand.u32 4294901760, %v2020_v41  ;;  %v2008_v19 = vmul.f32 %v16801_v5, %v17667_v33 }
 0x2c2   :  { %v17712_v54 = vsub.f32 %v2023_v63, %v17706_v29  ;;  %v2006_v52 = vmul.f32 %v16803_v3, %v17672_v0 }
 0x2c3   :  { %16810 = vrcp.f32 %v1993_v46  ;;  %v17716_v11 = vsub.f32 %v2020_v41, %v17708_v55  ;;  %v2029_v7 = vsel %vm1864_vm10, %v2008_v19, 0 }
 0x2c4   :  { %v16805_v8 = vpop.eup %16804  ;;  %v2125_v30 = vand.u32 4294901760, %v17712_v54  ;;  %v2026_v53 = vsel %vm1864_vm10, %v2006_v52, 0  ;;  %v17721_v18 = vand.u32 4294901760, %v2029_v7 }
 0x2c5   :  { %v16807_v37 = vpop.eup %16806  ;;  %v2115_v33 = vand.u32 4294901760, %v17716_v11  ;;  %v17724_v16 = vand.u32 4294901760, %v2026_v53  ;;  %v2012_v0 = vmul.f32 %v16805_v8, %v17683_v48 }
 0x2c6   :  { %v2126_v10 = vsub.f32 %v17712_v54, %v2125_v30  ;;  %v17731_v59 = vsub.f32 %v2029_v7, %v17721_v18  ;;  %v2010_v32 = vmul.f32 %v16807_v37, %v17688_v21 }
 0x2c7   :  { %v2116_v56 = vsub.f32 %v17716_v11, %v2115_v33  ;;  %v17738_v1 = vsub.f32 %v2026_v53, %v17724_v16  ;;  %v2035_v2 = vsel %vm1864_vm10, %v2012_v0, 0  ;;  %v3086_v53 = vld [vmem:[#allocation2 + $0x90] sm:$0xff] }
 0x2c8   :  { %v16809_v20 = vpop.eup %16808  ;;  %v2145_v48 = vand.u32 4294901760, %v17731_v59  ;;  %v2032_v25 = vsel %vm1864_vm10, %v2010_v32, 0  ;;  %v17743_v62 = vand.u32 4294901760, %v2035_v2  ;;  %v2127_v24 = vand.u32 4294901760, %v2126_v10 }
 0x2c9   :  { %v2117_v22 = vand.u32 4294901760, %v2116_v56  ;;  %v2135_v60 = vand.u32 4294901760, %v17738_v1  ;;  %v17746_v21 = vand.u32 4294901760, %v2032_v25  ;;  %v2016_v31 = vmul.f32 %v16809_v20, %v17694_v40 }
 0x2ca   :  { %v2146_v6 = vsub.f32 %v17731_v59, %v2145_v48  ;;  %v2164_v23 = vsub.f32 %v2035_v2, %v17743_v62  ;;  %v3124_v37 = vand.u32 4294901760, %v3086_v53 }
 0x2cb   :  { %14903 = vmatprep.mubr.f32.mxu0 %v2117_v22  ;;  %v2136_v44 = vsub.f32 %v17738_v1, %v2135_v60  ;;  %v2154_v49 = vsub.f32 %v2032_v25, %v17746_v21  ;;  %v2041_v39 = vsel %vm1864_vm10, %v2016_v31, 0 }
 0x2cc   :  { %14904 = vmatmul.mubr.f32.vlgmr.msra.gmra.mrb[16].mxu0 %v2127_v24  ;;  %v2165_v57 = vand.u32 4294901760, %v2164_v23  ;;  %v17756_v27 = vand.u32 4294901760, %v2041_v39  ;;  %v2147_v47 = vand.u32 4294901760, %v2146_v6  ;;  %v17816_v32 = vsub.f32 %v3086_v53, %v3124_v37 }
 0x2cd   :  { %v16811_v9 = vpop.eup %16810  ;;  %v2137_v40 = vand.u32 4294901760, %v2136_v44  ;;  %v2155_v35 = vand.u32 4294901760, %v2154_v49  ;;  %14916 = vmatpush3.msra.mxu0 %v17571_v34 }
 0x2ce   :  { %v2166_v45 = vsub.f32 %v2164_v23, %v2165_v57  ;;  %v2014_v4 = vmul.f32 %v16811_v9, %v17698_v12  ;;  %v2184_v28 = vsub.f32 %v2041_v39, %v17756_v27  ;;  %14929 = vmatprep.subr.mxu0 %v17564_v61  ;;  %v3213_v25 = vand.u32 4294901760, %v17816_v32 }
 0x2cf   :  { %14906 = vmatprep.mubr.f32.mxu0 %v2137_v40  ;;  %v2156_v14 = vsub.f32 %v2154_v49, %v2155_v35 }
 0x2d0   :  { %14907 = vmatmul.mubr.f32.gmra.mrb[18].mxu0 %v2147_v47  ;;  %v2038_v63 = vsel %vm1864_vm10, %v2014_v4, 0  ;;  %v2167_v3 = vand.u32 4294901760, %v2166_v45  ;;  %v2185_v46 = vand.u32 4294901760, %v2184_v28 }
 0x2d1   :  { %v2157_v5 = vand.u32 4294901760, %v2156_v14  ;;  %v2173_v41 = vand.u32 4294901760, %v2038_v63 }
 0x2d2   :  { %v2186_v52 = vsub.f32 %v2184_v28, %v2185_v46 }
 0x2d3   :  { %14909 = vmatprep.mubr.f32.mxu0 %v2157_v5  ;;  %v2174_v19 = vsub.f32 %v2038_v63, %v2173_v41 }
 0x2d4   :  { %14910 = vmatmul.mubr.f32.gmra.mrb[20].mxu0 %v2167_v3  ;;  %v2187_v8 = vand.u32 4294901760, %v2186_v52 }
 0x2d5   :  { %v2175_v34 = vand.u32 4294901760, %v2174_v19 }
 0x2d7   :  { %v2176_v7 = vsub.f32 %v2174_v19, %v2175_v34 }
 0x2d9   :  { %v2177_v12 = vand.u32 4294901760, %v2176_v7 }
 0x2db   :  { %14912 = vmatprep.mubr.f32.mxu0 %v2177_v12 }
 0x2dc   :  { %14913 = vmatmul.mubr.f32.gmra.mrb[22].mxu0 %v2187_v8 }
 0x2dd   :  { %14917 = vmatprep.mubr.f32.mxu0 %v17708_v55 }
 0x2e0   :  { %14918 = vmatmul.mubr.f32.vlgmr.msra.gmra.mrb[16].mxu0 %v17706_v29 }
 0x2e1   :  { %14920 = vmatprep.mubr.f32.mxu0 %v17724_v16  ;;  %14930 = vmatpush3.msra.mxu0 %v17564_v61  ;;  %v3085_v61 = vld [vmem:[#allocation2 + $0x88] sm:$0xff] }
 0x2e2   :  { %14943 = vmatprep.subr.mxu0 %v17559_v42 }
 0x2e4   :  { %14921 = vmatmul.mubr.f32.gmra.mrb[18].mxu0 %v17721_v18 }
 0x2e5   :  { %14923 = vmatprep.mubr.f32.mxu0 %v17746_v21 }
 0x2e8   :  { %14924 = vmatmul.mubr.f32.gmra.mrb[20].mxu0 %v17743_v62 }
 0x2e9   :  { %14926 = vmatprep.mubr.f32.mxu0 %v2173_v41 }
 0x2ec   :  { %14927 = vmatmul.mubr.f32.gmra.mrb[22].mxu0 %v17756_v27 }
 0x2ed   :  { %14931 = vmatprep.mubr.f32.mxu0 %v17716_v11 }
 0x2f0   :  { %14932 = vmatmul.mubr.f32.vlgmr.msra.gmra.mrb[16].mxu0 %v17712_v54  ;;  %v3121_v54 = vand.u32 4294901760, %v3085_v61 }
 0x2f1   :  { %14934 = vmatprep.mubr.f32.mxu0 %v17738_v1  ;;  %14944 = vmatpush3.msra.mxu0 %v17559_v42 }
 0x2f2   :  { %14957 = vmatprep.subr.mxu0 %v17567_v17 }
 0x2f4   :  { %14935 = vmatmul.mubr.f32.gmra.mrb[18].mxu0 %v17731_v59 }
 0x2f5   :  { %14937 = vmatprep.mubr.f32.mxu0 %v2154_v49 }
 0x2f8   :  { %14938 = vmatmul.mubr.f32.gmra.mrb[20].mxu0 %v2164_v23 }
 0x2f9   :  { %14940 = vmatprep.mubr.f32.mxu0 %v2174_v19 }
 0x2fc   :  { %14941 = vmatmul.mubr.f32.gmra.mrb[22].mxu0 %v2184_v28 }
 0x2fd   :  { %14945 = vmatprep.mubr.f32.mxu0 %v2115_v33 }
 0x300   :  { %14946 = vmatmul.mubr.f32.vlgmr.msra.gmra.mrb[16].mxu0 %v2125_v30  ;;  %v16900_v30 = vmov 0.0|0.0  }
 0x301   :  { %14948 = vmatprep.mubr.f32.mxu0 %v2135_v60  ;;  %14958 = vmatpush3.msra.mxu0 %v17567_v17  ;;  %v3214_v60 = vsub.f32 %v17816_v32, %v3213_v25 }
 0x302   :  { %14971 = vmatprep.subr.mxu0 %v17559_v42  ;;  %16047 = vmatprep.subr.bf16.mxu1 %v16900_v30 }
 0x303   :  { %v3215_v31 = vand.u32 4294901760, %v3214_v60 }
 0x304   :  { %14949 = vmatmul.mubr.f32.gmra.mrb[18].mxu0 %v2145_v48 }
 0x305   :  { %14951 = vmatprep.mubr.f32.mxu0 %v2155_v35 }
 0x308   :  { %14952 = vmatmul.mubr.f32.gmra.mrb[20].mxu0 %v2165_v57 }
 0x309   :  { %14954 = vmatprep.mubr.f32.mxu0 %v2175_v34 }
 0x30c   :  { %14955 = vmatmul.mubr.f32.gmra.mrb[22].mxu0 %v2185_v46 }
 0x30d   :  { %14959 = vmatprep.mubr.f32.mxu0 %v17708_v55 }
 0x310   :  { %14960 = vmatmul.mubr.f32.vlgmr.msra.gmra.mrb[16].mxu0 %v17706_v29 }
 0x311   :  { %14962 = vmatprep.mubr.f32.mxu0 %v17724_v16  ;;  %14972 = vmatpush3.msra.mxu0 %v17559_v42  ;;  %v3084_v42 = vld [vmem:[#allocation2 + $0x80] sm:$0xff] }
 0x312   :  { %v3118_v17 = vand.u32 4294901760, %v3084_v42 }
 0x314   :  { %14963 = vmatmul.mubr.f32.gmra.mrb[18].mxu0 %v17721_v18  ;;  %v17801_v11 = vpack.c.bf16 %v3121_v54, %v3118_v17 }
 0x315   :  { %14965 = vmatprep.mubr.f32.mxu0 %v17746_v21 }
 0x316   :  { %16049 = vmatpush3.bf16.msra.mxu1 %v17801_v11 }
 0x317   :  { %16050 = vmatprep.subr.bf16.mxu1 %v16900_v30 }
 0x318   :  { %14966 = vmatmul.mubr.f32.gmra.mrb[20].mxu0 %v17743_v62 }
 0x319   :  { %14968 = vmatprep.mubr.f32.mxu0 %v2173_v41 }
 0x31c   :  { %14969 = vmatmul.mubr.f32.gmra.mrb[22].mxu0 %v17756_v27 }
 0x31d   :  { %14973 = vmatprep.mubr.f32.mxu0 %v17708_v55  ;;  %v17803_v55 = vsub.f32 %v3084_v42, %v3118_v17 }
 0x31f   :  { %v3199_v0 = vand.u32 4294901760, %v17803_v55 }
 0x320   :  { %14974 = vmatmul.mubr.f32.vlgmr.msra.gmra.mrb[16].mxu0 %v17706_v29  ;;  %v17805_v29 = vsub.f32 %v3085_v61, %v3121_v54 }
 0x321   :  { %14976 = vmatprep.mubr.f32.mxu0 %v17724_v16  ;;  %v16902_v16 = vmov 0.0   ;;  %v3200_v1 = vsub.f32 %v17803_v55, %v3199_v0 }
 0x322   :  { %14993 = vmatprep.mubr.msk.f32.mxu1 %vm16901_vm11, %v16902_v16  ;;  %v3206_v10 = vand.u32 4294901760, %v17805_v29  ;;  %15147 = vmatprep.subr.mxu0 %v16902_v16  ;;  %v16060_v23 = vpack.c.bf16 %v17805_v29, %v17803_v55 }
 0x323   :  { %v3201_v20 = vand.u32 4294901760, %v3200_v1 }
 0x324   :  { %14977 = vmatmul.mubr.f32.gmra.mrb[18].mxu0 %v17721_v18  ;;  %v3087_v18 = vld [vmem:[#allocation2 + $0x98] sm:$0xff]  ;;  %v3207_v2 = vsub.f32 %v17805_v29, %v3206_v10  ;;  %v17839_v49 = vpack.c.bf16 %v3206_v10, %v3199_v0 }
 0x325   :  { %14979 = vmatprep.mubr.f32.mxu0 %v17746_v21  ;;  %v3127_v33 = vand.u32 4294901760, %v3087_v18 }
 0x326   :  { %v3208_v48 = vand.u32 4294901760, %v3207_v2 }
 0x327   :  { %v17814_v59 = vpack.c.bf16 %v3127_v33, %v3124_v37  ;;  %v17818_v56 = vsub.f32 %v3087_v18, %v3127_v33 }
 0x328   :  { %14980 = vmatmul.mubr.f32.gmra.mrb[20].mxu0 %v17743_v62  ;;  %v17829_v22 = vpack.c.bf16 %v3208_v48, %v3201_v20 }
 0x329   :  { %14982 = vmatprep.mubr.f32.mxu0 %v2173_v41  ;;  %16052 = vmatpush3.bf16.msra.mxu1 %v17814_v59  ;;  %v3220_v62 = vand.u32 4294901760, %v17818_v56  ;;  %v16063_v44 = vpack.c.bf16 %v17818_v56, %v17816_v32  ;;  %v14002_v32 = vld [vmem:[%s19089_s3 + $0x4] ss:$0 sm:$0xff] }
 0x32a   :  { %16053 = vmatprep.subr.bf16.mxu1 %v16900_v30 }
 0x32b   :  { %v3221_v21 = vsub.f32 %v17818_v56, %v3220_v62  ;;  %v17841_v39 = vpack.c.bf16 %v3220_v62, %v3213_v25 }
 0x32c   :  { %14983 = vmatmul.mubr.f32.gmra.mrb[22].mxu0 %v17756_v27 }
 0x32d   :  { %15149 = vmatprep.mubr.msk.f32.mxu0 %vm16901_vm11, %v16902_v16  ;;  %v3222_v24 = vand.u32 4294901760, %v3221_v21 }
 0x32f   :  { %v17833_v6 = vpack.c.bf16 %v3222_v24, %v3215_v31 }
 0x3f3   :  { %v14975_v57 = vpop.f32.mrb[16].mxu0 }
 0x3f4   :  { %v2795_v27 = vmul.f32 %v17665_v26, %v14975_v57  ;;  %v2748_v9 = vpop.f32.mrb[17].mxu0 }
 0x3f5   :  { %v2794_v40 = vmul.f32 %v17670_v15, %v2748_v9 }
 0x3f6   :  { %v2809_v35 = vsel %vm55_vm0, %v2795_v27, 0.0 }
 0x3f7   :  { %v2810_v47 = vrot.slane %v2809_v35, 4  ;;  %v2802_v45 = vsel %vm55_vm0, %v2794_v40, 0.0  ;;  %v14978_v4 = vpop.f32.mrb[18].mxu0 }
 0x3f8   :  { %v2803_v28 = vrot.slane %v2802_v45, 4  ;;  %v2797_v14 = vmul.f32 %v17681_v51, %v14978_v4  ;;  %v2760_v63 = vpop.f32.mrb[19].mxu0 }
 0x3f9   :  { %v2811_v5 = vadd.f32 %v2810_v47, %v2809_v35  ;;  %v2796_v41 = vmul.f32 %v17686_v38, %v2760_v63 }
 0x3fa   :  { %v2804_v3 = vadd.f32 %v2803_v28, %v2802_v45  ;;  %v2823_v46 = vsel %vm55_vm0, %v2797_v14, 0.0 }
 0x3fb   :  { %v2812_v26 = vrot.slane %v2811_v5, 2  ;;  %v2824_v19 = vrot.slane %v2823_v46, 4  ;;  %v2816_v15 = vsel %vm55_vm0, %v2796_v41, 0.0  ;;  %v14981_v34 = vpop.f32.mrb[20].mxu0 }
 0x3fc   :  { %v2805_v52 = vrot.slane %v2804_v3, 2  ;;  %v2817_v7 = vrot.slane %v2816_v15, 4  ;;  %v2799_v12 = vmul.f32 %v17639_v43, %v14981_v34  ;;  %v2772_v8 = vpop.f32.mrb[21].mxu0 }
 0x3fd   :  { %v2813_v42 = vadd.f32 %v2812_v26, %v2811_v5  ;;  %v2825_v61 = vadd.f32 %v2824_v19, %v2823_v46  ;;  %v2798_v51 = vmul.f32 %v17642_v50, %v2772_v8 }
 0x3fe   :  { %v2806_v17 = vadd.f32 %v2805_v52, %v2804_v3  ;;  %v2818_v54 = vadd.f32 %v2817_v7, %v2816_v15  ;;  %v2837_v38 = vsel %vm55_vm0, %v2799_v12, 0.0 }
 0x3ff   :  { %v2814_v53 = vrot.slane %v2813_v42, 1  ;;  %v2826_v18 = vrot.slane %v2825_v61, 2  ;;  %v2838_v37 = vrot.slane %v2837_v38, 4  ;;  %v2830_v33 = vsel %vm55_vm0, %v2798_v51, 0.0  ;;  %v14984_v0 = vpop.f32.mrb[22].mxu0 }
 0x400   :  { %v2807_v10 = vrot.slane %v2806_v17, 1  ;;  %v2819_v1 = vrot.slane %v2818_v54, 2  ;;  %v2831_v2 = vrot.slane %v2830_v33, 4  ;;  %v2801_v43 = vmul.f32 %v17648_v58, %v14984_v0  ;;  %v2784_v20 = vpop.f32.mrb[23].mxu0 }
 0x401   :  { %v2815_v48 = vadd.f32 %v2814_v53, %v2813_v42  ;;  %v2827_v25 = vadd.f32 %v2826_v18, %v2825_v61  ;;  %v2839_v62 = vadd.f32 %v2838_v37, %v2837_v38  ;;  %v2800_v50 = vmul.f32 %v17653_v13, %v2784_v20 }
 0x402   :  { %v2808_v60 = vadd.f32 %v2807_v10, %v2806_v17  ;;  %v2820_v21 = vadd.f32 %v2819_v1, %v2818_v54  ;;  %v2832_v31 = vadd.f32 %v2831_v2, %v2830_v33  ;;  %v2851_v24 = vsel %vm55_vm0, %v2801_v43, 0.0 }
 0x403   :  { %v2828_v57 = vrot.slane %v2827_v25, 1  ;;  %v2840_v27 = vrot.slane %v2839_v62, 2  ;;  %v2852_v9 = vrot.slane %v2851_v24, 4  ;;  %v2844_v40 = vsel %vm55_vm0, %v2800_v50, 0.0 }
 0x404   :  { %v3102_v35 = vsel %vm3101_vm2, %v2815_v48, %v2808_v60  ;;  %v2821_v47 = vrot.slane %v2820_v21, 1  ;;  %v2833_v58 = vrot.slane %v2832_v31, 2  ;;  %v2845_v45 = vrot.slane %v2844_v40, 4 }
 0x405   :  { %v2841_v4 = vadd.f32 %v2840_v27, %v2839_v62  ;;  %v2853_v28 = vadd.f32 %v2852_v9, %v2851_v24  ;;  %v2829_v5 = vadd.f32 %v2828_v57, %v2827_v25 }
 0x406   :  { %v2822_v14 = vadd.f32 %v2821_v47, %v2820_v21  ;;  %v2834_v63 = vadd.f32 %v2833_v58, %v2832_v31  ;;  %v2846_v13 = vadd.f32 %v2845_v45, %v2844_v40  ;;  %v3644_v40 = vld [vmem:[%s19091_s5] sm:$0xff]  ;;  %v3647_v45 = vld [vmem:[%s19091_s5 + $0x18] sm:$0xff] }
 0x407   :  { %v2842_v41 = vrot.slane %v2841_v4, 1  ;;  %v2854_v3 = vrot.slane %v2853_v28, 2  ;;  %v3657_v47 = vand.u32 4294901760, %v3644_v40 }
 0x408   :  { %v3104_v46 = vsel %vm3103_vm3, %v2822_v14, %v3102_v35  ;;  %v2835_v26 = vrot.slane %v2834_v63, 1  ;;  %v2847_v19 = vrot.slane %v2846_v13, 2  ;;  %v3645_v35 = vld [vmem:[%s19091_s5 + $0x8] sm:$0xff] }
 0x409   :  { %v3106_v15 = vsel %vm3105_vm4, %v2829_v5, %v3104_v46  ;;  %v2855_v34 = vadd.f32 %v2854_v3, %v2853_v28  ;;  %v2843_v12 = vadd.f32 %v2842_v41, %v2841_v4  ;;  %v3660_v58 = vand.u32 4294901760, %v3645_v35 }
 0x40a   :  { %v2836_v52 = vadd.f32 %v2835_v26, %v2834_v63  ;;  %v2848_v7 = vadd.f32 %v2847_v19, %v2846_v13  ;;  %v3666_v28 = vand.u32 4294901760, %v3647_v45  ;;  %v3737_v63 = vsub.f32 %v3644_v40, %v3657_v47 }
 0x40b   :  { %v2856_v8 = vrot.slane %v2855_v34, 1  ;;  %v17921_v14 = vpack.c.bf16 %v3660_v58, %v3657_v47  ;;  %v3744_v13 = vsub.f32 %v3645_v35, %v3660_v58 }
 0x40c   :  { %v3108_v42 = vsel %vm3107_vm5, %v2836_v52, %v3106_v15  ;;  %v2849_v61 = vrot.slane %v2848_v7, 1  ;;  %v3758_v41 = vsub.f32 %v3647_v45, %v3666_v28  ;;  %v3738_v46 = vand.u32 4294901760, %v3737_v63 }
 0x40d   :  { %v3110_v51 = vsel %vm3109_vm6, %v2843_v12, %v3108_v42  ;;  %v2857_v54 = vadd.f32 %v2856_v8, %v2855_v34  ;;  %v3745_v26 = vand.u32 4294901760, %v3744_v13 }
 0x40e   :  { %v2850_v17 = vadd.f32 %v2849_v61, %v2848_v7  ;;  %v3739_v19 = vsub.f32 %v3737_v63, %v3738_v46  ;;  %v3759_v12 = vand.u32 4294901760, %v3758_v41 }
 0x40f   :  { %v3746_v15 = vsub.f32 %v3744_v13, %v3745_v26 }
 0x410   :  { %v3112_v38 = vsel %vm3111_vm7, %v2850_v17, %v3110_v51  ;;  %v3740_v34 = vand.u32 4294901760, %v3739_v19  ;;  %v3760_v61 = vsub.f32 %v3758_v41, %v3759_v12 }
 0x411   :  { %v3114_v53 = vsel %vm3113_vm8, %v2857_v54, %v3112_v38  ;;  %v3747_v52 = vand.u32 4294901760, %v3746_v15  ;;  %v16096_v38 = vpack.c.bf16 %v3744_v13, %v3737_v63 }
 0x412   :  { %v3115_v18 = vsel %vm55_vm0, %v3114_v53, 0  ;;  %v3761_v17 = vand.u32 4294901760, %v3760_v61 }
 0x413   :  { %v3186_v37 = vand.u32 4294901760, %v3115_v18  ;;  %v16090_v8 = vpack.c.bf16 %v3747_v52, %v3740_v34  ;;  %v18036_v34 = vld [vmem:[%s19088_s2] ss:$0 sm:$0xff] }
 0x415   :  { %v3187_v33 = vsub.f32 %v3115_v18, %v3186_v37  ;;  %v16108_v18 = vpack.c.bf16 %v3745_v26, %v3738_v46 }
 0x417   :  { %v3188_v0 = vand.u32 4294901760, %v3187_v33 }
 0x419   :  { %v3189_v10 = vsub.f32 %v3187_v33, %v3188_v0 }
 0x41b   :  { %v3190_v1 = vand.u32 4294901760, %v3189_v10 }
 0x41d   :  { %14994 = vmatmul.mubr.f32.vlgmr.msra.gmra.mrb[8].mxu1 %v3190_v1 }
 0x41e   :  { %16055 = vmatpush3.bf16.msra.mxu1 %v17829_v22  ;;  %15004 = vmatprep.mubr.msk.f32.mxu1 %vm16901_vm11, %v16902_v16 }
 0x41f   :  { %16056 = vmatprep.subr.bf16.mxu1 %v16900_v30 }
 0x422   :  { %16058 = vmatpush3.bf16.msra.mxu1 %v17833_v6 }
 0x423   :  { %16059 = vmatprep.subr.bf16.mxu1 %v16900_v30 }
 0x425   :  { %15005 = vmatmul.mubr.f32.vlgmr.msra.gmra.mrb[10].mxu1 %v3186_v37 }
 0x426   :  { %16061 = vmatpush3.bf16.msra.mxu1 %v16060_v23  ;;  %15015 = vmatprep.mubr.msk.f32.mxu1 %vm16901_vm11, %v16902_v16 }
 0x427   :  { %16062 = vmatprep.subr.bf16.mxu1 %v16900_v30 }
 0x42a   :  { %16064 = vmatpush3.bf16.msra.mxu1 %v16063_v44 }
 0x42b   :  { %16065 = vmatprep.subr.bf16.mxu1 %v16900_v30 }
 0x42d   :  { %15016 = vmatmul.mubr.f32.vlgmr.msra.gmra.mrb[12].mxu1 %v3187_v33 }
 0x42e   :  { %16067 = vmatpush3.bf16.msra.mxu1 %v17801_v11  ;;  %15026 = vmatprep.mubr.msk.f32.mxu1 %vm16901_vm11, %v16902_v16 }
 0x42f   :  { %16068 = vmatprep.subr.bf16.mxu1 %v16900_v30 }
 0x432   :  { %16070 = vmatpush3.bf16.msra.mxu1 %v17814_v59 }
 0x433   :  { %16071 = vmatprep.subr.bf16.mxu1 %v16900_v30 }
 0x435   :  { %15027 = vmatmul.mubr.f32.vlgmr.msra.gmra.mrb[14].mxu1 %v3188_v0 }
 0x436   :  { %16073 = vmatpush3.bf16.msra.mxu1 %v17839_v49  ;;  %15037 = vmatprep.mubr.msk.f32.mxu1 %vm16901_vm11, %v16902_v16 }
 0x437   :  { %16074 = vmatprep.subr.bf16.mxu1 %v16900_v30 }
 0x43a   :  { %16076 = vmatpush3.bf16.msra.mxu1 %v17841_v39 }
 0x43b   :  { %16077 = vmatprep.subr.bf16.mxu1 %v16900_v30 }
 0x43d   :  { %15038 = vmatmul.mubr.f32.vlgmr.msra.gmra.mrb[16].mxu1 %v3186_v37 }
 0x43e   :  { %16079 = vmatpush3.bf16.msra.mxu1 %v17801_v11  ;;  %15048 = vmatprep.mubr.msk.f32.mxu1 %vm16901_vm11, %v16902_v16 }
 0x43f   :  { %16080 = vmatprep.subr.bf16.mxu1 %v16900_v30 }
 0x442   :  { %16082 = vmatpush3.bf16.msra.mxu1 %v17814_v59 }
 0x443   :  { %16083 = vmatprep.subr.bf16.mxu1 %v16900_v30 }
 0x445   :  { %15049 = vmatmul.mubr.f32.vlgmr.msra.gmra.mrb[18].mxu1 %v3186_v37 }
 0x446   :  { %15059 = vmatprep.mubr.msk.f32.mxu1 %vm16901_vm11, %v16902_v16  ;;  %16085 = vmatpush3.bf16.msra.mxu1 %v17921_v14 }
 0x447   :  { %16086 = vmatprep.subr.bf16.mxu1 %v16900_v30 }
 0x4f0   :  { %v3192_v55 = vpop.f32.mrb[8].mxu1 }
 0x4f1   :  { %v14995_v29 = vpop.f32.mrb[9].mxu1  ;;  %v3193_v11 = vadd.f32 %v14002_v32, %v3192_v55  ;;  %v14003_v55 = vld [vmem:[%s19089_s3 + $0x5] ss:$0 sm:$0xff]  ;;  %v14004_v32 = vld [vmem:[%s19089_s3 + $0x6] ss:$0 sm:$0xff] }
 0x4f8   :  { %v3283_v56 = vpop.f32.mrb[10].mxu1 }
 0x4f9   :  { %v3284_v22 = vadd.f32 %v3283_v56, %v3193_v11  ;;  %v15006_v6 = vpop.f32.mrb[11].mxu1 }
 0x500   :  { %v3363_v23 = vpop.f32.mrb[12].mxu1 }
 0x501   :  { %v3364_v44 = vadd.f32 %v3363_v23, %v3284_v22  ;;  %v15017_v49 = vpop.f32.mrb[13].mxu1 }
 0x508   :  { %v3440_v59 = vpop.f32.mrb[14].mxu1 }
 0x509   :  { %v3441_v39 = vadd.f32 %v3440_v59, %v3364_v44  ;;  %v15028_v2 = vpop.f32.mrb[15].mxu1 }
 0x510   :  { %v3523_v43 = vpop.f32.mrb[16].mxu1 }
 0x511   :  { %v3524_v20 = vadd.f32 %v3523_v43, %v3441_v39  ;;  %v15039_v48 = vpop.f32.mrb[17].mxu1  ;;  %v14005_v39 = vld [vmem:[%s19089_s3 + $0x7] ss:$0 sm:$0xff] }
 0x518   :  { %v3598_v25 = vpop.f32.mrb[18].mxu1 }
 0x519   :  { %v3599_v62 = vadd.f32 %v3598_v25, %v3524_v20  ;;  %v15050_v50 = vpop.f32.mrb[19].mxu1 }
 0x51b   :  { %v3618_v60 = vadd.f32 %v17500_v36, %v3599_v62  ;;  %v3646_v36 = vld [vmem:[%s19091_s5 + $0x10] sm:$0xff] }
 0x51c   :  { %v3663_v4 = vand.u32 4294901760, %v3646_v36 }
 0x51d   :  { %v3621_v21 = vsel %vm55_vm0, %v3618_v60, 0.0 }
 0x51e   :  { %3622 = vadd.xlane.f32.xlu1 %v3621_v21  ;;  %v3751_v5 = vsub.f32 %v3646_v36, %v3663_v4  ;;  %v17924_v3 = vpack.c.bf16 %v3666_v28, %v3663_v4 }
 0x520   :  { %16088 = vmatpush3.bf16.msra.mxu1 %v17924_v3  ;;  %v3752_v7 = vand.u32 4294901760, %v3751_v5  ;;  %v16099_v53 = vpack.c.bf16 %v3758_v41, %v3751_v5 }
 0x521   :  { %16089 = vmatprep.subr.bf16.mxu1 %v16900_v30 }
 0x522   :  { %v3753_v42 = vsub.f32 %v3751_v5, %v3752_v7  ;;  %v16111_v37 = vpack.c.bf16 %v3759_v12, %v3752_v7  ;;  %v18041_v7 = vld [vmem:[%s19088_s2 + $0x1] ss:$0 sm:$0xff] }
 0x524   :  { %v3754_v51 = vand.u32 4294901760, %v3753_v42 }
 0x526   :  { %v16093_v54 = vpack.c.bf16 %v3761_v17, %v3754_v51 }
 0x5ab   :  { %v3623_v31 = vpop.xlane.xlu1 %3622 }
 0x5ac   :  { %v3624_v24 = vmul.f32 0.03125, %v3623_v31 }
 0x5ae   :  { %v3625_v57 = vsub.f32 %v3618_v60, %v3624_v24 }
 0x5b0   :  { %v3626_v27 = vmul.f32 %v3625_v57, %v3625_v57 }
 0x5b2   :  { %v3627_v9 = vsel %vm55_vm0, %v3626_v27, 0.0 }
 0x5b3   :  { %3628 = vadd.xlane.f32.xlu0 %v3627_v9 }
 0x640   :  { %v3629_v33 = vpop.xlane.xlu0 %3628 }
 0x641   :  { %v3630_v0 = vmul.f32 0.03125, %v3629_v33 }
 0x643   :  { %v3631_v10 = vadd.f32 1e-06, %v3630_v0 }
 0x645   :  { %16812 = vrsqrt.f32 %v3631_v10 }
 0x64f   :  { %v16813_v1 = vpop.eup %16812 }
 0x650   :  { %v3633_v29 = vmul.f32 %v16813_v1, %v3625_v57 }
 0x652   :  { %v3638_v11 = vmul.f32 %v14003_v55, %v3633_v29 }
 0x654   :  { %v3643_v56 = vadd.f32 %v14004_v32, %v3638_v11 }
 0x656   :  { %v3654_v22 = vsel %vm55_vm0, %v3643_v56, 0 }
 0x657   :  { %v3725_v6 = vand.u32 4294901760, %v3654_v22 }
 0x659   :  { %v3726_v23 = vsub.f32 %v3654_v22, %v3725_v6 }
 0x65b   :  { %v3727_v44 = vand.u32 4294901760, %v3726_v23 }
 0x65d   :  { %v3728_v49 = vsub.f32 %v3726_v23, %v3727_v44 }
 0x65f   :  { %v3729_v59 = vand.u32 4294901760, %v3728_v49 }
 0x661   :  { %15060 = vmatmul.mubr.f32.vlgmr.msra.gmra.mrb[20].mxu1 %v3729_v59 }
 0x662   :  { %16091 = vmatpush3.bf16.msra.mxu1 %v16090_v8  ;;  %15070 = vmatprep.mubr.msk.f32.mxu1 %vm16901_vm11, %v16902_v16 }
 0x663   :  { %16092 = vmatprep.subr.bf16.mxu1 %v16900_v30 }
 0x666   :  { %16094 = vmatpush3.bf16.msra.mxu1 %v16093_v54 }
 0x667   :  { %16095 = vmatprep.subr.bf16.mxu1 %v16900_v30 }
 0x669   :  { %15071 = vmatmul.mubr.f32.vlgmr.msra.gmra.mrb[20].mxu1 %v3725_v6 }
 0x66a   :  { %16097 = vmatpush3.bf16.msra.mxu1 %v16096_v38  ;;  %15081 = vmatprep.mubr.msk.f32.mxu1 %vm16901_vm11, %v16902_v16 }
 0x66b   :  { %16098 = vmatprep.subr.bf16.mxu1 %v16900_v30 }
 0x66e   :  { %16100 = vmatpush3.bf16.msra.mxu1 %v16099_v53 }
 0x66f   :  { %16101 = vmatprep.subr.bf16.mxu1 %v16900_v30 }
 0x671   :  { %15082 = vmatmul.mubr.f32.vlgmr.msra.gmra.mrb[20].mxu1 %v3726_v23 }
 0x672   :  { %16103 = vmatpush3.bf16.msra.mxu1 %v17921_v14  ;;  %15092 = vmatprep.mubr.msk.f32.mxu1 %vm16901_vm11, %v16902_v16 }
 0x673   :  { %16104 = vmatprep.subr.bf16.mxu1 %v16900_v30 }
 0x676   :  { %16106 = vmatpush3.bf16.msra.mxu1 %v17924_v3 }
 0x677   :  { %16107 = vmatprep.subr.bf16.mxu1 %v16900_v30 }
 0x679   :  { %15093 = vmatmul.mubr.f32.vlgmr.msra.gmra.mrb[20].mxu1 %v3727_v44 }
 0x67a   :  { %16109 = vmatpush3.bf16.msra.mxu1 %v16108_v18  ;;  %15103 = vmatprep.mubr.msk.f32.mxu1 %vm16901_vm11, %v16902_v16 }
 0x67b   :  { %16110 = vmatprep.subr.bf16.mxu1 %v16900_v30 }
 0x67e   :  { %16112 = vmatpush3.bf16.msra.mxu1 %v16111_v37 }
 0x67f   :  { %16113 = vmatprep.subr.bf16.mxu1 %v16900_v30 }
 0x681   :  { %15104 = vmatmul.mubr.f32.vlgmr.msra.gmra.mrb[20].mxu1 %v3725_v6 }
 0x682   :  { %16115 = vmatpush3.bf16.msra.mxu1 %v17921_v14  ;;  %15114 = vmatprep.mubr.msk.f32.mxu1 %vm16901_vm11, %v16902_v16 }
 0x683   :  { %16116 = vmatprep.subr.bf16.mxu1 %v16900_v30 }
 0x686   :  { %16118 = vmatpush3.bf16.msra.mxu1 %v17924_v3 }
 0x687   :  { %15117 = vmatprep.subr.mxu1 %v16902_v16 }
 0x689   :  { %15115 = vmatmul.mubr.f32.vlgmr.msra.gmra.mrb[20].mxu1 %v3725_v6 }
 0x68a   :  { %15119 = vmatprep.mubr.msk.f32.mxu1 %vm16901_vm11, %v16902_v16 }
 0x75c   :  { %v4137_v2 = vpop.f32.mrb[20].mxu1 }
 0x75d   :  { %v17965_v43 = vadd.f32 %v14005_v39, %v4137_v2  ;;  %v15116_v20 = vpop.f32.mrb[21].mxu1 }
 0x75f   :  { %4160 = vrot.lane.b32.xlu0 %v17965_v43, %s16903_s4  ;;  %v17970_v48 = vcombine.high %v17965_v43, %v17965_v43  ;;  %v17974_v25 = vmul.f32 0.35355338, %v17965_v43 }
 0x761   :  { %4614 = vrot.lane.b32.xlu1 %v17970_v48, %s16903_s4  ;;  %v17977_v62 = vmul.f32 0.35355338, %v17970_v48  ;;  %v4164_v50 = vsel %vm4162_vm12, %v17974_v25, 0 }
 0x762   :  { %v17983_v21 = vand.u32 4294901760, %v4164_v50 }
 0x763   :  { %v4617_v60 = vsel %vm4162_vm12, %v17977_v62, 0 }
 0x764   :  { %v17985_v31 = vand.u32 4294901760, %v4617_v60  ;;  %v4235_v24 = vsub.f32 %v4164_v50, %v17983_v21 }
 0x766   :  { %v4688_v57 = vsub.f32 %v4617_v60, %v17985_v31  ;;  %v4236_v27 = vand.u32 4294901760, %v4235_v24 }
 0x768   :  { %v4689_v9 = vand.u32 4294901760, %v4688_v57  ;;  %v4237_v36 = vsub.f32 %v4235_v24, %v4236_v27 }
 0x76a   :  { %v4690_v4 = vsub.f32 %v4688_v57, %v4689_v9  ;;  %v4238_v63 = vand.u32 4294901760, %v4237_v36 }
 0x76c   :  { %v4691_v41 = vand.u32 4294901760, %v4690_v4 }
 0x7d1   :  { %v4161_v40 = vpop.permute.xlu0 %4160 }
 0x7d2   :  { %v4166_v35 = vsel %vm4162_vm12, %v4161_v40, 0 }
 0x7d3   :  { %v4169_v47 = vand.u32 4294901760, %v4166_v35  ;;  %v4615_v58 = vpop.permute.xlu1 %4614 }
 0x7d4   :  { %v4619_v45 = vsel %vm4162_vm12, %v4615_v58, 0 }
 0x7d5   :  { %v4246_v28 = vsub.f32 %v4166_v35, %v4169_v47  ;;  %v4622_v14 = vand.u32 4294901760, %v4619_v45  ;;  %15118 = vmatpush3.xpose.msra.mxu1 %v4169_v47 }
 0x7d6   :  { %15122 = vmatprep.subr.mxu1 %v16902_v16 }
 0x7d7   :  { %v4247_v13 = vand.u32 4294901760, %v4246_v28  ;;  %v4699_v5 = vsub.f32 %v4619_v45, %v4622_v14  ;;  %15148 = vmatpush3.xpose.msra.mxu0 %v4622_v14 }
 0x7d8   :  { %15120 = vmatmul.mubr.f32.vlgmr.msra.gmra.mrb[22].mxu1 %v4238_v63  ;;  %15152 = vmatprep.subr.mxu0 %v16902_v16 }
 0x7d9   :  { %v4248_v3 = vsub.f32 %v4246_v28, %v4247_v13  ;;  %v4700_v46 = vand.u32 4294901760, %v4699_v5  ;;  %15124 = vmatprep.mubr.msk.f32.mxu1 %vm16901_vm11, %v16902_v16 }
 0x7da   :  { %15150 = vmatmul.mubr.f32.vlgmr.msra.gmra.mrb[24].mxu0 %v4691_v41 }
 0x7db   :  { %v4249_v26 = vand.u32 4294901760, %v4248_v3  ;;  %v4701_v19 = vsub.f32 %v4699_v5, %v4700_v46  ;;  %15154 = vmatprep.mubr.msk.f32.mxu0 %vm16901_vm11, %v16902_v16 }
 0x7dd   :  { %v4702_v15 = vand.u32 4294901760, %v4701_v19  ;;  %15123 = vmatpush3.xpose.msra.mxu1 %v4249_v26 }
 0x7de   :  { %15127 = vmatprep.subr.mxu1 %v16902_v16 }
 0x7df   :  { %15153 = vmatpush3.xpose.msra.mxu0 %v4702_v15 }
 0x7e0   :  { %15125 = vmatmul.mubr.f32.vlgmr.msra.gmra.mrb[22].mxu1 %v17983_v21  ;;  %15157 = vmatprep.subr.mxu0 %v16902_v16 }
 0x7e1   :  { %15128 = vmatpush3.xpose.msra.mxu1 %v4246_v28  ;;  %15129 = vmatprep.mubr.msk.f32.mxu1 %vm16901_vm11, %v16902_v16 }
 0x7e2   :  { %15155 = vmatmul.mubr.f32.vlgmr.msra.gmra.mrb[24].mxu0 %v17985_v31  ;;  %15132 = vmatprep.subr.mxu1 %v16902_v16 }
 0x7e3   :  { %15158 = vmatpush3.xpose.msra.mxu0 %v4699_v5  ;;  %15159 = vmatprep.mubr.msk.f32.mxu0 %vm16901_vm11, %v16902_v16 }
 0x7e4   :  { %15162 = vmatprep.subr.mxu0 %v16902_v16 }
 0x7e8   :  { %15130 = vmatmul.mubr.f32.vlgmr.msra.gmra.mrb[22].mxu1 %v4235_v24 }
 0x7e9   :  { %15133 = vmatpush3.xpose.msra.mxu1 %v4169_v47  ;;  %15134 = vmatprep.mubr.msk.f32.mxu1 %vm16901_vm11, %v16902_v16 }
 0x7ea   :  { %15160 = vmatmul.mubr.f32.vlgmr.msra.gmra.mrb[24].mxu0 %v4688_v57  ;;  %15137 = vmatprep.subr.mxu1 %v16902_v16 }
 0x7eb   :  { %15163 = vmatpush3.xpose.msra.mxu0 %v4622_v14  ;;  %15164 = vmatprep.mubr.msk.f32.mxu0 %vm16901_vm11, %v16902_v16 }
 0x7ec   :  { %15167 = vmatprep.subr.mxu0 %v16902_v16 }
 0x7f0   :  { %15135 = vmatmul.mubr.f32.vlgmr.msra.gmra.mrb[22].mxu1 %v4236_v27 }
 0x7f1   :  { %15138 = vmatpush3.xpose.msra.mxu1 %v4247_v13  ;;  %15139 = vmatprep.mubr.msk.f32.mxu1 %vm16901_vm11, %v16902_v16 }
 0x7f2   :  { %15165 = vmatmul.mubr.f32.vlgmr.msra.gmra.mrb[24].mxu0 %v4689_v9  ;;  %15142 = vmatprep.subr.mxu1 %v16902_v16 }
 0x7f3   :  { %15168 = vmatpush3.xpose.msra.mxu0 %v4700_v46  ;;  %15169 = vmatprep.mubr.msk.f32.mxu0 %vm16901_vm11, %v16902_v16 }
 0x7f4   :  { %15172 = vmatprep.subr.mxu0 %v16902_v16 }
 0x7f8   :  { %15140 = vmatmul.mubr.f32.vlgmr.msra.gmra.mrb[22].mxu1 %v17983_v21 }
 0x7f9   :  { %15143 = vmatpush3.xpose.msra.mxu1 %v4169_v47  ;;  %15144 = vmatprep.mubr.msk.f32.mxu1 %vm16901_vm11, %v16902_v16 }
 0x7fa   :  { %15170 = vmatmul.mubr.f32.vlgmr.msra.gmra.mrb[24].mxu0 %v17985_v31  ;;  %15177 = vmatprep.subr.mxu1 %v16902_v16 }
 0x7fb   :  { %15173 = vmatpush3.xpose.msra.mxu0 %v4622_v14  ;;  %15174 = vmatprep.mubr.msk.f32.mxu0 %vm16901_vm11, %v16902_v16 }
 0x7fc   :  { %15207 = vmatprep.subr.mxu0 %v16902_v16 }
 0x800   :  { %15145 = vmatmul.mubr.f32.vlgmr.msra.gmra.mrb[22].mxu1 %v17983_v21 }
 0x801   :  { %15179 = vmatprep.mubr.msk.f32.mxu1 %vm16901_vm11, %v16902_v16 }
 0x802   :  { %15175 = vmatmul.mubr.f32.vlgmr.msra.gmra.mrb[24].mxu0 %v17985_v31 }
 0x803   :  { %15209 = vmatprep.mubr.msk.f32.mxu0 %vm16901_vm11, %v16902_v16 }
 0x8d3   :  { %v4610_v52 = vpop.f32.mrb[22].mxu1 }
 0x8d4   :  { %v16328_v12 = vadd.f32 %v18036_v34, %v4610_v52  ;;  %v15146_v8 = vpop.f32.mrb[23].mxu1 }
 0x8d5   :  { %v5063_v42 = vpop.f32.mrb[24].mxu0 }
 0x8d6   :  { %v16329_v61 = vadd.f32 %v18041_v7, %v5063_v42  ;;  %v15176_v51 = vpop.f32.mrb[25].mxu0  ;;  %v5068_v17 = vsel %vm5067_vm13, %v16328_v12, -inf }
 0x8d7   :  { %5069 = vmax.xlane.f32.xlu1 %v5068_v17 }
 0x8d8   :  { %v5071_v54 = vsel %vm5067_vm13, %v16329_v61, -inf }
 0x8d9   :  { %5072 = vmax.xlane.f32.xlu0 %v5071_v54 }
 0x964   :  { %v5070_v38 = vpop.xlane.xlu1 %5069 }
 0x965   :  { %v5074_v53 = vsub.f32 %v16328_v12, %v5070_v38 }
 0x966   :  { %v5073_v18 = vpop.xlane.xlu0 %5072 }
 0x967   :  { %v5076_v37 = vmul.f32 1.442695, %v5074_v53  ;;  %v5075_v33 = vsub.f32 %v16329_v61, %v5073_v18 }
 0x969   :  { %16814 = vpow2.f32 %v5076_v37  ;;  %v5078_v0 = vmul.f32 1.442695, %v5075_v33 }
 0x96b   :  { %16816 = vpow2.f32 %v5078_v0 }
 0x973   :  { %v16815_v10 = vpop.eup %16814 }
 0x974   :  { %v5080_v1 = vsel %vm5067_vm13, %v16815_v10, 0.0 }
 0x975   :  { %v16817_v55 = vpop.eup %16816  ;;  %5081 = vadd.xlane.f32.xlu0 %v5080_v1 }
 0x976   :  { %v5083_v29 = vsel %vm5067_vm13, %v16817_v55, 0.0 }
 0x977   :  { %5084 = vadd.xlane.f32.xlu1 %v5083_v29 }
 0x988   :  { %5543 = vrot.lane.b32.xlu1 %v17970_v48, %s16904_s20 }
 0x98b   :  { %5090 = vrot.lane.b32.xlu0 %v17965_v43, %s16904_s20 }
 0x98c   :  { %5996 = vrot.lane.b32.xlu1 %v17974_v25, %s16905_s21 }
 0x98f   :  { %6450 = vrot.lane.b32.xlu0 %v17977_v62, %s16905_s21 }
 0x990   :  { %5998 = vrot.lane.b32.xlu1 %v17965_v43, %s16906_s22 }
 0x993   :  { %6452 = vrot.lane.b32.xlu0 %v17970_v48, %s16906_s22 }
 0xa02   :  { %v5082_v32 = vpop.xlane.xlu0 %5081 }
 0xa03   :  { %16818 = vrcp.f32 %v5082_v32 }
 0xa04   :  { %v5085_v11 = vpop.xlane.xlu1 %5084 }
 0xa05   :  { %16820 = vrcp.f32 %v5085_v11 }
 0xa06   :  { %v5091_v56 = vpop.permute.xlu0 %5090 }
 0xa07   :  { %v5095_v22 = vsel %vm2043_vm9, %v5091_v56, 0 }
 0xa08   :  { %v18056_v6 = vand.u32 4294901760, %v5095_v22  ;;  %v5544_v23 = vpop.permute.xlu1 %5543 }
 0xa09   :  { %v5548_v44 = vsel %vm2043_vm9, %v5544_v23, 0 }
 0xa0a   :  { %v18059_v49 = vand.u32 4294901760, %v5548_v44  ;;  %15178 = vmatpush3.msra.mxu1 %v18056_v6  ;;  %v5175_v20 = vsub.f32 %v5095_v22, %v18056_v6  ;;  %v6451_v3 = vpop.permute.xlu0 %6450 }
 0xa0b   :  { %15182 = vmatprep.subr.mxu1 %v16902_v16  ;;  %v6454_v52 = vsel %vm4162_vm12, %v6451_v3, 0 }
 0xa0c   :  { %15208 = vmatpush3.msra.mxu0 %v18059_v49  ;;  %v5628_v60 = vsub.f32 %v5548_v44, %v18059_v49  ;;  %v5176_v24 = vand.u32 4294901760, %v5175_v20  ;;  %v5997_v41 = vpop.permute.xlu1 %5996  ;;  %v18110_v61 = vand.u32 4294901760, %v6454_v52 }
 0xa0d   :  { %v16819_v59 = vpop.eup %16818  ;;  %15212 = vmatprep.subr.mxu0 %v16902_v16  ;;  %v6000_v26 = vsel %vm4162_vm12, %v5997_v41, 0 }
 0xa0e   :  { %v5087_v39 = vmul.f32 %v16819_v59, %v16815_v10  ;;  %v5629_v40 = vand.u32 4294901760, %v5628_v60  ;;  %v5177_v47 = vsub.f32 %v5175_v20, %v5176_v24  ;;  %v6453_v19 = vpop.permute.xlu0 %6452  ;;  %v18102_v12 = vand.u32 4294901760, %v6000_v26 }
 0xa0f   :  { %v16821_v2 = vpop.eup %16820  ;;  %v6456_v8 = vsel %vm4162_vm12, %v6453_v19, 0  ;;  %v6525_v38 = vsub.f32 %v6454_v52, %v18110_v61 }
 0xa10   :  { %v5089_v50 = vmul.f32 %v16821_v2, %v16817_v55  ;;  %v5093_v21 = vsel %vm1864_vm10, %v5087_v39, 0  ;;  %v5630_v4 = vsub.f32 %v5628_v60, %v5629_v40  ;;  %v5178_v63 = vand.u32 4294901760, %v5177_v47  ;;  %v5999_v46 = vpop.permute.xlu1 %5998 }
 0xa11   :  { %v18068_v31 = vand.u32 4294901760, %v5093_v21  ;;  %v6002_v15 = vsel %vm4162_vm12, %v5999_v46, 0  ;;  %v18113_v51 = vand.u32 4294901760, %v6456_v8  ;;  %v6071_v17 = vsub.f32 %v6000_v26, %v18102_v12 }
 0xa12   :  { %v5546_v57 = vsel %vm1864_vm10, %v5089_v50, 0  ;;  %v5631_v5 = vand.u32 4294901760, %v5630_v4  ;;  %v18106_v42 = vand.u32 4294901760, %v6002_v15  ;;  %v6526_v33 = vand.u32 4294901760, %v6525_v38 }
 0xa13   :  { %v5164_v27 = vsub.f32 %v5093_v21, %v18068_v31  ;;  %v18072_v9 = vand.u32 4294901760, %v5546_v57  ;;  %v6536_v53 = vsub.f32 %v6456_v8, %v18113_v51  ;;  %v6072_v18 = vand.u32 4294901760, %v6071_v17 }
 0xa14   :  { %v6082_v54 = vsub.f32 %v6002_v15, %v18106_v42  ;;  %v6527_v55 = vsub.f32 %v6525_v38, %v6526_v33 }
 0xa15   :  { %v5165_v35 = vand.u32 4294901760, %v5164_v27  ;;  %v5617_v36 = vsub.f32 %v5546_v57, %v18072_v9  ;;  %v6537_v0 = vand.u32 4294901760, %v6536_v53  ;;  %v6073_v10 = vsub.f32 %v6071_v17, %v6072_v18 }
 0xa16   :  { %v6083_v37 = vand.u32 4294901760, %v6082_v54  ;;  %v6528_v56 = vand.u32 4294901760, %v6527_v55 }
 0xa17   :  { %v5166_v58 = vsub.f32 %v5164_v27, %v5165_v35  ;;  %v5618_v45 = vand.u32 4294901760, %v5617_v36  ;;  %v6538_v29 = vsub.f32 %v6536_v53, %v6537_v0  ;;  %v6074_v32 = vand.u32 4294901760, %v6073_v10 }
 0xa18   :  { %v6084_v1 = vsub.f32 %v6082_v54, %v6083_v37 }
 0xa19   :  { %v5167_v28 = vand.u32 4294901760, %v5166_v58  ;;  %v5619_v14 = vsub.f32 %v5617_v36, %v5618_v45  ;;  %v6539_v22 = vand.u32 4294901760, %v6538_v29 }
 0xa1a   :  { %v6085_v11 = vand.u32 4294901760, %v6084_v1 }
 0xa1b   :  { %15180 = vmatmul.mubr.f32.vlgmr.msra.gmra.mrb[24].mxu1 %v5167_v28  ;;  %v5620_v13 = vand.u32 4294901760, %v5619_v14 }
 0xa1c   :  { %15183 = vmatpush3.msra.mxu1 %v5178_v63  ;;  %15184 = vmatprep.mubr.msk.f32.mxu1 %vm16901_vm11, %v16902_v16 }
 0xa1d   :  { %15210 = vmatmul.mubr.f32.vlgmr.msra.gmra.mrb[26].mxu0 %v5620_v13  ;;  %15187 = vmatprep.subr.mxu1 %v16902_v16 }
 0xa1e   :  { %15213 = vmatpush3.msra.mxu0 %v5631_v5  ;;  %15214 = vmatprep.mubr.msk.f32.mxu0 %vm16901_vm11, %v16902_v16 }
 0xa1f   :  { %15217 = vmatprep.subr.mxu0 %v16902_v16 }
 0xa23   :  { %15185 = vmatmul.mubr.f32.vlgmr.msra.gmra.mrb[24].mxu1 %v18068_v31 }
 0xa24   :  { %15188 = vmatpush3.msra.mxu1 %v5175_v20  ;;  %15189 = vmatprep.mubr.msk.f32.mxu1 %vm16901_vm11, %v16902_v16 }
 0xa25   :  { %15215 = vmatmul.mubr.f32.vlgmr.msra.gmra.mrb[26].mxu0 %v18072_v9  ;;  %15192 = vmatprep.subr.mxu1 %v16902_v16 }
 0xa26   :  { %15218 = vmatpush3.msra.mxu0 %v5628_v60  ;;  %15219 = vmatprep.mubr.msk.f32.mxu0 %vm16901_vm11, %v16902_v16 }
 0xa27   :  { %15222 = vmatprep.subr.mxu0 %v16902_v16 }
 0xa2b   :  { %15190 = vmatmul.mubr.f32.vlgmr.msra.gmra.mrb[24].mxu1 %v5164_v27 }
 0xa2c   :  { %15193 = vmatpush3.msra.mxu1 %v18056_v6  ;;  %15194 = vmatprep.mubr.msk.f32.mxu1 %vm16901_vm11, %v16902_v16 }
 0xa2d   :  { %15220 = vmatmul.mubr.f32.vlgmr.msra.gmra.mrb[26].mxu0 %v5617_v36  ;;  %15197 = vmatprep.subr.mxu1 %v16902_v16 }
 0xa2e   :  { %15223 = vmatpush3.msra.mxu0 %v18059_v49  ;;  %15224 = vmatprep.mubr.msk.f32.mxu0 %vm16901_vm11, %v16902_v16 }
 0xa2f   :  { %15227 = vmatprep.subr.mxu0 %v16902_v16 }
 0xa33   :  { %15195 = vmatmul.mubr.f32.vlgmr.msra.gmra.mrb[24].mxu1 %v5165_v35 }
 0xa34   :  { %15198 = vmatpush3.msra.mxu1 %v5176_v24  ;;  %15199 = vmatprep.mubr.msk.f32.mxu1 %vm16901_vm11, %v16902_v16 }
 0xa35   :  { %15225 = vmatmul.mubr.f32.vlgmr.msra.gmra.mrb[26].mxu0 %v5618_v45  ;;  %15202 = vmatprep.subr.mxu1 %v16902_v16 }
 0xa36   :  { %15228 = vmatpush3.msra.mxu0 %v5629_v40  ;;  %15229 = vmatprep.mubr.msk.f32.mxu0 %vm16901_vm11, %v16902_v16 }
 0xa37   :  { %15232 = vmatprep.subr.mxu0 %v16902_v16 }
 0xa3b   :  { %15200 = vmatmul.mubr.f32.vlgmr.msra.gmra.mrb[24].mxu1 %v18068_v31 }
 0xa3c   :  { %15203 = vmatpush3.msra.mxu1 %v18056_v6  ;;  %15204 = vmatprep.mubr.msk.f32.mxu1 %vm16901_vm11, %v16902_v16 }
 0xa3d   :  { %15230 = vmatmul.mubr.f32.vlgmr.msra.gmra.mrb[26].mxu0 %v18072_v9  ;;  %15237 = vmatprep.subr.mxu1 %v16902_v16 }
 0xa3e   :  { %15233 = vmatpush3.msra.mxu0 %v18059_v49  ;;  %15234 = vmatprep.mubr.msk.f32.mxu0 %vm16901_vm11, %v16902_v16 }
 0xa3f   :  { %15267 = vmatprep.subr.mxu0 %v16902_v16 }
 0xa43   :  { %15205 = vmatmul.mubr.f32.vlgmr.msra.gmra.mrb[24].mxu1 %v18068_v31 }
 0xa44   :  { %15238 = vmatpush3.xpose.msra.mxu1 %v18106_v42  ;;  %15239 = vmatprep.mubr.msk.f32.mxu1 %vm16901_vm11, %v16902_v16 }
 0xa45   :  { %15235 = vmatmul.mubr.f32.vlgmr.msra.gmra.mrb[26].mxu0 %v18072_v9  ;;  %15242 = vmatprep.subr.mxu1 %v16902_v16 }
 0xa46   :  { %15268 = vmatpush3.xpose.msra.mxu0 %v18113_v51  ;;  %15269 = vmatprep.mubr.msk.f32.mxu0 %vm16901_vm11, %v16902_v16 }
 0xa47   :  { %15240 = vmatmul.mubr.f32.vlgmr.msra.gmra.mrb[26].mxu1 %v6074_v32  ;;  %15272 = vmatprep.subr.mxu0 %v16902_v16 }
 0xa48   :  { %15243 = vmatpush3.xpose.msra.mxu1 %v6085_v11  ;;  %15244 = vmatprep.mubr.msk.f32.mxu1 %vm16901_vm11, %v16902_v16 }
 0xa49   :  { %15270 = vmatmul.mubr.f32.vlgmr.msra.gmra.mrb[28].mxu0 %v6528_v56  ;;  %15247 = vmatprep.subr.mxu1 %v16902_v16 }
 0xa4a   :  { %15273 = vmatpush3.xpose.msra.mxu0 %v6539_v22  ;;  %15274 = vmatprep.mubr.msk.f32.mxu0 %vm16901_vm11, %v16902_v16 }
 0xa4b   :  { %15277 = vmatprep.subr.mxu0 %v16902_v16 }
 0xa4f   :  { %15245 = vmatmul.mubr.f32.vlgmr.msra.gmra.mrb[26].mxu1 %v18102_v12 }
 0xa50   :  { %15248 = vmatpush3.xpose.msra.mxu1 %v6082_v54  ;;  %15249 = vmatprep.mubr.msk.f32.mxu1 %vm16901_vm11, %v16902_v16 }
 0xa51   :  { %15275 = vmatmul.mubr.f32.vlgmr.msra.gmra.mrb[28].mxu0 %v18110_v61  ;;  %15252 = vmatprep.subr.mxu1 %v16902_v16 }
 0xa52   :  { %15278 = vmatpush3.xpose.msra.mxu0 %v6536_v53  ;;  %15279 = vmatprep.mubr.msk.f32.mxu0 %vm16901_vm11, %v16902_v16 }
 0xa53   :  { %15282 = vmatprep.subr.mxu0 %v16902_v16 }
 0xa57   :  { %15250 = vmatmul.mubr.f32.vlgmr.msra.gmra.mrb[26].mxu1 %v6071_v17 }
 0xa58   :  { %15253 = vmatpush3.xpose.msra.mxu1 %v18106_v42  ;;  %15254 = vmatprep.mubr.msk.f32.mxu1 %vm16901_vm11, %v16902_v16 }
 0xa59   :  { %15280 = vmatmul.mubr.f32.vlgmr.msra.gmra.mrb[28].mxu0 %v6525_v38  ;;  %15257 = vmatprep.subr.mxu1 %v16902_v16 }
 0xa5a   :  { %15283 = vmatpush3.xpose.msra.mxu0 %v18113_v51  ;;  %15284 = vmatprep.mubr.msk.f32.mxu0 %vm16901_vm11, %v16902_v16 }
 0xa5b   :  { %15287 = vmatprep.subr.mxu0 %v16902_v16 }
 0xa5f   :  { %15255 = vmatmul.mubr.f32.vlgmr.msra.gmra.mrb[26].mxu1 %v6072_v18 }
 0xa60   :  { %15258 = vmatpush3.xpose.msra.mxu1 %v6083_v37  ;;  %15259 = vmatprep.mubr.msk.f32.mxu1 %vm16901_vm11, %v16902_v16 }
 0xa61   :  { %15285 = vmatmul.mubr.f32.vlgmr.msra.gmra.mrb[28].mxu0 %v6526_v33  ;;  %15262 = vmatprep.subr.mxu1 %v16902_v16 }
 0xa62   :  { %15288 = vmatpush3.xpose.msra.mxu0 %v6537_v0  ;;  %15289 = vmatprep.mubr.msk.f32.mxu0 %vm16901_vm11, %v16902_v16 }
 0xa63   :  { %15292 = vmatprep.subr.mxu0 %v16902_v16 }
 0xa67   :  { %15260 = vmatmul.mubr.f32.vlgmr.msra.gmra.mrb[26].mxu1 %v18102_v12 }
 0xa68   :  { %15263 = vmatpush3.xpose.msra.mxu1 %v18106_v42  ;;  %15264 = vmatprep.mubr.msk.f32.mxu1 %vm16901_vm11, %v16902_v16 }
 0xa69   :  { %15290 = vmatmul.mubr.f32.vlgmr.msra.gmra.mrb[28].mxu0 %v18110_v61  ;;  %15297 = vmatprep.subr.mxu1 %v16902_v16 }
 0xa6a   :  { %15293 = vmatpush3.xpose.msra.mxu0 %v18113_v51  ;;  %15294 = vmatprep.mubr.msk.f32.mxu0 %vm16901_vm11, %v16902_v16 }
 0xa6b   :  { %15327 = vmatprep.subr.mxu0 %v16902_v16 }
 0xa6f   :  { %15265 = vmatmul.mubr.f32.vlgmr.msra.gmra.mrb[26].mxu1 %v18102_v12 }
 0xa70   :  { %15299 = vmatprep.mubr.msk.f32.mxu1 %vm16901_vm11, %v16902_v16 }
 0xa71   :  { %15295 = vmatmul.mubr.f32.vlgmr.msra.gmra.mrb[28].mxu0 %v18110_v61 }
 0xa72   :  { %15329 = vmatprep.mubr.msk.f32.mxu0 %vm16901_vm11, %v16902_v16 }
 0xb16   :  { %v18183_v6 = vpop.f32.mrb[24].mxu1 }
 0xb17   :  { %v15206_v23 = vpop.f32.mrb[25].mxu1 }
 0xb18   :  { %v18185_v44 = vpop.f32.mrb[26].mxu0 }
 0xb19   :  { %v15236_v49 = vpop.f32.mrb[27].mxu0 }
 0xb42   :  { %v6446_v59 = vpop.f32.mrb[26].mxu1 }
 0xb43   :  { %v16330_v39 = vadd.f32 %v18036_v34, %v6446_v59  ;;  %v15266_v2 = vpop.f32.mrb[27].mxu1 }
 0xb44   :  { %v6900_v20 = vpop.f32.mrb[28].mxu0 }
 0xb45   :  { %v16331_v50 = vadd.f32 %v18041_v7, %v6900_v20  ;;  %v15296_v60 = vpop.f32.mrb[29].mxu0  ;;  %v6904_v21 = vsel %vm5067_vm13, %v16330_v39, -inf }
 0xb46   :  { %6905 = vmax.xlane.f32.xlu1 %v6904_v21 }
 0xb47   :  { %v6907_v31 = vsel %vm5067_vm13, %v16331_v50, -inf }
 0xb48   :  { %6908 = vmax.xlane.f32.xlu0 %v6907_v31 }
 0xbd3   :  { %v6906_v24 = vpop.xlane.xlu1 %6905 }
 0xbd4   :  { %v6910_v57 = vsub.f32 %v16330_v39, %v6906_v24 }
 0xbd5   :  { %v6909_v27 = vpop.xlane.xlu0 %6908 }
 0xbd6   :  { %v6912_v9 = vmul.f32 1.442695, %v6910_v57  ;;  %v6911_v40 = vsub.f32 %v16331_v50, %v6909_v27 }
 0xbd8   :  { %16822 = vpow2.f32 %v6912_v9  ;;  %v6914_v35 = vmul.f32 1.442695, %v6911_v40 }
 0xbda   :  { %16824 = vpow2.f32 %v6914_v35 }
 0xbe2   :  { %v16823_v36 = vpop.eup %16822 }
 0xbe3   :  { %v6916_v47 = vsel %vm5067_vm13, %v16823_v36, 0.0 }
 0xbe4   :  { %v16825_v58 = vpop.eup %16824  ;;  %6917 = vadd.xlane.f32.xlu0 %v6916_v47 }
 0xbe5   :  { %v6919_v45 = vsel %vm5067_vm13, %v16825_v58, 0.0 }
 0xbe6   :  { %6920 = vadd.xlane.f32.xlu1 %v6919_v45 }
 0xbf7   :  { %7379 = vrot.lane.b32.xlu1 %v17970_v48, %s16907_s23 }
 0xbfa   :  { %6926 = vrot.lane.b32.xlu0 %v17965_v43, %s16907_s23 }
 0xbfb   :  { %7832 = vrot.lane.b32.xlu1 %v17974_v25, %s16908_s24 }
 0xbfe   :  { %8286 = vrot.lane.b32.xlu0 %v17977_v62, %s16908_s24 }
 0xbff   :  { %7834 = vrot.lane.b32.xlu1 %v17965_v43, %s16909_s25 }
 0xc02   :  { %8288 = vrot.lane.b32.xlu0 %v17970_v48, %s16909_s25 }
 0xc71   :  { %v6918_v4 = vpop.xlane.xlu0 %6917 }
 0xc72   :  { %16826 = vrcp.f32 %v6918_v4 }
 0xc73   :  { %v6921_v28 = vpop.xlane.xlu1 %6920 }
 0xc74   :  { %16828 = vrcp.f32 %v6921_v28 }
 0xc75   :  { %v6927_v14 = vpop.permute.xlu0 %6926 }
 0xc76   :  { %v6931_v63 = vsel %vm2043_vm9, %v6927_v14, 0 }
 0xc77   :  { %v18200_v13 = vand.u32 4294901760, %v6931_v63  ;;  %v7380_v5 = vpop.permute.xlu1 %7379 }
 0xc78   :  { %v7384_v41 = vsel %vm2043_vm9, %v7380_v5, 0 }
 0xc79   :  { %v18203_v3 = vand.u32 4294901760, %v7384_v41  ;;  %15298 = vmatpush3.msra.mxu1 %v18200_v13  ;;  %v7011_v15 = vsub.f32 %v6931_v63, %v18200_v13  ;;  %v8287_v22 = vpop.permute.xlu0 %8286 }
 0xc7a   :  { %15302 = vmatprep.subr.mxu1 %v16902_v16  ;;  %v8290_v2 = vsel %vm4162_vm12, %v8287_v22, 0 }
 0xc7b   :  { %15328 = vmatpush3.msra.mxu0 %v18203_v3  ;;  %v7464_v12 = vsub.f32 %v7384_v41, %v18203_v3  ;;  %v7012_v61 = vand.u32 4294901760, %v7011_v15  ;;  %v7833_v56 = vpop.permute.xlu1 %7832  ;;  %v18254_v21 = vand.u32 4294901760, %v8290_v2 }
 0xc7c   :  { %v16827_v46 = vpop.eup %16826  ;;  %15332 = vmatprep.subr.mxu0 %v16902_v16  ;;  %v7836_v49 = vsel %vm4162_vm12, %v7833_v56, 0 }
 0xc7d   :  { %v6923_v26 = vmul.f32 %v16827_v46, %v16823_v36  ;;  %v7465_v38 = vand.u32 4294901760, %v7464_v12  ;;  %v7013_v37 = vsub.f32 %v7011_v15, %v7012_v61  ;;  %v8289_v59 = vpop.permute.xlu0 %8288  ;;  %v18246_v20 = vand.u32 4294901760, %v7836_v49 }
 0xc7e   :  { %v16829_v19 = vpop.eup %16828  ;;  %v8292_v50 = vsel %vm4162_vm12, %v8289_v59, 0  ;;  %v8361_v27 = vsub.f32 %v8290_v2, %v18254_v21 }
 0xc7f   :  { %v6925_v52 = vmul.f32 %v16829_v19, %v16825_v58  ;;  %v6929_v8 = vsel %vm1864_vm10, %v6923_v26, 0  ;;  %v7466_v10 = vsub.f32 %v7464_v12, %v7465_v38  ;;  %v7014_v29 = vand.u32 4294901760, %v7013_v37  ;;  %v7835_v23 = vpop.permute.xlu1 %7834 }
 0xc80   :  { %v18212_v42 = vand.u32 4294901760, %v6929_v8  ;;  %v7838_v39 = vsel %vm4162_vm12, %v7835_v23, 0  ;;  %v18257_v31 = vand.u32 4294901760, %v8292_v50  ;;  %v7907_v24 = vsub.f32 %v7836_v49, %v18246_v20 }
 0xc81   :  { %v7382_v51 = vsel %vm1864_vm10, %v6925_v52, 0  ;;  %v7467_v11 = vand.u32 4294901760, %v7466_v10  ;;  %v18250_v60 = vand.u32 4294901760, %v7838_v39  ;;  %v8362_v36 = vand.u32 4294901760, %v8361_v27 }
 0xc82   :  { %v7000_v17 = vsub.f32 %v6929_v8, %v18212_v42  ;;  %v18216_v54 = vand.u32 4294901760, %v7382_v51  ;;  %v8372_v9 = vsub.f32 %v8292_v50, %v18257_v31  ;;  %v7908_v40 = vand.u32 4294901760, %v7907_v24 }
 0xc83   :  { %v7918_v57 = vsub.f32 %v7838_v39, %v18250_v60  ;;  %v8363_v4 = vsub.f32 %v8361_v27, %v8362_v36 }
 0xc84   :  { %v7001_v53 = vand.u32 4294901760, %v7000_v17  ;;  %v7453_v18 = vsub.f32 %v7382_v51, %v18216_v54  ;;  %v8373_v47 = vand.u32 4294901760, %v8372_v9  ;;  %v7909_v58 = vsub.f32 %v7907_v24, %v7908_v40 }
 0xc85   :  { %v7919_v35 = vand.u32 4294901760, %v7918_v57 }
 0xc86   :  { %v7002_v33 = vsub.f32 %v7000_v17, %v7001_v53  ;;  %v7454_v0 = vand.u32 4294901760, %v7453_v18  ;;  %v8374_v28 = vsub.f32 %v8372_v9, %v8373_v47  ;;  %v7910_v14 = vand.u32 4294901760, %v7909_v58 }
 0xc87   :  { %v7920_v45 = vsub.f32 %v7918_v57, %v7919_v35 }
 0xc88   :  { %v7003_v1 = vand.u32 4294901760, %v7002_v33  ;;  %v7455_v55 = vsub.f32 %v7453_v18, %v7454_v0  ;;  %v8375_v5 = vand.u32 4294901760, %v8374_v28 }
 0xc89   :  { %v7921_v63 = vand.u32 4294901760, %v7920_v45 }
 0xc8a   :  { %15300 = vmatmul.mubr.f32.vlgmr.msra.gmra.mrb[28].mxu1 %v7003_v1  ;;  %v7456_v32 = vand.u32 4294901760, %v7455_v55 }
 0xc8b   :  { %15303 = vmatpush3.msra.mxu1 %v7014_v29  ;;  %15304 = vmatprep.mubr.msk.f32.mxu1 %vm16901_vm11, %v16902_v16 }
 0xc8c   :  { %15330 = vmatmul.mubr.f32.vlgmr.msra.gmra.mrb[30].mxu0 %v7456_v32  ;;  %15307 = vmatprep.subr.mxu1 %v16902_v16 }
 0xc8d   :  { %15333 = vmatpush3.msra.mxu0 %v7467_v11  ;;  %15334 = vmatprep.mubr.msk.f32.mxu0 %vm16901_vm11, %v16902_v16 }
 0xc8e   :  { %15337 = vmatprep.subr.mxu0 %v16902_v16 }
 0xc92   :  { %15305 = vmatmul.mubr.f32.vlgmr.msra.gmra.mrb[28].mxu1 %v18212_v42 }
 0xc93   :  { %15308 = vmatpush3.msra.mxu1 %v7011_v15  ;;  %15309 = vmatprep.mubr.msk.f32.mxu1 %vm16901_vm11, %v16902_v16 }
 0xc94   :  { %15335 = vmatmul.mubr.f32.vlgmr.msra.gmra.mrb[30].mxu0 %v18216_v54  ;;  %15312 = vmatprep.subr.mxu1 %v16902_v16 }
 0xc95   :  { %15338 = vmatpush3.msra.mxu0 %v7464_v12  ;;  %15339 = vmatprep.mubr.msk.f32.mxu0 %vm16901_vm11, %v16902_v16 }
 0xc96   :  { %15342 = vmatprep.subr.mxu0 %v16902_v16 }
 0xc9a   :  { %15310 = vmatmul.mubr.f32.vlgmr.msra.gmra.mrb[28].mxu1 %v7000_v17 }
 0xc9b   :  { %15313 = vmatpush3.msra.mxu1 %v18200_v13  ;;  %15314 = vmatprep.mubr.msk.f32.mxu1 %vm16901_vm11, %v16902_v16 }
 0xc9c   :  { %15340 = vmatmul.mubr.f32.vlgmr.msra.gmra.mrb[30].mxu0 %v7453_v18  ;;  %15317 = vmatprep.subr.mxu1 %v16902_v16 }
 0xc9d   :  { %15343 = vmatpush3.msra.mxu0 %v18203_v3  ;;  %15344 = vmatprep.mubr.msk.f32.mxu0 %vm16901_vm11, %v16902_v16 }
 0xc9e   :  { %15347 = vmatprep.subr.mxu0 %v16902_v16 }
 0xca2   :  { %15315 = vmatmul.mubr.f32.vlgmr.msra.gmra.mrb[28].mxu1 %v7001_v53 }
 0xca3   :  { %15318 = vmatpush3.msra.mxu1 %v7012_v61  ;;  %15319 = vmatprep.mubr.msk.f32.mxu1 %vm16901_vm11, %v16902_v16 }
 0xca4   :  { %15345 = vmatmul.mubr.f32.vlgmr.msra.gmra.mrb[30].mxu0 %v7454_v0  ;;  %15322 = vmatprep.subr.mxu1 %v16902_v16 }
 0xca5   :  { %15348 = vmatpush3.msra.mxu0 %v7465_v38  ;;  %15349 = vmatprep.mubr.msk.f32.mxu0 %vm16901_vm11, %v16902_v16 }
 0xca6   :  { %15352 = vmatprep.subr.mxu0 %v16902_v16 }
 0xcaa   :  { %15320 = vmatmul.mubr.f32.vlgmr.msra.gmra.mrb[28].mxu1 %v18212_v42 }
 0xcab   :  { %15323 = vmatpush3.msra.mxu1 %v18200_v13  ;;  %15324 = vmatprep.mubr.msk.f32.mxu1 %vm16901_vm11, %v16902_v16  ;;  %v8364_v13 = vand.u32 4294901760, %v8363_v4 }
 0xcac   :  { %15350 = vmatmul.mubr.f32.vlgmr.msra.gmra.mrb[30].mxu0 %v18216_v54  ;;  %15357 = vmatprep.subr.mxu1 %v16902_v16 }
 0xcad   :  { %15353 = vmatpush3.msra.mxu0 %v18203_v3  ;;  %15354 = vmatprep.mubr.msk.f32.mxu0 %vm16901_vm11, %v16902_v16 }
 0xcae   :  { %15387 = vmatprep.subr.mxu0 %v16902_v16 }
 0xcb2   :  { %15325 = vmatmul.mubr.f32.vlgmr.msra.gmra.mrb[28].mxu1 %v18212_v42 }
 0xcb3   :  { %15358 = vmatpush3.xpose.msra.mxu1 %v18250_v60  ;;  %15359 = vmatprep.mubr.msk.f32.mxu1 %vm16901_vm11, %v16902_v16 }
 0xcb4   :  { %15355 = vmatmul.mubr.f32.vlgmr.msra.gmra.mrb[30].mxu0 %v18216_v54  ;;  %15362 = vmatprep.subr.mxu1 %v16902_v16 }
 0xcb5   :  { %15388 = vmatpush3.xpose.msra.mxu0 %v18257_v31  ;;  %15389 = vmatprep.mubr.msk.f32.mxu0 %vm16901_vm11, %v16902_v16 }
 0xcb6   :  { %15360 = vmatmul.mubr.f32.vlgmr.msra.gmra.mrb[30].mxu1 %v7910_v14  ;;  %15392 = vmatprep.subr.mxu0 %v16902_v16 }
 0xcb7   :  { %15363 = vmatpush3.xpose.msra.mxu1 %v7921_v63  ;;  %15364 = vmatprep.mubr.msk.f32.mxu1 %vm16901_vm11, %v16902_v16 }
 0xcb8   :  { %15390 = vmatmul.mubr.f32.vlgmr.msra.gmra.mrb[32].mxu0 %v8364_v13  ;;  %15367 = vmatprep.subr.mxu1 %v16902_v16 }
 0xcb9   :  { %15393 = vmatpush3.xpose.msra.mxu0 %v8375_v5  ;;  %15394 = vmatprep.mubr.msk.f32.mxu0 %vm16901_vm11, %v16902_v16 }
 0xcba   :  { %15397 = vmatprep.subr.mxu0 %v16902_v16 }
 0xcbe   :  { %15365 = vmatmul.mubr.f32.vlgmr.msra.gmra.mrb[30].mxu1 %v18246_v20 }
 0xcbf   :  { %15368 = vmatpush3.xpose.msra.mxu1 %v7918_v57  ;;  %15369 = vmatprep.mubr.msk.f32.mxu1 %vm16901_vm11, %v16902_v16 }
 0xcc0   :  { %15395 = vmatmul.mubr.f32.vlgmr.msra.gmra.mrb[32].mxu0 %v18254_v21  ;;  %15372 = vmatprep.subr.mxu1 %v16902_v16 }
 0xcc1   :  { %15398 = vmatpush3.xpose.msra.mxu0 %v8372_v9  ;;  %15399 = vmatprep.mubr.msk.f32.mxu0 %vm16901_vm11, %v16902_v16 }
 0xcc2   :  { %15402 = vmatprep.subr.mxu0 %v16902_v16 }
 0xcc6   :  { %15370 = vmatmul.mubr.f32.vlgmr.msra.gmra.mrb[30].mxu1 %v7907_v24 }
 0xcc7   :  { %15373 = vmatpush3.xpose.msra.mxu1 %v18250_v60  ;;  %15374 = vmatprep.mubr.msk.f32.mxu1 %vm16901_vm11, %v16902_v16 }
 0xcc8   :  { %15400 = vmatmul.mubr.f32.vlgmr.msra.gmra.mrb[32].mxu0 %v8361_v27  ;;  %15377 = vmatprep.subr.mxu1 %v16902_v16 }
 0xcc9   :  { %15403 = vmatpush3.xpose.msra.mxu0 %v18257_v31  ;;  %15404 = vmatprep.mubr.msk.f32.mxu0 %vm16901_vm11, %v16902_v16 }
 0xcca   :  { %15407 = vmatprep.subr.mxu0 %v16902_v16 }
 0xcce   :  { %15375 = vmatmul.mubr.f32.vlgmr.msra.gmra.mrb[30].mxu1 %v7908_v40 }
 0xccf   :  { %15378 = vmatpush3.xpose.msra.mxu1 %v7919_v35  ;;  %15379 = vmatprep.mubr.msk.f32.mxu1 %vm16901_vm11, %v16902_v16 }
 0xcd0   :  { %15405 = vmatmul.mubr.f32.vlgmr.msra.gmra.mrb[32].mxu0 %v8362_v36  ;;  %15382 = vmatprep.subr.mxu1 %v16902_v16 }
 0xcd1   :  { %15408 = vmatpush3.xpose.msra.mxu0 %v8373_v47  ;;  %15409 = vmatprep.mubr.msk.f32.mxu0 %vm16901_vm11, %v16902_v16 }
 0xcd2   :  { %15412 = vmatprep.subr.mxu0 %v16902_v16 }
 0xcd6   :  { %15380 = vmatmul.mubr.f32.vlgmr.msra.gmra.mrb[30].mxu1 %v18246_v20 }
 0xcd7   :  { %15383 = vmatpush3.xpose.msra.mxu1 %v18250_v60  ;;  %15384 = vmatprep.mubr.msk.f32.mxu1 %vm16901_vm11, %v16902_v16 }
 0xcd8   :  { %15410 = vmatmul.mubr.f32.vlgmr.msra.gmra.mrb[32].mxu0 %v18254_v21  ;;  %15417 = vmatprep.subr.mxu1 %v16902_v16 }
 0xcd9   :  { %15413 = vmatpush3.xpose.msra.mxu0 %v18257_v31  ;;  %15414 = vmatprep.mubr.msk.f32.mxu0 %vm16901_vm11, %v16902_v16 }
 0xcda   :  { %15447 = vmatprep.subr.mxu0 %v16902_v16 }
 0xcde   :  { %15385 = vmatmul.mubr.f32.vlgmr.msra.gmra.mrb[30].mxu1 %v18246_v20 }
 0xcdf   :  { %15419 = vmatprep.mubr.msk.f32.mxu1 %vm16901_vm11, %v16902_v16 }
 0xce0   :  { %15415 = vmatmul.mubr.f32.vlgmr.msra.gmra.mrb[32].mxu0 %v18254_v21 }
 0xce1   :  { %15449 = vmatprep.mubr.msk.f32.mxu0 %vm16901_vm11, %v16902_v16 }
 0xd85   :  { %v18327_v41 = vpop.f32.mrb[28].mxu1 }
 0xd86   :  { %v15326_v3 = vpop.f32.mrb[29].mxu1 }
 0xd87   :  { %v18329_v46 = vpop.f32.mrb[30].mxu0 }
 0xd88   :  { %v15356_v26 = vpop.f32.mrb[31].mxu0 }
 0xdb1   :  { %v8282_v19 = vpop.f32.mrb[30].mxu1 }
 0xdb2   :  { %v16332_v15 = vadd.f32 %v18036_v34, %v8282_v19  ;;  %v15386_v52 = vpop.f32.mrb[31].mxu1 }
 0xdb3   :  { %v8736_v12 = vpop.f32.mrb[32].mxu0 }
 0xdb4   :  { %v16333_v8 = vadd.f32 %v18041_v7, %v8736_v12  ;;  %v15416_v42 = vpop.f32.mrb[33].mxu0  ;;  %v8740_v61 = vsel %vm5067_vm13, %v16332_v15, -inf }
 0xdb5   :  { %8741 = vmax.xlane.f32.xlu1 %v8740_v61 }
 0xdb6   :  { %v8743_v51 = vsel %vm5067_vm13, %v16333_v8, -inf }
 0xdb7   :  { %8744 = vmax.xlane.f32.xlu0 %v8743_v51 }
 0xe42   :  { %v8742_v17 = vpop.xlane.xlu1 %8741 }
 0xe43   :  { %v8746_v54 = vsub.f32 %v16332_v15, %v8742_v17 }
 0xe44   :  { %v8745_v38 = vpop.xlane.xlu0 %8744 }
 0xe45   :  { %v8748_v53 = vmul.f32 1.442695, %v8746_v54  ;;  %v8747_v18 = vsub.f32 %v16333_v8, %v8745_v38 }
 0xe47   :  { %16830 = vpow2.f32 %v8748_v53  ;;  %v8750_v37 = vmul.f32 1.442695, %v8747_v18 }
 0xe49   :  { %16832 = vpow2.f32 %v8750_v37 }
 0xe51   :  { %v16831_v34 = vpop.eup %16830 }
 0xe52   :  { %v8752_v33 = vsel %vm5067_vm13, %v16831_v34, 0.0 }
 0xe53   :  { %v16833_v0 = vpop.eup %16832  ;;  %8753 = vadd.xlane.f32.xlu0 %v8752_v33 }
 0xe54   :  { %v8755_v7 = vsel %vm5067_vm13, %v16833_v0, 0.0 }
 0xe55   :  { %8756 = vadd.xlane.f32.xlu1 %v8755_v7 }
 0xe66   :  { %9215 = vrot.lane.b32.xlu1 %v17970_v48, %s16910_s26 }
 0xe69   :  { %8762 = vrot.lane.b32.xlu0 %v17965_v43, %s16910_s26 }
 0xe6a   :  { %9668 = vrot.lane.b32.xlu1 %v17974_v25, %s16911_s27 }
 0xe6d   :  { %10122 = vrot.lane.b32.xlu0 %v17977_v62, %s16911_s27 }
 0xe6e   :  { %9670 = vrot.lane.b32.xlu1 %v17965_v43, %s16912_s28 }
 0xe71   :  { %10124 = vrot.lane.b32.xlu0 %v17970_v48, %s16912_s28 }
 0xee0   :  { %v8754_v10 = vpop.xlane.xlu0 %8753 }
 0xee1   :  { %16834 = vrcp.f32 %v8754_v10 }
 0xee2   :  { %v8757_v1 = vpop.xlane.xlu1 %8756 }
 0xee3   :  { %16836 = vrcp.f32 %v8757_v1 }
 0xee4   :  { %v8763_v55 = vpop.permute.xlu0 %8762 }
 0xee5   :  { %v8767_v29 = vsel %vm2043_vm9, %v8763_v55, 0 }
 0xee6   :  { %v18344_v32 = vand.u32 4294901760, %v8767_v29  ;;  %v9216_v11 = vpop.permute.xlu1 %9215 }
 0xee7   :  { %v9220_v56 = vsel %vm2043_vm9, %v9216_v11, 0 }
 0xee8   :  { %v18347_v25 = vand.u32 4294901760, %v9220_v56  ;;  %15418 = vmatpush3.msra.mxu1 %v18344_v32  ;;  %v8847_v49 = vsub.f32 %v8767_v29, %v18344_v32  ;;  %v10123_v63 = vpop.permute.xlu0 %10122 }
 0xee9   :  { %15422 = vmatprep.subr.mxu1 %v16902_v16  ;;  %v10126_v19 = vsel %vm4162_vm12, %v10123_v63, 0 }
 0xeea   :  { %15448 = vmatpush3.msra.mxu0 %v18347_v25  ;;  %v9300_v39 = vsub.f32 %v9220_v56, %v18347_v25  ;;  %v8848_v50 = vand.u32 4294901760, %v8847_v49  ;;  %v9669_v14 = vpop.permute.xlu1 %9668  ;;  %v18398_v8 = vand.u32 4294901760, %v10126_v19 }
 0xeeb   :  { %v16835_v62 = vpop.eup %16834  ;;  %15452 = vmatprep.subr.mxu0 %v16902_v16  ;;  %v9672_v5 = vsel %vm4162_vm12, %v9669_v14, 0 }
 0xeec   :  { %v8759_v22 = vmul.f32 %v16835_v62, %v16831_v34  ;;  %v9301_v24 = vand.u32 4294901760, %v9300_v39  ;;  %v8849_v9 = vsub.f32 %v8847_v49, %v8848_v50  ;;  %v10125_v3 = vpop.permute.xlu0 %10124  ;;  %v18390_v15 = vand.u32 4294901760, %v9672_v5 }
 0xeed   :  { %v16837_v23 = vpop.eup %16836  ;;  %v10128_v52 = vsel %vm4162_vm12, %v10125_v3, 0  ;;  %v10197_v17 = vsub.f32 %v10126_v19, %v18398_v8 }
 0xeee   :  { %v8761_v59 = vmul.f32 %v16837_v23, %v16833_v0  ;;  %v8765_v2 = vsel %vm1864_vm10, %v8759_v22, 0  ;;  %v9302_v36 = vsub.f32 %v9300_v39, %v9301_v24  ;;  %v8850_v45 = vand.u32 4294901760, %v8849_v9  ;;  %v9671_v13 = vpop.permute.xlu1 %9670  ;;  %v16862_v22 = vld [vmem:[%s19088_s2] ss:$0 sm:$0xff] }
 0xeef   :  { %v18356_v20 = vand.u32 4294901760, %v8765_v2  ;;  %v9674_v26 = vsel %vm4162_vm12, %v9671_v13, 0  ;;  %v18401_v42 = vand.u32 4294901760, %v10128_v52  ;;  %v9743_v61 = vsub.f32 %v9672_v5, %v18390_v15 }
 0xef0   :  { %v9218_v60 = vsel %vm1864_vm10, %v8761_v59, 0  ;;  %v9303_v28 = vand.u32 4294901760, %v9302_v36  ;;  %v18394_v12 = vand.u32 4294901760, %v9674_v26  ;;  %v10198_v18 = vand.u32 4294901760, %v10197_v17 }
 0xef1   :  { %v8836_v21 = vsub.f32 %v8765_v2, %v18356_v20  ;;  %v18360_v31 = vand.u32 4294901760, %v9218_v60  ;;  %v10208_v54 = vsub.f32 %v10128_v52, %v18401_v42  ;;  %v9744_v38 = vand.u32 4294901760, %v9743_v61 }
 0xef2   :  { %v9754_v51 = vsub.f32 %v9674_v26, %v18394_v12  ;;  %v10199_v0 = vsub.f32 %v10197_v17, %v10198_v18 }
 0xef3   :  { %v8837_v57 = vand.u32 4294901760, %v8836_v21  ;;  %v9289_v27 = vsub.f32 %v9218_v60, %v18360_v31  ;;  %v10209_v37 = vand.u32 4294901760, %v10208_v54  ;;  %v9745_v34 = vsub.f32 %v9743_v61, %v9744_v38 }
 0xef4   :  { %v9755_v53 = vand.u32 4294901760, %v9754_v51  ;;  %v10200_v55 = vand.u32 4294901760, %v10199_v0 }
 0xef5   :  { %v8838_v40 = vsub.f32 %v8836_v21, %v8837_v57  ;;  %v9290_v35 = vand.u32 4294901760, %v9289_v27  ;;  %v10210_v7 = vsub.f32 %v10208_v54, %v10209_v37  ;;  %v9746_v10 = vand.u32 4294901760, %v9745_v34 }
 0xef6   :  { %v9756_v33 = vsub.f32 %v9754_v51, %v9755_v53 }
 0xef7   :  { %v8839_v47 = vand.u32 4294901760, %v8838_v40  ;;  %v9291_v58 = vsub.f32 %v9289_v27, %v9290_v35  ;;  %v10211_v29 = vand.u32 4294901760, %v10210_v7 }
 0xef8   :  { %v9757_v1 = vand.u32 4294901760, %v9756_v33 }
 0xef9   :  { %15420 = vmatmul.mubr.f32.vlgmr.msra.gmra.mrb[32].mxu1 %v8839_v47  ;;  %v9292_v4 = vand.u32 4294901760, %v9291_v58 }
 0xefa   :  { %15423 = vmatpush3.msra.mxu1 %v8850_v45  ;;  %15424 = vmatprep.mubr.msk.f32.mxu1 %vm16901_vm11, %v16902_v16 }
 0xefb   :  { %15450 = vmatmul.mubr.f32.vlgmr.msra.gmra.mrb[34].mxu0 %v9292_v4  ;;  %15427 = vmatprep.subr.mxu1 %v16902_v16 }
 0xefc   :  { %15453 = vmatpush3.msra.mxu0 %v9303_v28  ;;  %15454 = vmatprep.mubr.msk.f32.mxu0 %vm16901_vm11, %v16902_v16 }
 0xefd   :  { %15457 = vmatprep.subr.mxu0 %v16902_v16 }
 0xf01   :  { %15425 = vmatmul.mubr.f32.vlgmr.msra.gmra.mrb[32].mxu1 %v18356_v20 }
 0xf02   :  { %15428 = vmatpush3.msra.mxu1 %v8847_v49  ;;  %15429 = vmatprep.mubr.msk.f32.mxu1 %vm16901_vm11, %v16902_v16 }
 0xf03   :  { %15455 = vmatmul.mubr.f32.vlgmr.msra.gmra.mrb[34].mxu0 %v18360_v31  ;;  %15432 = vmatprep.subr.mxu1 %v16902_v16 }
 0xf04   :  { %15458 = vmatpush3.msra.mxu0 %v9300_v39  ;;  %15459 = vmatprep.mubr.msk.f32.mxu0 %vm16901_vm11, %v16902_v16  ;;  %v16863_v39 = vld [vmem:[%s19088_s2 + $0x1] ss:$0 sm:$0xff]  ;;  %s16913_s2 = smov 40  }
 0xf05   :  { %15462 = vmatprep.subr.mxu0 %v16902_v16 }
 0xf09   :  { %15430 = vmatmul.mubr.f32.vlgmr.msra.gmra.mrb[32].mxu1 %v8836_v21 }
 0xf0a   :  { %15433 = vmatpush3.msra.mxu1 %v18344_v32  ;;  %15434 = vmatprep.mubr.msk.f32.mxu1 %vm16901_vm11, %v16902_v16 }
 0xf0b   :  { %15460 = vmatmul.mubr.f32.vlgmr.msra.gmra.mrb[34].mxu0 %v9289_v27  ;;  %15437 = vmatprep.subr.mxu1 %v16902_v16 }
 0xf0c   :  { %15463 = vmatpush3.msra.mxu0 %v18347_v25  ;;  %15464 = vmatprep.mubr.msk.f32.mxu0 %vm16901_vm11, %v16902_v16 }
 0xf0d   :  { %15467 = vmatprep.subr.mxu0 %v16902_v16 }
 0xf11   :  { %15435 = vmatmul.mubr.f32.vlgmr.msra.gmra.mrb[32].mxu1 %v8837_v57 }
 0xf12   :  { %15438 = vmatpush3.msra.mxu1 %v8848_v50  ;;  %15439 = vmatprep.mubr.msk.f32.mxu1 %vm16901_vm11, %v16902_v16 }
 0xf13   :  { %15465 = vmatmul.mubr.f32.vlgmr.msra.gmra.mrb[34].mxu0 %v9290_v35  ;;  %15442 = vmatprep.subr.mxu1 %v16902_v16 }
 0xf14   :  { %15468 = vmatpush3.msra.mxu0 %v9301_v24  ;;  %15469 = vmatprep.mubr.msk.f32.mxu0 %vm16901_vm11, %v16902_v16 }
 0xf15   :  { %15472 = vmatprep.subr.mxu0 %v16902_v16 }
 0xf19   :  { %15440 = vmatmul.mubr.f32.vlgmr.msra.gmra.mrb[32].mxu1 %v18356_v20 }
 0xf1a   :  { %15443 = vmatpush3.msra.mxu1 %v18344_v32  ;;  %15444 = vmatprep.mubr.msk.f32.mxu1 %vm16901_vm11, %v16902_v16 }
 0xf1b   :  { %15470 = vmatmul.mubr.f32.vlgmr.msra.gmra.mrb[34].mxu0 %v18360_v31  ;;  %15477 = vmatprep.subr.mxu1 %v16902_v16 }
 0xf1c   :  { %15473 = vmatpush3.msra.mxu0 %v18347_v25  ;;  %15474 = vmatprep.mubr.msk.f32.mxu0 %vm16901_vm11, %v16902_v16 }
 0xf1d   :  { %15507 = vmatprep.subr.mxu0 %v16902_v16 }
 0xf21   :  { %15445 = vmatmul.mubr.f32.vlgmr.msra.gmra.mrb[32].mxu1 %v18356_v20 }
 0xf22   :  { %15478 = vmatpush3.xpose.msra.mxu1 %v18394_v12  ;;  %15479 = vmatprep.mubr.msk.f32.mxu1 %vm16901_vm11, %v16902_v16 }
 0xf23   :  { %15475 = vmatmul.mubr.f32.vlgmr.msra.gmra.mrb[34].mxu0 %v18360_v31  ;;  %15482 = vmatprep.subr.mxu1 %v16902_v16 }
 0xf24   :  { %15508 = vmatpush3.xpose.msra.mxu0 %v18401_v42  ;;  %15509 = vmatprep.mubr.msk.f32.mxu0 %vm16901_vm11, %v16902_v16 }
 0xf25   :  { %15480 = vmatmul.mubr.f32.vlgmr.msra.gmra.mrb[34].mxu1 %v9746_v10  ;;  %15512 = vmatprep.subr.mxu0 %v16902_v16  ;;  %v11537_v10 = vld [vmem:[#allocation2 + $0xc0] sm:$0xff] }
 0xf26   :  { %15483 = vmatpush3.xpose.msra.mxu1 %v9757_v1  ;;  %15484 = vmatprep.mubr.msk.f32.mxu1 %vm16901_vm11, %v16902_v16  ;;  %v11538_v1 = vld [vmem:[#allocation2 + $0xc8] sm:$0xff] }
 0xf27   :  { %15510 = vmatmul.mubr.f32.vlgmr.msra.gmra.mrb[36].mxu0 %v10200_v55  ;;  %15487 = vmatprep.subr.mxu1 %v16902_v16  ;;  %v11552_v55 = vand.u32 4294901760, %v11537_v10 }
 0xf28   :  { %15513 = vmatpush3.xpose.msra.mxu0 %v10211_v29  ;;  %15514 = vmatprep.mubr.msk.f32.mxu0 %vm16901_vm11, %v16902_v16  ;;  %v11555_v29 = vand.u32 4294901760, %v11538_v1 }
 0xf29   :  { %15517 = vmatprep.subr.mxu0 %v16902_v16 }
 0xf2d   :  { %15485 = vmatmul.mubr.f32.vlgmr.msra.gmra.mrb[34].mxu1 %v18390_v15 }
 0xf2e   :  { %15488 = vmatpush3.xpose.msra.mxu1 %v9754_v51  ;;  %15489 = vmatprep.mubr.msk.f32.mxu1 %vm16901_vm11, %v16902_v16 }
 0xf2f   :  { %15515 = vmatmul.mubr.f32.vlgmr.msra.gmra.mrb[36].mxu0 %v18398_v8  ;;  %15492 = vmatprep.subr.mxu1 %v16902_v16 }
 0xf30   :  { %15518 = vmatpush3.xpose.msra.mxu0 %v10208_v54  ;;  %15519 = vmatprep.mubr.msk.f32.mxu0 %vm16901_vm11, %v16902_v16 }
 0xf31   :  { %15522 = vmatprep.subr.mxu0 %v16902_v16 }
 0xf35   :  { %15490 = vmatmul.mubr.f32.vlgmr.msra.gmra.mrb[34].mxu1 %v9743_v61 }
 0xf36   :  { %15493 = vmatpush3.xpose.msra.mxu1 %v18394_v12  ;;  %15494 = vmatprep.mubr.msk.f32.mxu1 %vm16901_vm11, %v16902_v16 }
 0xf37   :  { %15520 = vmatmul.mubr.f32.vlgmr.msra.gmra.mrb[36].mxu0 %v10197_v17  ;;  %15497 = vmatprep.subr.mxu1 %v16902_v16 }
 0xf38   :  { %15523 = vmatpush3.xpose.msra.mxu0 %v18401_v42  ;;  %15524 = vmatprep.mubr.msk.f32.mxu0 %vm16901_vm11, %v16902_v16 }
 0xf39   :  { %15527 = vmatprep.subr.mxu0 %v16902_v16 }
 0xf3d   :  { %15495 = vmatmul.mubr.f32.vlgmr.msra.gmra.mrb[34].mxu1 %v9744_v38 }
 0xf3e   :  { %15498 = vmatpush3.xpose.msra.mxu1 %v9755_v53  ;;  %15499 = vmatprep.mubr.msk.f32.mxu1 %vm16901_vm11, %v16902_v16 }
 0xf3f   :  { %15525 = vmatmul.mubr.f32.vlgmr.msra.gmra.mrb[36].mxu0 %v10198_v18  ;;  %15502 = vmatprep.subr.mxu1 %v16902_v16 }
 0xf40   :  { %15528 = vmatpush3.xpose.msra.mxu0 %v10209_v37  ;;  %15529 = vmatprep.mubr.msk.f32.mxu0 %vm16901_vm11, %v16902_v16 }
 0xf41   :  { %15532 = vmatprep.subr.mxu0 %v16902_v16 }
 0xf45   :  { %15500 = vmatmul.mubr.f32.vlgmr.msra.gmra.mrb[34].mxu1 %v18390_v15 }
 0xf46   :  { %15503 = vmatpush3.xpose.msra.mxu1 %v18394_v12  ;;  %15504 = vmatprep.mubr.msk.f32.mxu1 %vm16901_vm11, %v16902_v16 }
 0xf47   :  { %15530 = vmatmul.mubr.f32.vlgmr.msra.gmra.mrb[36].mxu0 %v18398_v8  ;;  %15537 = vmatprep.subr.mxu1 %v16902_v16 }
 0xf48   :  { %15533 = vmatpush3.xpose.msra.mxu0 %v18401_v42  ;;  %15534 = vmatprep.mubr.msk.f32.mxu0 %vm16901_vm11, %v16902_v16 }
 0xf49   :  { %15567 = vmatprep.subr.mxu0 %v16902_v16 }
 0xf4d   :  { %15505 = vmatmul.mubr.f32.vlgmr.msra.gmra.mrb[34].mxu1 %v18390_v15 }
 0xf4e   :  { %15539 = vmatprep.mubr.msk.f32.mxu1 %vm16901_vm11, %v16902_v16 }
 0xf4f   :  { %15535 = vmatmul.mubr.f32.vlgmr.msra.gmra.mrb[36].mxu0 %v18398_v8 }
 0xf50   :  { %15569 = vmatprep.mubr.msk.f32.mxu0 %vm16901_vm11, %v16902_v16 }
 0xff4   :  { %v9211_v32 = vpop.f32.mrb[32].mxu1 }
 0xff5   :  { %v15446_v11 = vpop.f32.mrb[33].mxu1 }
 0xff6   :  { %v9664_v56 = vpop.f32.mrb[34].mxu0  ;;  %v18538_v11 = vsub.f32 %v11537_v10, %v11552_v55 }
 0xff7   :  { %v15476_v25 = vpop.f32.mrb[35].mxu0 }
 0xff8   :  { %v11539_v25 = vld [vmem:[#allocation2 + $0xd0] sm:$0xff] }
0x1020   :  { %v10118_v62 = vpop.f32.mrb[34].mxu1 }
0x1021   :  { %v16334_v23 = vadd.f32 %v16862_v22, %v10118_v62  ;;  %v15506_v49 = vpop.f32.mrb[35].mxu1  ;;  %v11540_v62 = vld [vmem:[#allocation2 + $0xd8] sm:$0xff]  ;;  %v11558_v22 = vand.u32 4294901760, %v11539_v25 }
0x1022   :  { %v10572_v59 = vpop.f32.mrb[36].mxu0  ;;  %v11633_v49 = vand.u32 4294901760, %v18538_v11 }
0x1023   :  { %v16335_v2 = vadd.f32 %v16863_v39, %v10572_v59  ;;  %v15536_v20 = vpop.f32.mrb[37].mxu0  ;;  %v10576_v50 = vsel %vm5067_vm13, %v16334_v23, -inf }
0x1024   :  { %10577 = vmax.xlane.f32.xlu1 %v10576_v50 }
0x1025   :  { %v10579_v60 = vsel %vm5067_vm13, %v16335_v2, -inf }
0x1026   :  { %10580 = vmax.xlane.f32.xlu0 %v10579_v60  ;;  %v11634_v60 = vsub.f32 %v18538_v11, %v11633_v49 }
0x10b1   :  { %v10578_v21 = vpop.xlane.xlu1 %10577 }
0x10b2   :  { %v10582_v31 = vsub.f32 %v16334_v23, %v10578_v21  ;;  %v11561_v23 = vand.u32 4294901760, %v11540_v62 }
0x10b3   :  { %v10581_v24 = vpop.xlane.xlu0 %10580 }
0x10b4   :  { %v10584_v57 = vmul.f32 1.442695, %v10582_v31  ;;  %v10583_v27 = vsub.f32 %v16335_v2, %v10581_v24  ;;  %v18546_v39 = vpack.c.bf16 %v11561_v23, %v11558_v22  ;;  %v11646_v2 = vsub.f32 %v11539_v25, %v11558_v22 }
0x10b5   :  { %v11653_v20 = vsub.f32 %v11540_v62, %v11561_v23 }
0x10b6   :  { %16838 = vpow2.f32 %v10584_v57  ;;  %v10586_v9 = vmul.f32 1.442695, %v10583_v27  ;;  %v11635_v57 = vand.u32 4294901760, %v11634_v60 }
0x10b8   :  { %16840 = vpow2.f32 %v10586_v9  ;;  %v11647_v9 = vand.u32 4294901760, %v11646_v2 }
0x10c0   :  { %v16839_v40 = vpop.eup %16838 }
0x10c1   :  { %v10588_v35 = vsel %vm5067_vm13, %v16839_v40, 0.0 }
0x10c2   :  { %v16841_v36 = vpop.eup %16840  ;;  %10589 = vadd.xlane.f32.xlu0 %v10588_v35 }
0x10c3   :  { %v10591_v47 = vsel %vm5067_vm13, %v16841_v36, 0.0 }
0x10c4   :  { %10592 = vadd.xlane.f32.xlu1 %v10591_v47  ;;  %v11648_v47 = vsub.f32 %v11646_v2, %v11647_v9 }
0x10d5   :  { %11051 = vrot.lane.b32.xlu1 %v17970_v48, %s16913_s2 }
0x10d8   :  { %10598 = vrot.lane.b32.xlu0 %v17965_v43, %s16913_s2 }
0x10d9   :  { %11506 = vrot.lane.b32.xlu1 %v18327_v41, %s16898_s8 }
0x10dc   :  { %11508 = vrot.lane.b32.xlu0 %v18329_v46, %s16898_s8  ;;  %s16915_s8 = smov 24  }
0x10dd   :  { %11514 = vrot.lane.b32.xlu1 %v9211_v32, %s16914_s10  ;;  %v18536_v32 = vpack.c.bf16 %v11555_v29, %v11552_v55 }
0x10e0   :  { %11516 = vrot.lane.b32.xlu0 %v9664_v56, %s16914_s10  ;;  %v18540_v56 = vsub.f32 %v11538_v1, %v11555_v29 }
0x10e2   :  { %v11640_v59 = vand.u32 4294901760, %v18540_v56 }
0x10e4   :  { %v11641_v21 = vsub.f32 %v18540_v56, %v11640_v59 }
0x10e6   :  { %v11642_v27 = vand.u32 4294901760, %v11641_v21  ;;  %v16865_v21 = vld [vmem:[%s19086_s0 + $0x8] sm:$0xff] }
0x114f   :  { %v10590_v58 = vpop.xlane.xlu0 %10589 }
0x1150   :  { %16842 = vrcp.f32 %v10590_v58 }
0x1151   :  { %v10593_v45 = vpop.xlane.xlu1 %10592 }
0x1152   :  { %16844 = vrcp.f32 %v10593_v45  ;;  %v11649_v45 = vand.u32 4294901760, %v11648_v47 }
0x1153   :  { %v10599_v4 = vpop.permute.xlu0 %10598 }
0x1154   :  { %v10603_v28 = vsel %vm2043_vm9, %v10599_v4, 0 }
0x1155   :  { %v18488_v14 = vand.u32 4294901760, %v10603_v28  ;;  %v11052_v48 = vpop.permute.xlu1 %11051 }
0x1156   :  { %v11056_v43 = vsel %vm2043_vm9, %v11052_v48, 0  ;;  %v16135_v48 = vpack.c.bf16 %v11653_v20, %v11646_v2 }
0x1157   :  { %v18491_v63 = vand.u32 4294901760, %v11056_v43  ;;  %15538 = vmatpush3.msra.mxu1 %v18488_v14  ;;  %v10683_v13 = vsub.f32 %v10603_v28, %v18488_v14 }
0x1158   :  { %15542 = vmatprep.subr.mxu1 %v16902_v16 }
0x1159   :  { %15568 = vmatpush3.msra.mxu0 %v18491_v63  ;;  %v11136_v26 = vsub.f32 %v11056_v43, %v18491_v63  ;;  %v10684_v52 = vand.u32 4294901760, %v10683_v13  ;;  %v16144_v43 = vpack.c.bf16 %v11640_v59, %v11633_v49 }
0x115a   :  { %v16843_v41 = vpop.eup %16842  ;;  %15572 = vmatprep.subr.mxu0 %v16902_v16 }
0x115b   :  { %v10595_v46 = vmul.f32 %v16843_v41, %v16839_v40  ;;  %v11137_v61 = vand.u32 4294901760, %v11136_v26  ;;  %v10685_v54 = vsub.f32 %v10683_v13, %v10684_v52  ;;  %v11654_v40 = vand.u32 4294901760, %v11653_v20  ;;  %v11507_v41 = vpop.permute.xlu1 %11506 }
0x115c   :  { %v16845_v5 = vpop.eup %16844 }
0x115d   :  { %v10597_v3 = vmul.f32 %v16845_v5, %v16841_v36  ;;  %v10601_v19 = vsel %vm1864_vm10, %v10595_v46, 0  ;;  %v11138_v18 = vsub.f32 %v11136_v26, %v11137_v61  ;;  %v10686_v33 = vand.u32 4294901760, %v10685_v54  ;;  %v11509_v46 = vpop.permute.xlu0 %11508 }
0x115e   :  { %v10671_v15 = vand.u32 4294901760, %v10601_v19  ;;  %v16126_v36 = vpack.c.bf16 %v11642_v27, %v11635_v57  ;;  %v11655_v58 = vsub.f32 %v11653_v20, %v11654_v40  ;;  %v16864_v20 = vld [vmem:[%s19086_s0] sm:$0xff] }
0x115f   :  { %v11054_v12 = vsel %vm1864_vm10, %v10597_v3, 0  ;;  %v11139_v7 = vand.u32 4294901760, %v11138_v18 }
0x1160   :  { %v10672_v8 = vsub.f32 %v10601_v19, %v10671_v15  ;;  %v11124_v42 = vand.u32 4294901760, %v11054_v12  ;;  %v11656_v4 = vand.u32 4294901760, %v11655_v58  ;;  %v11528_v19 = vsel %vm4162_vm12, %v18183_v6, %v11507_v41  ;;  %v16867_v58 = vld [vmem:[%s19086_s0 + $0x10] sm:$0xff]  ;;  %v16869_v41 = vld [vmem:[%s19086_s0 + $0x20] sm:$0xff] }
0x1161   :  { %v11517_v5 = vpop.permute.xlu0 %11516  ;;  %v16916_v6 = vmov 1966171168  }
0x1162   :  { %v10673_v51 = vand.u32 4294901760, %v10672_v8  ;;  %v11125_v17 = vsub.f32 %v11054_v12, %v11124_v42  ;;  %v16129_v28 = vpack.c.bf16 %v11656_v4, %v11649_v45 }
0x1164   :  { %v10674_v38 = vsub.f32 %v10672_v8, %v10673_v51  ;;  %v11126_v53 = vand.u32 4294901760, %v11125_v17 }
0x1166   :  { %v10675_v37 = vand.u32 4294901760, %v10674_v38  ;;  %v11127_v34 = vsub.f32 %v11125_v17, %v11126_v53 }
0x1168   :  { %15540 = vmatmul.mubr.f32.vlgmr.msra.gmra.mrb[36].mxu1 %v10675_v37  ;;  %v11128_v0 = vand.u32 4294901760, %v11127_v34  ;;  %v12041_v37 = vlaneseq }
0x1169   :  { %15543 = vmatpush3.msra.mxu1 %v10686_v33  ;;  %15544 = vmatprep.mubr.msk.f32.mxu1 %vm16901_vm11, %v16902_v16 }
0x116a   :  { %15570 = vmatmul.mubr.f32.vlgmr.msra.gmra.mrb[38].mxu0 %v11128_v0  ;;  %15547 = vmatprep.subr.mxu1 %v16902_v16  ;;  %v12042_v33 = vshrl.u32 %v12041_v37, 7  ;;  %v14008_v0 = vld [vmem:[%s19089_s3 + $0x8] ss:$0 sm:$0xff] }
0x116b   :  { %15573 = vmatpush3.msra.mxu0 %v11139_v7  ;;  %15574 = vmatprep.mubr.msk.f32.mxu0 %vm16901_vm11, %v16902_v16 }
0x116c   :  { %15577 = vmatprep.subr.mxu0 %v16902_v16 }
0x1170   :  { %15545 = vmatmul.mubr.f32.vlgmr.msra.gmra.mrb[36].mxu1 %v10671_v15 }
0x1171   :  { %15548 = vmatpush3.msra.mxu1 %v10683_v13  ;;  %15549 = vmatprep.mubr.msk.f32.mxu1 %vm16901_vm11, %v16902_v16  ;;  %v11515_v13 = vpop.permute.xlu1 %11514 }
0x1172   :  { %15575 = vmatmul.mubr.f32.vlgmr.msra.gmra.mrb[38].mxu0 %v11124_v42  ;;  %15552 = vmatprep.subr.mxu1 %v16902_v16 }
0x1173   :  { %15578 = vmatpush3.msra.mxu0 %v11136_v26  ;;  %15579 = vmatprep.mubr.msk.f32.mxu0 %vm16901_vm11, %v16902_v16  ;;  %v11529_v26 = vsel %vm4162_vm12, %v18185_v44, %v11509_v46  ;;  %v12039_v44 = vunpack.c.l.s4 %v16916_v6 }
0x1174   :  { %15582 = vmatprep.subr.mxu0 %v16902_v16 }
0x1175   :  { %v12040_v34 = vunpack.c.0.s8 %v12039_v44 }
0x1177   :  { %v12043_v7 = vsub.s32 %v12040_v34, %v12042_v33 }
0x1178   :  { %15550 = vmatmul.mubr.f32.vlgmr.msra.gmra.mrb[36].mxu1 %v10672_v8 }
0x1179   :  { %15553 = vmatpush3.msra.mxu1 %v18488_v14  ;;  %15554 = vmatprep.mubr.msk.f32.mxu1 %vm16901_vm11, %v16902_v16 }
0x117a   :  { %15580 = vmatmul.mubr.f32.vlgmr.msra.gmra.mrb[38].mxu0 %v11125_v17  ;;  %15557 = vmatprep.subr.mxu1 %v16902_v16 }
0x117b   :  { %15583 = vmatpush3.msra.mxu0 %v18491_v63  ;;  %15584 = vmatprep.mubr.msk.f32.mxu0 %vm16901_vm11, %v16902_v16 }
0x117c   :  { %15587 = vmatprep.subr.mxu0 %v16902_v16 }
0x1180   :  { %15555 = vmatmul.mubr.f32.vlgmr.msra.gmra.mrb[36].mxu1 %v10673_v51 }
0x1181   :  { %15558 = vmatpush3.msra.mxu1 %v10684_v52  ;;  %15559 = vmatprep.mubr.msk.f32.mxu1 %vm16901_vm11, %v16902_v16  ;;  %v11531_v52 = vsel %vm11530_vm14, %v11528_v19, %v11515_v13 }
0x1182   :  { %15585 = vmatmul.mubr.f32.vlgmr.msra.gmra.mrb[38].mxu0 %v11126_v53  ;;  %15562 = vmatprep.subr.mxu1 %v16902_v16 }
0x1183   :  { %15588 = vmatpush3.msra.mxu0 %v11137_v61  ;;  %15589 = vmatprep.mubr.msk.f32.mxu0 %vm16901_vm11, %v16902_v16 }
0x1184   :  { %15592 = vmatprep.subr.mxu0 %v16902_v16 }
0x1188   :  { %15560 = vmatmul.mubr.f32.vlgmr.msra.gmra.mrb[36].mxu1 %v10671_v15 }
0x1189   :  { %15563 = vmatpush3.msra.mxu1 %v18488_v14  ;;  %15564 = vmatprep.mubr.msk.f32.mxu1 %vm16901_vm11, %v16902_v16  ;;  %v16132_v14 = vpack.c.bf16 %v18540_v56, %v18538_v11 }
0x118a   :  { %15590 = vmatmul.mubr.f32.vlgmr.msra.gmra.mrb[38].mxu0 %v11124_v42  ;;  %16119 = vmatprep.subr.bf16.mxu1 %v16900_v30 }
0x118b   :  { %15593 = vmatpush3.msra.mxu0 %v18491_v63  ;;  %15594 = vmatprep.mubr.msk.f32.mxu0 %vm16901_vm11, %v16902_v16  ;;  %v16147_v63 = vpack.c.bf16 %v11654_v40, %v11647_v9 }
0x1190   :  { %15565 = vmatmul.mubr.f32.vlgmr.msra.gmra.mrb[36].mxu1 %v10671_v15  ;;  %v11532_v15 = vsel %vm11530_vm14, %v11529_v26, %v11517_v5 }
0x1191   :  { %15605 = vmatprep.mubr.msk.f32.mxu1 %vm16901_vm11, %v16902_v16  ;;  %16121 = vmatpush3.bf16.msra.mxu1 %v18536_v32 }
0x1192   :  { %15595 = vmatmul.mubr.f32.vlgmr.msra.gmra.mrb[38].mxu0 %v11124_v42  ;;  %16122 = vmatprep.subr.bf16.mxu1 %v16900_v30 }
0x1195   :  { %16124 = vmatpush3.bf16.msra.mxu1 %v18546_v39 }
0x1196   :  { %16125 = vmatprep.subr.bf16.mxu1 %v16900_v30 }
0x1263   :  { %v11047_v50 = vpop.f32.mrb[36].mxu1 }
0x1264   :  { %11522 = vrot.lane.b32.xlu1 %v11047_v50, %s16915_s8  ;;  %v15566_v31 = vpop.f32.mrb[37].mxu1 }
0x1265   :  { %v11500_v24 = vpop.f32.mrb[38].mxu0 }
0x1266   :  { %11524 = vrot.lane.b32.xlu0 %v11500_v24, %s16915_s8  ;;  %v15596_v35 = vpop.f32.mrb[39].mxu0 }
0x12d6   :  { %v11523_v3 = vpop.permute.xlu1 %11522 }
0x12d7   :  { %v11534_v8 = vsel %vm11533_vm15, %v11531_v52, %v11523_v3  ;;  %v16870_v3 = vld [vmem:[%s19086_s0 + $0x38] sm:$0xff] }
0x12d8   :  { %v11525_v12 = vpop.permute.xlu0 %11524 }
0x12d9   :  { %v11535_v42 = vsel %vm11533_vm15, %v11532_v15, %v11525_v12  ;;  %v16871_v15 = vld [vmem:[%s19086_s0 + $0x30] sm:$0xff] }
0x12da   :  { %v11548_v61 = vcombine.low %v11534_v8, %v11535_v42 }
0x12dc   :  { %v11549_v51 = vsel %vm55_vm0, %v11548_v61, 0 }
0x12dd   :  { %v11620_v17 = vand.u32 4294901760, %v11549_v51 }
0x12df   :  { %v11621_v54 = vsub.f32 %v11549_v51, %v11620_v17 }
0x12e1   :  { %v11622_v38 = vand.u32 4294901760, %v11621_v54 }
0x12e3   :  { %v11623_v53 = vsub.f32 %v11621_v54, %v11622_v38 }
0x12e5   :  { %v11624_v18 = vand.u32 4294901760, %v11623_v53 }
0x12e7   :  { %15606 = vmatmul.mubr.f32.vlgmr.msra.gmra.mrb[38].mxu1 %v11624_v18 }
0x12e8   :  { %16127 = vmatpush3.bf16.msra.mxu1 %v16126_v36  ;;  %15616 = vmatprep.mubr.msk.f32.mxu1 %vm16901_vm11, %v16902_v16  ;;  %v16866_v36 = vld [vmem:[%s19086_s0 + $0x18] sm:$0xff] }
0x12e9   :  { %16128 = vmatprep.subr.bf16.mxu1 %v16900_v30 }
0x12ec   :  { %16130 = vmatpush3.bf16.msra.mxu1 %v16129_v28 }
0x12ed   :  { %16131 = vmatprep.subr.bf16.mxu1 %v16900_v30 }
0x12ef   :  { %15617 = vmatmul.mubr.f32.vlgmr.msra.gmra.mrb[38].mxu1 %v11620_v17 }
0x12f0   :  { %16133 = vmatpush3.bf16.msra.mxu1 %v16132_v14  ;;  %15627 = vmatprep.mubr.msk.f32.mxu1 %vm16901_vm11, %v16902_v16  ;;  %v16868_v14 = vld [vmem:[%s19086_s0 + $0x28] sm:$0xff] }
0x12f1   :  { %16134 = vmatprep.subr.bf16.mxu1 %v16900_v30 }
0x12f4   :  { %16136 = vmatpush3.bf16.msra.mxu1 %v16135_v48 }
0x12f5   :  { %16137 = vmatprep.subr.bf16.mxu1 %v16900_v30 }
0x12f7   :  { %15628 = vmatmul.mubr.f32.vlgmr.msra.gmra.mrb[38].mxu1 %v11621_v54 }
0x12f8   :  { %16139 = vmatpush3.bf16.msra.mxu1 %v18536_v32  ;;  %15638 = vmatprep.mubr.msk.f32.mxu1 %vm16901_vm11, %v16902_v16 }
0x12f9   :  { %16140 = vmatprep.subr.bf16.mxu1 %v16900_v30 }
0x12fc   :  { %16142 = vmatpush3.bf16.msra.mxu1 %v18546_v39 }
0x12fd   :  { %16143 = vmatprep.subr.bf16.mxu1 %v16900_v30 }
0x12ff   :  { %15639 = vmatmul.mubr.f32.vlgmr.msra.gmra.mrb[38].mxu1 %v11622_v38 }
0x1300   :  { %16145 = vmatpush3.bf16.msra.mxu1 %v16144_v43  ;;  %15649 = vmatprep.mubr.msk.f32.mxu1 %vm16901_vm11, %v16902_v16 }
0x1301   :  { %16146 = vmatprep.subr.bf16.mxu1 %v16900_v30 }
0x1304   :  { %16148 = vmatpush3.bf16.msra.mxu1 %v16147_v63 }
0x1305   :  { %16149 = vmatprep.subr.bf16.mxu1 %v16900_v30 }
0x1307   :  { %15650 = vmatmul.mubr.f32.vlgmr.msra.gmra.mrb[38].mxu1 %v11620_v17 }
0x1308   :  { %16151 = vmatpush3.bf16.msra.mxu1 %v18536_v32  ;;  %15660 = vmatprep.mubr.msk.f32.mxu1 %vm16901_vm11, %v16902_v16  ;;  %v12088_v32 = vsub.s32 0, %v12042_v33 }
0x1309   :  { %16152 = vmatprep.subr.bf16.mxu1 %v16900_v30 }
0x130c   :  { %16154 = vmatpush3.bf16.msra.mxu1 %v18546_v39 }
0x130f   :  { %15661 = vmatmul.mubr.f32.vlgmr.msra.gmra.mrb[38].mxu1 %v11620_v17 }
0x13e2   :  { %v12032_v10 = vpop.f32.mrb[38].mxu1 }
0x13e3   :  { %v16336_v1 = vadd.f32 %v14008_v0, %v12032_v10  ;;  %v15662_v55 = vpop.f32.mrb[39].mxu1 }
0x13e5   :  { %v12037_v29 = vcombine.high %v16336_v1, %v16336_v1  ;;  %v12044_v16 = vrot.slane %v16336_v1, %v12043_v7 }
0x13e7   :  { %v12051_v30 = vrot.slane %v12037_v29, %v12043_v7  ;;  %v12052_v11 = vcombine.high %v12044_v16, %v12044_v16  ;;  %v12060_v56 = vrot.slane %v12044_v16, %v12043_v7 }
0x13e9   :  { %v12053_v25 = vcombine.high %v12051_v30, %v12051_v30  ;;  %v12074_v62 = vrot.slane %v12052_v11, %v12043_v7  ;;  %v12082_v22 = vcombine.high %v12060_v56, %v12060_v56  ;;  %v12067_v23 = vrot.slane %v12051_v30, %v12043_v7 }
0x13ea   :  { %v12089_v49 = vrot.slane %v12060_v56, %v12088_v32 }
0x13eb   :  { %v12081_v59 = vrot.slane %v12053_v25, %v12043_v7  ;;  %v12084_v39 = vcombine.high %v12074_v62, %v12074_v62  ;;  %v12093_v2 = vrot.slane %v12074_v62, %v12088_v32  ;;  %v12097_v60 = vrot.slane %v12082_v22, %v12088_v32 }
0x13ec   :  { %v18588_v50 = vadd.f32 %v16864_v20, %v12089_v49  ;;  %v12083_v57 = vcombine.high %v12067_v23, %v12067_v23  ;;  %v12105_v4 = vrot.slane %v12067_v23, %v12088_v32 }
0x13ed   :  { %v18593_v31 = vadd.f32 %v16865_v21, %v12093_v2  ;;  %v12101_v24 = vrot.slane %v12084_v39, %v12088_v32  ;;  %v12109_v9 = vrot.slane %v12081_v59, %v12088_v32  ;;  %v12085_v40 = vcombine.high %v12081_v59, %v12081_v59 }
0x13ee   :  { %v12136_v27 = vsel %vm55_vm0, %v18588_v50, 0.0  ;;  %v18607_v45 = vadd.f32 %v16867_v58, %v12097_v60  ;;  %v18621_v46 = vadd.f32 %v16869_v41, %v12105_v4  ;;  %v12113_v13 = vrot.slane %v12083_v57, %v12088_v32 }
0x13ef   :  { %12137 = vadd.xlane.f32.xlu1 %v12136_v27  ;;  %v12139_v35 = vsel %vm55_vm0, %v18593_v31, 0.0  ;;  %v18602_v47 = vadd.f32 %v16866_v36, %v12101_v24  ;;  %v18614_v48 = vadd.f32 %v16868_v14, %v12109_v9  ;;  %v12117_v43 = vrot.slane %v12085_v40, %v12088_v32  ;;  %v12266_v36 = vld [vmem:[#allocation2 + $0x108] sm:$0xff]  ;;  %v12267_v14 = vld [vmem:[#allocation2 + $0x110] sm:$0xff] }
0x13f0   :  { %12140 = vadd.xlane.f32.xlu0 %v12139_v35  ;;  %v12142_v63 = vsel %vm55_vm0, %v18607_v45, 0.0  ;;  %v12148_v19 = vsel %vm55_vm0, %v18621_v46, 0.0  ;;  %v18635_v52 = vadd.f32 %v16871_v15, %v12113_v13  ;;  %v12265_v35 = vld [vmem:[#allocation2 + $0x100] sm:$0xff]  ;;  %v12311_v4 = vand.u32 4294901760, %v12266_v36 }
0x13f1   :  { %v12145_v28 = vsel %vm55_vm0, %v18602_v47, 0.0  ;;  %v12151_v5 = vsel %vm55_vm0, %v18614_v48, 0.0  ;;  %v18628_v26 = vadd.f32 %v16870_v3, %v12117_v43  ;;  %v12308_v58 = vand.u32 4294901760, %v12265_v35  ;;  %v12268_v43 = vld [vmem:[#allocation2 + $0x118] sm:$0xff] }
0x13f2   :  { %v12154_v8 = vsel %vm55_vm0, %v18635_v52, 0.0  ;;  %v12317_v41 = vand.u32 4294901760, %v12268_v43  ;;  %v12465_v3 = vsub.f32 %v12266_v36, %v12311_v4 }
0x13f3   :  { %12146 = vadd.xlane.f32.xlu1 %v12145_v28  ;;  %v12157_v12 = vsel %vm55_vm0, %v18628_v26, 0.0  ;;  %v18689_v28 = vpack.c.bf16 %v12311_v4, %v12308_v58 }
0x13f4   :  { %12143 = vadd.xlane.f32.xlu0 %v12142_v63  ;;  %v12314_v63 = vand.u32 4294901760, %v12267_v14  ;;  %v12466_v15 = vand.u32 4294901760, %v12465_v3 }
0x13f5   :  { %16156 = vmatprep.subr.bf16.mxu0 %v18689_v28 }
0x13f6   :  { %16158 = vmatpush3.bf16.msra.mxu0 %v18689_v28  ;;  %v18693_v13 = vpack.c.bf16 %v12317_v41, %v12314_v63 }
0x13f7   :  { %12152 = vadd.xlane.f32.xlu1 %v12151_v5  ;;  %v12458_v5 = vsub.f32 %v12265_v35, %v12308_v58 }
0x13f8   :  { %12149 = vadd.xlane.f32.xlu0 %v12148_v19  ;;  %16160 = vmatprep.subr.bf16.mxu0 %v18693_v13 }
0x13f9   :  { %v12459_v19 = vand.u32 4294901760, %v12458_v5 }
0x13fa   :  { %16162 = vmatpush3.bf16.msra.mxu0 %v18693_v13 }
0x13fb   :  { %12158 = vadd.xlane.f32.xlu1 %v12157_v12  ;;  %v12460_v12 = vsub.f32 %v12458_v5, %v12459_v19 }
0x13fc   :  { %12155 = vadd.xlane.f32.xlu0 %v12154_v8  ;;  %v12467_v8 = vsub.f32 %v12465_v3, %v12466_v15 }
0x147c   :  { %v12138_v42 = vpop.xlane.xlu1 %12137 }
0x147d   :  { %v12160_v61 = vmul.f32 0.03125, %v12138_v42  ;;  %v12141_v51 = vpop.xlane.xlu0 %12140  ;;  %v12472_v42 = vsub.f32 %v12267_v14, %v12314_v63 }
0x147e   :  { %v12161_v17 = vmul.f32 0.03125, %v12141_v51  ;;  %v12461_v51 = vand.u32 4294901760, %v12460_v12 }
0x147f   :  { %v18642_v54 = vsub.f32 %v18588_v50, %v12160_v61  ;;  %v12479_v61 = vsub.f32 %v12268_v43, %v12317_v41  ;;  %v14009_v41 = vld [vmem:[%s19089_s3 + $0x9] ss:$0 sm:$0xff] }
0x1480   :  { %v18645_v38 = vsub.f32 %v18593_v31, %v12161_v17  ;;  %v12147_v53 = vpop.xlane.xlu1 %12146  ;;  %v12468_v17 = vand.u32 4294901760, %v12467_v8  ;;  %v14010_v8 = vld [vmem:[%s19089_s3 + $0xa] ss:$0 sm:$0xff] }
0x1481   :  { %v12163_v18 = vmul.f32 0.03125, %v12147_v53  ;;  %v12144_v6 = vpop.xlane.xlu0 %12143  ;;  %v12176_v44 = vmul.f32 %v18642_v54, %v18642_v54  ;;  %v12473_v53 = vand.u32 4294901760, %v12472_v42 }
0x1482   :  { %v12162_v37 = vmul.f32 0.03125, %v12144_v6  ;;  %v12177_v34 = vmul.f32 %v18645_v38, %v18645_v38  ;;  %v18697_v6 = vpack.c.bf16 %v12468_v17, %v12461_v51 }
0x1483   :  { %v18652_v33 = vsub.f32 %v18602_v47, %v12163_v18  ;;  %v12184_v0 = vsel %vm55_vm0, %v12176_v44, 0.0  ;;  %v12480_v18 = vand.u32 4294901760, %v12479_v61  ;;  %v12474_v44 = vsub.f32 %v12472_v42, %v12473_v53 }
0x1484   :  { %v18656_v7 = vsub.f32 %v18607_v45, %v12162_v37  ;;  %12185 = vadd.xlane.f32.xlu0 %v12184_v0  ;;  %v12153_v10 = vpop.xlane.xlu1 %12152  ;;  %v12187_v1 = vsel %vm55_vm0, %v12177_v34, 0.0  ;;  %16164 = vmatprep.subr.bf16.mxu0 %v18697_v6 }
0x1485   :  { %v12165_v55 = vmul.f32 0.03125, %v12153_v10  ;;  %v12150_v29 = vpop.xlane.xlu0 %12149  ;;  %12188 = vadd.xlane.f32.xlu1 %v12187_v1  ;;  %v12179_v16 = vmul.f32 %v18652_v33, %v18652_v33  ;;  %v12481_v37 = vsub.f32 %v12479_v61, %v12480_v18  ;;  %v12475_v34 = vand.u32 4294901760, %v12474_v44 }
0x1486   :  { %v12164_v32 = vmul.f32 0.03125, %v12150_v29  ;;  %v12178_v30 = vmul.f32 %v18656_v7, %v18656_v7  ;;  %v18702_v1 = vpack.c.bf16 %v12465_v3, %v12458_v5  ;;  %v18706_v29 = vpack.c.bf16 %v12466_v15, %v12459_v19 }
0x1487   :  { %v18664_v11 = vsub.f32 %v18614_v48, %v12165_v55  ;;  %v12193_v22 = vsel %vm55_vm0, %v12179_v16, 0.0  ;;  %v12482_v0 = vand.u32 4294901760, %v12481_v37  ;;  %v18704_v55 = vpack.c.bf16 %v12479_v61, %v12472_v42 }
0x1488   :  { %v18667_v56 = vsub.f32 %v18621_v46, %v12164_v32  ;;  %v12159_v25 = vpop.xlane.xlu1 %12158  ;;  %v12190_v62 = vsel %vm55_vm0, %v12178_v30, 0.0  ;;  %v18708_v16 = vpack.c.bf16 %v12480_v18, %v12473_v53 }
0x1489   :  { %v12167_v23 = vmul.f32 0.03125, %v12159_v25  ;;  %12191 = vadd.xlane.f32.xlu0 %v12190_v62  ;;  %v12156_v49 = vpop.xlane.xlu0 %12155  ;;  %12194 = vadd.xlane.f32.xlu1 %v12193_v22  ;;  %v12181_v59 = vmul.f32 %v18664_v11, %v18664_v11  ;;  %v18700_v10 = vpack.c.bf16 %v12482_v0, %v12475_v34 }
0x148a   :  { %v12166_v39 = vmul.f32 0.03125, %v12156_v49  ;;  %v12180_v2 = vmul.f32 %v18667_v56, %v18667_v56 }
0x148b   :  { %v18676_v20 = vsub.f32 %v18628_v26, %v12167_v23  ;;  %v12199_v24 = vsel %vm55_vm0, %v12181_v59, 0.0 }
0x148c   :  { %v18679_v60 = vsub.f32 %v18635_v52, %v12166_v39  ;;  %v12196_v21 = vsel %vm55_vm0, %v12180_v2, 0.0 }
0x148d   :  { %12197 = vadd.xlane.f32.xlu0 %v12196_v21  ;;  %12200 = vadd.xlane.f32.xlu1 %v12199_v24  ;;  %v12183_v57 = vmul.f32 %v18676_v20, %v18676_v20 }
0x148e   :  { %v12182_v27 = vmul.f32 %v18679_v60, %v18679_v60 }
0x148f   :  { %v12205_v40 = vsel %vm55_vm0, %v12183_v57, 0.0 }
0x1490   :  { %v12202_v9 = vsel %vm55_vm0, %v12182_v27, 0.0 }
0x1491   :  { %12203 = vadd.xlane.f32.xlu0 %v12202_v9  ;;  %12206 = vadd.xlane.f32.xlu1 %v12205_v40 }
0x1511   :  { %v12186_v32 = vpop.xlane.xlu0 %12185 }
0x1512   :  { %v12208_v30 = vmul.f32 0.03125, %v12186_v32  ;;  %v12189_v25 = vpop.xlane.xlu1 %12188 }
0x1513   :  { %v12209_v62 = vmul.f32 0.03125, %v12189_v25 }
0x1514   :  { %v12216_v22 = vadd.f32 1e-06, %v12208_v30 }
0x1515   :  { %v12217_v23 = vadd.f32 1e-06, %v12209_v62 }
0x1516   :  { %16846 = vrsqrt.f32 %v12216_v22  ;;  %v12192_v49 = vpop.xlane.xlu0 %12191  ;;  %v12195_v59 = vpop.xlane.xlu1 %12194 }
0x1517   :  { %16848 = vrsqrt.f32 %v12217_v23  ;;  %v12210_v39 = vmul.f32 0.03125, %v12192_v49  ;;  %v12211_v2 = vmul.f32 0.03125, %v12195_v59 }
0x1519   :  { %v12218_v21 = vadd.f32 1e-06, %v12210_v39  ;;  %v12219_v24 = vadd.f32 1e-06, %v12211_v2 }
0x151a   :  { %v12198_v57 = vpop.xlane.xlu0 %12197  ;;  %v12201_v27 = vpop.xlane.xlu1 %12200 }
0x151b   :  { %16850 = vrsqrt.f32 %v12218_v21  ;;  %v12212_v9 = vmul.f32 0.03125, %v12198_v57  ;;  %v12213_v40 = vmul.f32 0.03125, %v12201_v27 }
0x151c   :  { %16852 = vrsqrt.f32 %v12219_v24 }
0x151d   :  { %v12220_v35 = vadd.f32 1e-06, %v12212_v9  ;;  %v12221_v36 = vadd.f32 1e-06, %v12213_v40 }
0x151e   :  { %v12204_v58 = vpop.xlane.xlu0 %12203  ;;  %v12207_v4 = vpop.xlane.xlu1 %12206 }
0x151f   :  { %16854 = vrsqrt.f32 %v12220_v35  ;;  %v12214_v14 = vmul.f32 0.03125, %v12204_v58  ;;  %v12215_v43 = vmul.f32 0.03125, %v12207_v4 }
0x1520   :  { %v16847_v63 = vpop.eup %16846  ;;  %16856 = vrsqrt.f32 %v12221_v36 }
0x1521   :  { %v16849_v5 = vpop.eup %16848  ;;  %v12232_v3 = vmul.f32 %v16847_v63, %v18642_v54  ;;  %v12222_v19 = vadd.f32 1e-06, %v12214_v14  ;;  %v12223_v15 = vadd.f32 1e-06, %v12215_v43 }
0x1522   :  { %v12233_v12 = vmul.f32 %v16849_v5, %v18645_v38 }
0x1523   :  { %16858 = vrsqrt.f32 %v12222_v19  ;;  %v12244_v42 = vmul.f32 %v14009_v41, %v12232_v3 }
0x1524   :  { %v12245_v61 = vmul.f32 %v14009_v41, %v12233_v12  ;;  %16860 = vrsqrt.f32 %v12223_v15 }
0x1525   :  { %v16851_v51 = vpop.eup %16850  ;;  %v12256_v17 = vadd.f32 %v14010_v8, %v12244_v42 }
0x1526   :  { %v16853_v53 = vpop.eup %16852  ;;  %v12234_v18 = vmul.f32 %v16851_v51, %v18656_v7  ;;  %v12257_v44 = vadd.f32 %v14010_v8, %v12245_v61 }
0x1527   :  { %v12235_v54 = vmul.f32 %v16853_v53, %v18652_v33  ;;  %v12284_v37 = vsel %vm55_vm0, %v12256_v17, 0 }
0x1528   :  { %v18721_v34 = vand.u32 4294901760, %v12284_v37  ;;  %v12287_v38 = vsel %vm55_vm0, %v12257_v44, 0  ;;  %v12246_v0 = vmul.f32 %v14009_v41, %v12234_v18 }
0x1529   :  { %v16855_v32 = vpop.eup %16854  ;;  %v18724_v30 = vand.u32 4294901760, %v12287_v38  ;;  %v12247_v25 = vmul.f32 %v14009_v41, %v12235_v54 }
0x152a   :  { %v16857_v62 = vpop.eup %16856  ;;  %v12236_v22 = vmul.f32 %v16855_v32, %v18667_v56  ;;  %v18728_v23 = vsub.f32 %v12284_v37, %v18721_v34  ;;  %v12258_v7 = vadd.f32 %v14010_v8, %v12246_v0 }
0x152b   :  { %v12237_v33 = vmul.f32 %v16857_v62, %v18664_v11  ;;  %v18732_v49 = vsub.f32 %v12287_v38, %v18724_v30  ;;  %v12259_v59 = vadd.f32 %v14010_v8, %v12247_v25 }
0x152c   :  { %v12378_v39 = vand.u32 4294901760, %v18728_v23  ;;  %v12290_v2 = vsel %vm55_vm0, %v12258_v7, 0  ;;  %v12248_v21 = vmul.f32 %v14009_v41, %v12236_v22 }
0x152d   :  { %v16859_v24 = vpop.eup %16858  ;;  %v12388_v57 = vand.u32 4294901760, %v18732_v49  ;;  %v18737_v27 = vand.u32 4294901760, %v12290_v2  ;;  %v12293_v56 = vsel %vm55_vm0, %v12259_v59, 0  ;;  %v12249_v9 = vmul.f32 %v14009_v41, %v12237_v33 }
0x152e   :  { %v16861_v40 = vpop.eup %16860  ;;  %v12238_v11 = vmul.f32 %v16859_v24, %v18679_v60  ;;  %v12379_v35 = vsub.f32 %v18728_v23, %v12378_v39  ;;  %v18744_v36 = vand.u32 4294901760, %v12293_v56  ;;  %v12260_v58 = vadd.f32 %v14010_v8, %v12248_v21 }
0x152f   :  { %v12239_v4 = vmul.f32 %v16861_v40, %v18676_v20  ;;  %v12389_v14 = vsub.f32 %v18732_v49, %v12388_v57  ;;  %v18751_v43 = vsub.f32 %v12290_v2, %v18737_v27  ;;  %v12261_v63 = vadd.f32 %v14010_v8, %v12249_v9 }
0x1530   :  { %v12250_v5 = vmul.f32 %v14009_v41, %v12238_v11  ;;  %v12380_v3 = vand.u32 4294901760, %v12379_v35  ;;  %v18754_v60 = vsub.f32 %v12293_v56, %v18744_v36  ;;  %v12296_v19 = vsel %vm55_vm0, %v12260_v58, 0 }
0x1531   :  { %v12251_v15 = vmul.f32 %v14009_v41, %v12239_v4  ;;  %v12390_v12 = vand.u32 4294901760, %v12389_v14  ;;  %v12398_v42 = vand.u32 4294901760, %v18751_v43  ;;  %v18758_v20 = vand.u32 4294901760, %v12296_v19 }
0x1532   :  { %15671 = vmatprep.mubr.f32.mxu0 %v12380_v3  ;;  %v12408_v61 = vand.u32 4294901760, %v18754_v60  ;;  %v12299_v51 = vsel %vm55_vm0, %v12261_v63, 0  ;;  %v12262_v17 = vadd.f32 %v14010_v8, %v12250_v5  ;;  %v12277_v63 = vld [vmem:[#allocation2 + $0x178] sm:$0xff] }
0x1533   :  { %15672 = vmatmul.mubr.f32.vlgmr.msra.gmra.mrb[40].mxu0 %v12390_v12  ;;  %v12399_v53 = vsub.f32 %v18751_v43, %v12398_v42  ;;  %v18766_v18 = vsub.f32 %v12296_v19, %v18758_v20  ;;  %v18768_v41 = vand.u32 4294901760, %v12299_v51  ;;  %v12263_v44 = vadd.f32 %v14010_v8, %v12251_v15 }
0x1534   :  { %v12409_v54 = vsub.f32 %v18754_v60, %v12408_v61  ;;  %16166 = vmatpush3.bf16.msra.mxu0 %v18697_v6  ;;  %v12302_v37 = vsel %vm55_vm0, %v12262_v17, 0  ;;  %v13153_v3 = vand.u32 4294901760, %v12277_v63 }
0x1535   :  { %v12400_v38 = vand.u32 4294901760, %v12399_v53  ;;  %v12418_v0 = vand.u32 4294901760, %v18766_v18  ;;  %v12427_v32 = vsub.f32 %v12299_v51, %v18768_v41  ;;  %v18777_v25 = vand.u32 4294901760, %v12302_v37  ;;  %16168 = vmatprep.subr.bf16.mxu0 %v18700_v10 }
0x1536   :  { %v12410_v62 = vand.u32 4294901760, %v12409_v54  ;;  %v12305_v8 = vsel %vm55_vm0, %v12263_v44, 0 }
0x1537   :  { %15674 = vmatprep.mubr.f32.mxu0 %v12400_v38  ;;  %v12419_v22 = vsub.f32 %v18766_v18, %v12418_v0  ;;  %v12428_v7 = vand.u32 4294901760, %v12427_v32  ;;  %v12437_v6 = vsub.f32 %v12302_v37, %v18777_v25  ;;  %v18783_v33 = vand.u32 4294901760, %v12305_v8 }
0x1538   :  { %15675 = vmatmul.mubr.f32.gmra.mrb[42].mxu0 %v12410_v62 }
0x1539   :  { %v12420_v59 = vand.u32 4294901760, %v12419_v22  ;;  %v12429_v2 = vsub.f32 %v12427_v32, %v12428_v7  ;;  %v12438_v21 = vand.u32 4294901760, %v12437_v6  ;;  %v12447_v24 = vsub.f32 %v12305_v8, %v18783_v33  ;;  %16170 = vmatpush3.bf16.msra.mxu0 %v18700_v10 }
0x153a   :  { %16172 = vmatprep.subr.bf16.mxu0 %v18702_v1 }
0x153b   :  { %15677 = vmatprep.mubr.f32.mxu0 %v12420_v59  ;;  %v12430_v56 = vand.u32 4294901760, %v12429_v2  ;;  %v12439_v9 = vsub.f32 %v12437_v6, %v12438_v21  ;;  %v12448_v40 = vand.u32 4294901760, %v12447_v24 }
0x153d   :  { %15678 = vmatmul.mubr.f32.gmra.mrb[44].mxu0 %v12430_v56  ;;  %v12440_v11 = vand.u32 4294901760, %v12439_v9  ;;  %v12449_v35 = vsub.f32 %v12447_v24, %v12448_v40 }
0x153f   :  { %15680 = vmatprep.mubr.f32.mxu0 %v12440_v11  ;;  %v12450_v58 = vand.u32 4294901760, %v12449_v35 }
0x1541   :  { %15681 = vmatmul.mubr.f32.gmra.mrb[46].mxu0 %v12450_v58 }
0x1542   :  { %15691 = vmatprep.mubr.f32.mxu0 %v18721_v34 }
0x1545   :  { %15692 = vmatmul.mubr.f32.vlgmr.msra.gmra.mrb[40].mxu0 %v18724_v30 }
0x1546   :  { %15694 = vmatprep.mubr.f32.mxu0 %v18737_v27  ;;  %16174 = vmatpush3.bf16.msra.mxu0 %v18702_v1 }
0x1547   :  { %16176 = vmatprep.subr.bf16.mxu0 %v18704_v55 }
0x1549   :  { %15695 = vmatmul.mubr.f32.gmra.mrb[42].mxu0 %v18744_v36 }
0x154a   :  { %15697 = vmatprep.mubr.f32.mxu0 %v18758_v20  ;;  %16178 = vmatpush3.bf16.msra.mxu0 %v18704_v55 }
0x154b   :  { %16180 = vmatprep.subr.bf16.mxu0 %v18689_v28 }
0x154d   :  { %15698 = vmatmul.mubr.f32.gmra.mrb[44].mxu0 %v18768_v41 }
0x154e   :  { %15700 = vmatprep.mubr.f32.mxu0 %v18777_v25 }
0x1551   :  { %15701 = vmatmul.mubr.f32.gmra.mrb[46].mxu0 %v18783_v33 }
0x1552   :  { %15711 = vmatprep.mubr.f32.mxu0 %v18728_v23 }
0x1555   :  { %15712 = vmatmul.mubr.f32.vlgmr.msra.gmra.mrb[40].mxu0 %v18732_v49  ;;  %v12274_v49 = vld [vmem:[#allocation2 + $0x160] sm:$0xff] }
0x1556   :  { %15714 = vmatprep.mubr.f32.mxu0 %v18751_v43  ;;  %16182 = vmatpush3.bf16.msra.mxu0 %v18689_v28  ;;  %v12276_v43 = vld [vmem:[#allocation2 + $0x170] sm:$0xff] }
0x1557   :  { %16184 = vmatprep.subr.bf16.mxu0 %v18693_v13  ;;  %v13150_v5 = vand.u32 4294901760, %v12276_v43 }
0x1559   :  { %15715 = vmatmul.mubr.f32.gmra.mrb[42].mxu0 %v18754_v60  ;;  %v18852_v15 = vpack.c.bf16 %v13153_v3, %v13150_v5 }
0x155a   :  { %15717 = vmatprep.mubr.f32.mxu0 %v18766_v18  ;;  %16186 = vmatpush3.bf16.msra.mxu0 %v18693_v13 }
0x155b   :  { %16188 = vmatprep.subr.bf16.mxu0 %v18706_v29 }
0x155d   :  { %15718 = vmatmul.mubr.f32.gmra.mrb[44].mxu0 %v12427_v32 }
0x155e   :  { %15720 = vmatprep.mubr.f32.mxu0 %v12437_v6  ;;  %v13328_v6 = vsub.f32 %v12276_v43, %v13150_v5 }
0x1561   :  { %15721 = vmatmul.mubr.f32.gmra.mrb[46].mxu0 %v12447_v24 }
0x1562   :  { %15731 = vmatprep.mubr.f32.mxu0 %v12378_v39  ;;  %v12275_v39 = vld [vmem:[#allocation2 + $0x168] sm:$0xff] }
0x1565   :  { %15732 = vmatmul.mubr.f32.vlgmr.msra.gmra.mrb[40].mxu0 %v12388_v57  ;;  %v13144_v57 = vand.u32 4294901760, %v12274_v49 }
0x1566   :  { %15734 = vmatprep.mubr.f32.mxu0 %v12398_v42  ;;  %16190 = vmatpush3.bf16.msra.mxu0 %v18706_v29  ;;  %v12272_v29 = vld [vmem:[#allocation2 + $0x150] sm:$0xff] }
0x1567   :  { %16192 = vmatprep.subr.bf16.mxu0 %v18708_v16  ;;  %v13314_v37 = vsub.f32 %v12274_v49, %v13144_v57  ;;  %v14011_v49 = vld [vmem:[%s19089_s3 + $0xb] ss:$0 sm:$0xff] }
0x1569   :  { %15735 = vmatmul.mubr.f32.gmra.mrb[42].mxu0 %v12408_v61 }
0x156a   :  { %15737 = vmatprep.mubr.f32.mxu0 %v12418_v0  ;;  %16194 = vmatpush3.bf16.msra.mxu0 %v18708_v16  ;;  %v12273_v16 = vld [vmem:[#allocation2 + $0x158] sm:$0xff] }
0x156b   :  { %16196 = vmatprep.subr.bf16.mxu0 %v18689_v28 }
0x156d   :  { %15738 = vmatmul.mubr.f32.gmra.mrb[44].mxu0 %v12428_v7 }
0x156e   :  { %15740 = vmatprep.mubr.f32.mxu0 %v12438_v21  ;;  %v13329_v21 = vand.u32 4294901760, %v13328_v6 }
0x1570   :  { %v13330_v9 = vsub.f32 %v13328_v6, %v13329_v21 }
0x1571   :  { %15741 = vmatmul.mubr.f32.gmra.mrb[46].mxu0 %v12448_v40 }
0x1572   :  { %15751 = vmatprep.mubr.f32.mxu0 %v18721_v34  ;;  %v13331_v11 = vand.u32 4294901760, %v13330_v9 }
0x1575   :  { %15752 = vmatmul.mubr.f32.vlgmr.msra.gmra.mrb[40].mxu0 %v18724_v30 }
0x1576   :  { %15754 = vmatprep.mubr.f32.mxu0 %v18737_v27  ;;  %16198 = vmatpush3.bf16.msra.mxu0 %v18689_v28  ;;  %v12270_v28 = vld [vmem:[#allocation2 + $0x140] sm:$0xff] }
0x1577   :  { %16200 = vmatprep.subr.bf16.mxu0 %v18693_v13  ;;  %v13132_v10 = vand.u32 4294901760, %v12270_v28 }
0x1579   :  { %15755 = vmatmul.mubr.f32.gmra.mrb[42].mxu0 %v18744_v36  ;;  %v13286_v4 = vsub.f32 %v12270_v28, %v13132_v10 }
0x157a   :  { %15757 = vmatprep.mubr.f32.mxu0 %v18758_v20  ;;  %16202 = vmatpush3.bf16.msra.mxu0 %v18693_v13  ;;  %v12271_v13 = vld [vmem:[#allocation2 + $0x148] sm:$0xff] }
0x157b   :  { %v13135_v1 = vand.u32 4294901760, %v12271_v13  ;;  %v13287_v60 = vand.u32 4294901760, %v13286_v4 }
0x157d   :  { %15758 = vmatmul.mubr.f32.gmra.mrb[44].mxu0 %v18768_v41  ;;  %v18840_v55 = vpack.c.bf16 %v13135_v1, %v13132_v10  ;;  %v13293_v14 = vsub.f32 %v12271_v13, %v13135_v1  ;;  %v13288_v12 = vsub.f32 %v13286_v4, %v13287_v60 }
0x157e   :  { %15760 = vmatprep.mubr.f32.mxu0 %v18777_v25 }
0x157f   :  { %16204 = vmatprep.subr.bf16.mxu1 %v18840_v55  ;;  %v13294_v19 = vand.u32 4294901760, %v13293_v14  ;;  %v13289_v51 = vand.u32 4294901760, %v13288_v12  ;;  %v18865_v28 = vpack.c.bf16 %v13293_v14, %v13286_v4 }
0x1580   :  { %16206 = vmatpush3.bf16.msra.mxu1 %v18840_v55 }
0x1581   :  { %15761 = vmatmul.mubr.f32.gmra.mrb[46].mxu0 %v18783_v33  ;;  %v13295_v42 = vsub.f32 %v13293_v14, %v13294_v19 }
0x1582   :  { %15771 = vmatprep.mubr.f32.mxu0 %v18721_v34  ;;  %v13138_v34 = vand.u32 4294901760, %v12272_v29 }
0x1583   :  { %v13296_v17 = vand.u32 4294901760, %v13295_v42 }
0x1585   :  { %15772 = vmatmul.mubr.f32.vlgmr.msra.gmra.mrb[40].mxu0 %v18724_v30  ;;  %v13141_v30 = vand.u32 4294901760, %v12273_v16 }
0x1586   :  { %15774 = vmatprep.mubr.f32.mxu0 %v18737_v27  ;;  %v13147_v27 = vand.u32 4294901760, %v12275_v39 }
0x1587   :  { %v18844_v23 = vpack.c.bf16 %v13141_v30, %v13138_v34  ;;  %v13307_v61 = vsub.f32 %v12273_v16, %v13141_v30 }
0x1588   :  { %v13321_v38 = vsub.f32 %v12275_v39, %v13147_v27 }
0x1589   :  { %15775 = vmatmul.mubr.f32.gmra.mrb[42].mxu0 %v18744_v36  ;;  %16208 = vmatprep.subr.bf16.mxu1 %v18844_v23  ;;  %v18848_v36 = vpack.c.bf16 %v13147_v27, %v13144_v57  ;;  %v13308_v18 = vand.u32 4294901760, %v13307_v61 }
0x158a   :  { %15777 = vmatprep.mubr.f32.mxu0 %v18758_v20  ;;  %16210 = vmatpush3.bf16.msra.mxu1 %v18844_v23  ;;  %v13300_v20 = vsub.f32 %v12272_v29, %v13138_v34  ;;  %v13322_v62 = vand.u32 4294901760, %v13321_v38  ;;  %v18869_v10 = vpack.c.bf16 %v13321_v38, %v13314_v37  ;;  %v18873_v29 = vpack.c.bf16 %v13294_v19, %v13287_v60 }
0x158b   :  { %16212 = vmatprep.subr.bf16.mxu1 %v18848_v36  ;;  %v13309_v54 = vsub.f32 %v13307_v61, %v13308_v18 }
0x158c   :  { %v13301_v53 = vand.u32 4294901760, %v13300_v20  ;;  %v13323_v7 = vsub.f32 %v13321_v38, %v13322_v62  ;;  %v18867_v13 = vpack.c.bf16 %v13307_v61, %v13300_v20 }
0x158d   :  { %15778 = vmatmul.mubr.f32.gmra.mrb[44].mxu0 %v18768_v41  ;;  %v18856_v41 = vpack.c.bf16 %v13296_v17, %v13289_v51  ;;  %v13310_v32 = vand.u32 4294901760, %v13309_v54 }
0x158e   :  { %15780 = vmatprep.mubr.f32.mxu0 %v18777_v25  ;;  %16214 = vmatpush3.bf16.msra.mxu1 %v18848_v36  ;;  %v13302_v44 = vsub.f32 %v13300_v20, %v13301_v53  ;;  %v13315_v25 = vand.u32 4294901760, %v13314_v37  ;;  %v13324_v2 = vand.u32 4294901760, %v13323_v7  ;;  %v18875_v16 = vpack.c.bf16 %v13308_v18, %v13301_v53 }
0x158f   :  { %16216 = vmatprep.subr.bf16.mxu1 %v18852_v15 }
0x1590   :  { %v13303_v0 = vand.u32 4294901760, %v13302_v44  ;;  %v13316_v22 = vsub.f32 %v13314_v37, %v13315_v25  ;;  %v18877_v34 = vpack.c.bf16 %v13322_v62, %v13315_v25 }
0x1591   :  { %15781 = vmatmul.mubr.f32.gmra.mrb[46].mxu0 %v18783_v33  ;;  %v13335_v33 = vsub.f32 %v12277_v63, %v13153_v3 }
0x1592   :  { %16218 = vmatpush3.bf16.msra.mxu1 %v18852_v15  ;;  %v18859_v8 = vpack.c.bf16 %v13310_v32, %v13303_v0  ;;  %v13317_v59 = vand.u32 4294901760, %v13316_v22 }
0x1593   :  { %16220 = vmatprep.subr.bf16.mxu1 %v18856_v41  ;;  %v13336_v24 = vand.u32 4294901760, %v13335_v33  ;;  %v18871_v1 = vpack.c.bf16 %v13335_v33, %v13328_v6 }
0x1594   :  { %v18861_v56 = vpack.c.bf16 %v13324_v2, %v13317_v59 }
0x1595   :  { %v13337_v40 = vsub.f32 %v13335_v33, %v13336_v24  ;;  %v18879_v30 = vpack.c.bf16 %v13336_v24, %v13329_v21 }
0x1597   :  { %v13338_v35 = vand.u32 4294901760, %v13337_v40 }
0x1599   :  { %v18863_v58 = vpack.c.bf16 %v13338_v35, %v13331_v11 }
0x1658   :  { %v15773_v39 = vpop.f32.mrb[40].mxu0 }
0x1659   :  { %v16337_v57 = vadd.f32 %v15773_v39, %v14011_v49  ;;  %v13047_v27 = vpop.f32.mrb[41].mxu0 }
0x165a   :  { %v16338_v4 = vadd.f32 %v14011_v49, %v13047_v27 }
0x165b   :  { %v13094_v14 = vmax.f32 %v16337_v57, 0.0 }
0x165c   :  { %v13093_v43 = vmax.f32 %v16338_v4, 0.0  ;;  %v15776_v63 = vpop.f32.mrb[42].mxu0 }
0x165d   :  { %v13111_v5 = vsel %vm13106_vm1, %v13094_v14, 0  ;;  %v16339_v3 = vadd.f32 %v15776_v63, %v14011_v49  ;;  %v13059_v60 = vpop.f32.mrb[43].mxu0 }
0x165e   :  { %v18885_v19 = vand.u32 4294901760, %v13111_v5  ;;  %v13108_v12 = vsel %vm13106_vm1, %v13093_v43, 0  ;;  %v16340_v42 = vadd.f32 %v14011_v49, %v13059_v60 }
0x165f   :  { %v18888_v20 = vand.u32 4294901760, %v13108_v12  ;;  %v13096_v61 = vmax.f32 %v16339_v3, 0.0 }
0x1660   :  { %v18891_v51 = vsub.f32 %v13111_v5, %v18885_v19  ;;  %v13095_v17 = vmax.f32 %v16340_v42, 0.0  ;;  %v15779_v53 = vpop.f32.mrb[44].mxu0 }
0x1661   :  { %v18894_v18 = vsub.f32 %v13108_v12, %v18888_v20  ;;  %v13117_v44 = vsel %vm13106_vm1, %v13096_v61, 0  ;;  %v16341_v54 = vadd.f32 %v15779_v53, %v14011_v49  ;;  %v13071_v37 = vpop.f32.mrb[45].mxu0 }
0x1662   :  { %v13216_v38 = vand.u32 4294901760, %v18891_v51  ;;  %v18898_v0 = vand.u32 4294901760, %v13117_v44  ;;  %v13114_v32 = vsel %vm13106_vm1, %v13095_v17, 0  ;;  %v16342_v25 = vadd.f32 %v14011_v49, %v13071_v37 }
0x1663   :  { %v18901_v62 = vand.u32 4294901760, %v13114_v32  ;;  %v13098_v22 = vmax.f32 %v16341_v54, 0.0  ;;  %v13206_v7 = vand.u32 4294901760, %v18894_v18 }
0x1664   :  { %v18905_v6 = vsub.f32 %v13117_v44, %v18898_v0  ;;  %v13097_v33 = vmax.f32 %v16342_v25, 0.0  ;;  %v15782_v59 = vpop.f32.mrb[46].mxu0  ;;  %v13217_v2 = vsub.f32 %v18891_v51, %v13216_v38 }
0x1665   :  { %v18911_v21 = vsub.f32 %v13114_v32, %v18901_v62  ;;  %v13123_v24 = vsel %vm13106_vm1, %v13098_v22, 0  ;;  %v16343_v9 = vadd.f32 %v15782_v59, %v14011_v49  ;;  %v13083_v40 = vpop.f32.mrb[47].mxu0  ;;  %v13207_v11 = vsub.f32 %v18894_v18, %v13206_v7 }
0x1666   :  { %v18917_v35 = vand.u32 4294901760, %v13123_v24  ;;  %v13120_v39 = vsel %vm13106_vm1, %v13097_v33, 0  ;;  %v16344_v57 = vadd.f32 %v14011_v49, %v13083_v40  ;;  %v13218_v3 = vand.u32 4294901760, %v13217_v2 }
0x1667   :  { %v18920_v27 = vand.u32 4294901760, %v13120_v39  ;;  %v13100_v4 = vmax.f32 %v16343_v9, 0.0  ;;  %v13208_v14 = vand.u32 4294901760, %v13207_v11  ;;  %v13226_v43 = vand.u32 4294901760, %v18911_v21 }
0x1668   :  { %v18924_v63 = vsub.f32 %v13123_v24, %v18917_v35  ;;  %v13099_v5 = vmax.f32 %v16344_v57, 0.0  ;;  %v13236_v60 = vand.u32 4294901760, %v18905_v6 }
0x1669   :  { %v18928_v12 = vsub.f32 %v13120_v39, %v18920_v27  ;;  %v13129_v42 = vsel %vm13106_vm1, %v13100_v4, 0  ;;  %15799 = vmatprep.mubr.f32.mxu1 %v13208_v14  ;;  %v13227_v49 = vsub.f32 %v18911_v21, %v13226_v43 }
0x166a   :  { %v18934_v61 = vand.u32 4294901760, %v13129_v42  ;;  %v13126_v17 = vsel %vm13106_vm1, %v13099_v5, 0  ;;  %15800 = vmatmul.mubr.f32.vlgmr.msra.gmra.mrb[40].mxu1 %v13218_v3  ;;  %v13237_v53 = vsub.f32 %v18905_v6, %v13236_v60  ;;  %v13256_v44 = vand.u32 4294901760, %v18924_v63 }
0x166b   :  { %v18941_v54 = vand.u32 4294901760, %v13126_v17  ;;  %16222 = vmatpush3.bf16.msra.mxu1 %v18856_v41  ;;  %v13228_v37 = vand.u32 4294901760, %v13227_v49  ;;  %v13246_v32 = vand.u32 4294901760, %v18928_v12 }
0x166c   :  { %v18946_v25 = vsub.f32 %v13129_v42, %v18934_v61  ;;  %v13238_v22 = vand.u32 4294901760, %v13237_v53  ;;  %16224 = vmatprep.subr.bf16.mxu1 %v18859_v8  ;;  %v13257_v33 = vsub.f32 %v18924_v63, %v13256_v44 }
0x166d   :  { %v18953_v59 = vsub.f32 %v13126_v17, %v18941_v54  ;;  %15802 = vmatprep.mubr.f32.mxu1 %v13228_v37  ;;  %v13247_v41 = vsub.f32 %v18928_v12, %v13246_v32 }
0x166e   :  { %15803 = vmatmul.mubr.f32.gmra.mrb[42].mxu1 %v13238_v22  ;;  %v13276_v2 = vand.u32 4294901760, %v18946_v25  ;;  %v13258_v40 = vand.u32 4294901760, %v13257_v33 }
0x166f   :  { %16226 = vmatpush3.bf16.msra.mxu1 %v18859_v8  ;;  %v13248_v24 = vand.u32 4294901760, %v13247_v41  ;;  %v13266_v9 = vand.u32 4294901760, %v18953_v59 }
0x1670   :  { %16228 = vmatprep.subr.bf16.mxu1 %v18861_v56  ;;  %v13277_v11 = vsub.f32 %v18946_v25, %v13276_v2 }
0x1671   :  { %15805 = vmatprep.mubr.f32.mxu1 %v13248_v24  ;;  %v13267_v39 = vsub.f32 %v18953_v59, %v13266_v9 }
0x1672   :  { %15806 = vmatmul.mubr.f32.gmra.mrb[44].mxu1 %v13258_v40  ;;  %v13278_v4 = vand.u32 4294901760, %v13277_v11 }
0x1673   :  { %16230 = vmatpush3.bf16.msra.mxu1 %v18861_v56  ;;  %v13268_v57 = vand.u32 4294901760, %v13267_v39 }
0x1674   :  { %16232 = vmatprep.subr.bf16.mxu1 %v18863_v58 }
0x1675   :  { %15808 = vmatprep.mubr.f32.mxu1 %v13268_v57 }
0x1676   :  { %15809 = vmatmul.mubr.f32.gmra.mrb[46].mxu1 %v13278_v4 }
0x1677   :  { %16234 = vmatpush3.bf16.msra.mxu1 %v18863_v58  ;;  %15827 = vmatprep.mubr.f32.mxu1 %v18888_v20 }
0x1678   :  { %16236 = vmatprep.subr.bf16.mxu1 %v18865_v28 }
0x167a   :  { %15828 = vmatmul.mubr.f32.vlgmr.msra.gmra.mrb[40].mxu1 %v18885_v19 }
0x167b   :  { %15830 = vmatprep.mubr.f32.mxu1 %v18901_v62  ;;  %16238 = vmatpush3.bf16.msra.mxu1 %v18865_v28 }
0x167c   :  { %16240 = vmatprep.subr.bf16.mxu1 %v18867_v13 }
0x167e   :  { %15831 = vmatmul.mubr.f32.gmra.mrb[42].mxu1 %v18898_v0 }
0x167f   :  { %15833 = vmatprep.mubr.f32.mxu1 %v18920_v27  ;;  %16242 = vmatpush3.bf16.msra.mxu1 %v18867_v13 }
0x1680   :  { %16244 = vmatprep.subr.bf16.mxu1 %v18869_v10 }
0x1682   :  { %15834 = vmatmul.mubr.f32.gmra.mrb[44].mxu1 %v18917_v35 }
0x1683   :  { %15836 = vmatprep.mubr.f32.mxu1 %v18941_v54  ;;  %16246 = vmatpush3.bf16.msra.mxu1 %v18869_v10 }
0x1684   :  { %16248 = vmatprep.subr.bf16.mxu1 %v18871_v1 }
0x1686   :  { %15837 = vmatmul.mubr.f32.gmra.mrb[46].mxu1 %v18934_v61 }
0x1687   :  { %16250 = vmatpush3.bf16.msra.mxu1 %v18871_v1  ;;  %15855 = vmatprep.mubr.f32.mxu1 %v18894_v18 }
0x1688   :  { %16252 = vmatprep.subr.bf16.mxu1 %v18840_v55 }
0x168a   :  { %15856 = vmatmul.mubr.f32.vlgmr.msra.gmra.mrb[40].mxu1 %v18891_v51 }
0x168b   :  { %15858 = vmatprep.mubr.f32.mxu1 %v18911_v21  ;;  %16254 = vmatpush3.bf16.msra.mxu1 %v18840_v55 }
0x168c   :  { %16256 = vmatprep.subr.bf16.mxu1 %v18844_v23 }
0x168e   :  { %15859 = vmatmul.mubr.f32.gmra.mrb[42].mxu1 %v18905_v6 }
0x168f   :  { %15861 = vmatprep.mubr.f32.mxu1 %v18928_v12  ;;  %16258 = vmatpush3.bf16.msra.mxu1 %v18844_v23 }
0x1690   :  { %16260 = vmatprep.subr.bf16.mxu1 %v18848_v36 }
0x1692   :  { %15862 = vmatmul.mubr.f32.gmra.mrb[44].mxu1 %v18924_v63 }
0x1693   :  { %15864 = vmatprep.mubr.f32.mxu1 %v18953_v59  ;;  %16262 = vmatpush3.bf16.msra.mxu1 %v18848_v36 }
0x1694   :  { %16264 = vmatprep.subr.bf16.mxu1 %v18852_v15 }
0x1696   :  { %15865 = vmatmul.mubr.f32.gmra.mrb[46].mxu1 %v18946_v25 }
0x1697   :  { %16266 = vmatpush3.bf16.msra.mxu1 %v18852_v15  ;;  %15883 = vmatprep.mubr.f32.mxu1 %v13206_v7 }
0x1698   :  { %16268 = vmatprep.subr.bf16.mxu1 %v18873_v29 }
0x169a   :  { %15884 = vmatmul.mubr.f32.vlgmr.msra.gmra.mrb[40].mxu1 %v13216_v38 }
0x169b   :  { %15886 = vmatprep.mubr.f32.mxu1 %v13226_v43  ;;  %16270 = vmatpush3.bf16.msra.mxu1 %v18873_v29 }
0x169c   :  { %16272 = vmatprep.subr.bf16.mxu1 %v18875_v16 }
0x169e   :  { %15887 = vmatmul.mubr.f32.gmra.mrb[42].mxu1 %v13236_v60 }
0x169f   :  { %15889 = vmatprep.mubr.f32.mxu1 %v13246_v32  ;;  %16274 = vmatpush3.bf16.msra.mxu1 %v18875_v16 }
0x16a0   :  { %16276 = vmatprep.subr.bf16.mxu1 %v18877_v34 }
0x16a2   :  { %15890 = vmatmul.mubr.f32.gmra.mrb[44].mxu1 %v13256_v44 }
0x16a3   :  { %15892 = vmatprep.mubr.f32.mxu1 %v13266_v9  ;;  %16278 = vmatpush3.bf16.msra.mxu1 %v18877_v34 }
0x16a4   :  { %16280 = vmatprep.subr.bf16.mxu1 %v18879_v30 }
0x16a6   :  { %15893 = vmatmul.mubr.f32.gmra.mrb[46].mxu1 %v13276_v2 }
0x16a7   :  { %16282 = vmatpush3.bf16.msra.mxu1 %v18879_v30  ;;  %15911 = vmatprep.mubr.f32.mxu1 %v18888_v20 }
0x16a8   :  { %16284 = vmatprep.subr.bf16.mxu1 %v18840_v55 }
0x16aa   :  { %15912 = vmatmul.mubr.f32.vlgmr.msra.gmra.mrb[40].mxu1 %v18885_v19 }
0x16ab   :  { %15914 = vmatprep.mubr.f32.mxu1 %v18901_v62  ;;  %16286 = vmatpush3.bf16.msra.mxu1 %v18840_v55  ;;  %v14012_v55 = vld [vmem:[%s19089_s3 + $0xc] ss:$0 sm:$0xff] }
0x16ac   :  { %16288 = vmatprep.subr.bf16.mxu1 %v18844_v23 }
0x16ae   :  { %15915 = vmatmul.mubr.f32.gmra.mrb[42].mxu1 %v18898_v0 }
0x16af   :  { %15917 = vmatprep.mubr.f32.mxu1 %v18920_v27  ;;  %16290 = vmatpush3.bf16.msra.mxu1 %v18844_v23 }
0x16b0   :  { %16292 = vmatprep.subr.bf16.mxu1 %v18848_v36 }
0x16b2   :  { %15918 = vmatmul.mubr.f32.gmra.mrb[44].mxu1 %v18917_v35 }
0x16b3   :  { %15920 = vmatprep.mubr.f32.mxu1 %v18941_v54  ;;  %16294 = vmatpush3.bf16.msra.mxu1 %v18848_v36 }
0x16b4   :  { %16296 = vmatprep.subr.bf16.mxu1 %v18852_v15 }
0x16b6   :  { %15921 = vmatmul.mubr.f32.gmra.mrb[46].mxu1 %v18934_v61 }
0x16b7   :  { %16298 = vmatpush3.bf16.msra.mxu1 %v18852_v15  ;;  %15939 = vmatprep.mubr.f32.mxu1 %v18888_v20 }
0x16ba   :  { %15940 = vmatmul.mubr.f32.vlgmr.msra.gmra.mrb[40].mxu1 %v18885_v19 }
0x16bb   :  { %15942 = vmatprep.mubr.f32.mxu1 %v18901_v62 }
0x16be   :  { %15943 = vmatmul.mubr.f32.gmra.mrb[42].mxu1 %v18898_v0 }
0x16bf   :  { %15945 = vmatprep.mubr.f32.mxu1 %v18920_v27 }
0x16c2   :  { %15946 = vmatmul.mubr.f32.gmra.mrb[44].mxu1 %v18917_v35 }
0x16c3   :  { %15948 = vmatprep.mubr.f32.mxu1 %v18941_v54 }
0x16c6   :  { %15949 = vmatmul.mubr.f32.gmra.mrb[46].mxu1 %v18934_v61 }
0x178d   :  { %v15941_v23 = vpop.f32.mrb[40].mxu1 }
0x178e   :  { %v16345_v36 = vadd.f32 %v15941_v23, %v14012_v55  ;;  %v13923_v15 = vpop.f32.mrb[41].mxu1 }
0x178f   :  { %v16346_v8 = vadd.f32 %v14012_v55, %v13923_v15 }
0x1790   :  { %v13970_v56 = vadd.f32 %v16345_v36, %v18593_v31 }
0x1791   :  { %v13969_v58 = vadd.f32 %v16346_v8, %v18588_v50  ;;  %v15944_v28 = vpop.f32.mrb[42].mxu1 }
0x1792   :  { %13978 = vst.msk [vmem:[%s19092_s6 + $0x8] sm:$0xff] %vm55_vm0, %v13970_v56  ;;  %v16347_v13 = vadd.f32 %v15944_v28, %v14012_v55  ;;  %v13935_v10 = vpop.f32.mrb[43].mxu1 }
0x1793   :  { %13977 = vst.msk [vmem:[%s19092_s6] sm:$0xff] %vm55_vm0, %v13969_v58  ;;  %v16348_v1 = vadd.f32 %v14012_v55, %v13935_v10 }
0x1794   :  { %v13972_v29 = vadd.f32 %v16347_v13, %v18602_v47 }
0x1795   :  { %v13971_v31 = vadd.f32 %v16348_v1, %v18607_v45  ;;  %v15947_v16 = vpop.f32.mrb[44].mxu1 }
0x1796   :  { %13980 = vst.msk [vmem:[%s19092_s6 + $0x18] sm:$0xff] %vm55_vm0, %v13972_v29  ;;  %v16349_v50 = vadd.f32 %v15947_v16, %v14012_v55  ;;  %v13947_v34 = vpop.f32.mrb[45].mxu1 }
0x1797   :  { %13979 = vst.msk [vmem:[%s19092_s6 + $0x10] sm:$0xff] %vm55_vm0, %v13971_v31  ;;  %v16350_v30 = vadd.f32 %v14012_v55, %v13947_v34 }
0x1798   :  { %v13974_v19 = vadd.f32 %v16349_v50, %v18614_v48 }
0x1799   :  { %v13973_v47 = vadd.f32 %v16350_v30, %v18621_v46  ;;  %v15950_v20 = vpop.f32.mrb[46].mxu1 }
0x179a   :  { %13982 = vst.msk [vmem:[%s19092_s6 + $0x28] sm:$0xff] %vm55_vm0, %v13974_v19  ;;  %v16351_v45 = vadd.f32 %v15950_v20, %v14012_v55  ;;  %v13959_v51 = vpop.f32.mrb[47].mxu1 }
0x179b   :  { %13981 = vst.msk [vmem:[%s19092_s6 + $0x20] sm:$0xff] %vm55_vm0, %v13973_v47  ;;  %v16352_v18 = vadd.f32 %v14012_v55, %v13959_v51 }
0x179c   :  { %v13976_v38 = vadd.f32 %v16351_v45, %v18628_v26 }
0x179d   :  { %v13975_v48 = vadd.f32 %v16352_v18, %v18635_v52 }
0x179e   :  { %13984 = vst.msk [vmem:[%s19092_s6 + $0x38] sm:$0xff] %vm55_vm0, %v13976_v38 }
0x179f   :  { %13983 = vst.msk [vmem:[%s19092_s6 + $0x30] sm:$0xff] %vm55_vm0, %v13975_v48 }
0x17a0   :  { %13989 = vsyncpa [#allocation3], 1 }

</bundles_post_ra>
